<compile_context>
chip_gen: v6e
topology: v6e:2x2x1
jax: 0.10.0
libtpu: 0.0.40
codegen_flags: <defaults>
</compile_context>

<pallas_src>
import functools

import jax
import jax.numpy as jnp
from jax import lax
from jax.experimental import pallas as pl
from jax.experimental.pallas import tpu as pltpu


# ----------------------------- Pallas kernels ------------------------------

def _conv_mm_kernel(p_ref, w_ref, b_ref, o_ref, *, relu):
    """One 3x3 conv as a single lane-dense MXU matmul.

    p_ref: (1, 9*Cin, H*W) bf16   (im2col patches, spatial on the 128-lane axis)
    w_ref: (Cout, 9*Cin)   bf16
    b_ref: (Cout, 1)       f32
    o_ref: (1, Cout, H*W)  f32
    """
    acc = jnp.dot(w_ref[...], p_ref[0], preferred_element_type=jnp.float32)
    acc = acc + b_ref[...]                       # (Cout, 1) broadcasts over lanes
    if relu:
        acc = jnp.maximum(acc, 0.0)
    o_ref[0] = acc.astype(o_ref.dtype)


def _fused_conv_mm_kernel(ab_ref, pu_ref, ps_ref, w_ref, b_ref, o_ref, *, relu):
    """Conv whose input is sim_alpha*up + sim_beta*skip, folded in via its two
    im2col patch matrices (reflection pad + im2col are linear ops).

    ab_ref: (2,) f32 in SMEM = [sim_alpha, sim_beta]
    pu_ref/ps_ref: (1, 9*Cin, H*W) bf16 patches of the upsampled / skip tensors.
    """
    alpha = ab_ref[0]
    beta = ab_ref[1]
    combo = (alpha * pu_ref[0].astype(jnp.float32)
             + beta * ps_ref[0].astype(jnp.float32)).astype(jnp.bfloat16)
    acc = jnp.dot(w_ref[...], combo, preferred_element_type=jnp.float32)
    acc = acc + b_ref[...]
    if relu:
        acc = jnp.maximum(acc, 0.0)
    o_ref[0] = acc.astype(o_ref.dtype)


# ------------------------------ wrapper glue --------------------------------

def _reflect_pad_nchw(x):
    # layout-only op, kept in XLA
    return jnp.pad(x, ((0, 0), (0, 0), (1, 1), (1, 1)), mode="reflect")


def _im2col(xp):
    """xp: (N, C, H+2, W+2) padded -> patches (N, 9*C, H*W); row index = tap*C + ci."""
    N, C, Hp, Wp = xp.shape
    H, W = Hp - 2, Wp - 2
    taps = [xp[:, :, ky:ky + H, kx:kx + W].reshape(N, C, H * W)
            for ky in range(3) for kx in range(3)]
    return jnp.concatenate(taps, axis=1)


def _pack_w(w):
    """HWIO (3,3,Cin,Cout) -> (Cout, 9*Cin) bf16, matching the im2col row order."""
    Cin, Cout = w.shape[2], w.shape[3]
    w2 = jnp.transpose(w.reshape(9, Cin, Cout), (2, 0, 1)).reshape(Cout, 9 * Cin)
    return w2.astype(jnp.bfloat16)


def upsample2x(x):
    # nn.Upsample(scale_factor=2, mode='nearest'), NCHW -- pure layout op.
    return jnp.repeat(jnp.repeat(x, 2, axis=2), 2, axis=3)


def conv3x3_reflect(x, w, b, relu):
    """ReflectionPad2d(1) + Conv2d(k=3) [+ ReLU] on NCHW x, one matmul per sample."""
    N, Cin, H, W = x.shape
    Cout = w.shape[3]
    hw, k9 = H * W, 9 * Cin
    p = _im2col(_reflect_pad_nchw(x)).astype(jnp.bfloat16)     # bf16 at the boundary
    w2 = _pack_w(w)
    b2 = b.reshape(Cout, 1).astype(jnp.float32)
    kernel = functools.partial(_conv_mm_kernel, relu=relu)
    out = pl.pallas_call(
        kernel,
        out_shape=jax.ShapeDtypeStruct((N, Cout, hw), jnp.float32),
        grid=(N,),                                             # v7x: one sample per TC
        in_specs=[
            pl.BlockSpec((1, k9, hw), lambda n: (n, 0, 0)),
            pl.BlockSpec((Cout, k9), lambda n: (0, 0)),
            pl.BlockSpec((Cout, 1), lambda n: (0, 0)),
        ],
        out_specs=pl.BlockSpec((1, Cout, hw), lambda n: (n, 0, 0)),
        compiler_params=pltpu.CompilerParams(dimension_semantics=("parallel",)),
    )(p, w2, b2)
    return out.reshape(N, Cout, H, W)


def conv3x3_reflect_fused(up, skip, ab, w, b, relu):
    """Conv of (sim_alpha*up + sim_beta*skip); the fusion runs inside the kernel."""
    N, Cin, H, W = up.shape
    Cout = w.shape[3]
    hw, k9 = H * W, 9 * Cin
    pu = _im2col(_reflect_pad_nchw(up)).astype(jnp.bfloat16)
    ps = _im2col(_reflect_pad_nchw(skip)).astype(jnp.bfloat16)
    w2 = _pack_w(w)
    b2 = b.reshape(Cout, 1).astype(jnp.float32)
    kernel = functools.partial(_fused_conv_mm_kernel, relu=relu)
    out = pl.pallas_call(
        kernel,
        out_shape=jax.ShapeDtypeStruct((N, Cout, hw), jnp.float32),
        grid=(N,),
        in_specs=[
            pl.BlockSpec(memory_space=pltpu.MemorySpace.SMEM),   # [alpha, beta]
            pl.BlockSpec((1, k9, hw), lambda n: (n, 0, 0)),
            pl.BlockSpec((1, k9, hw), lambda n: (n, 0, 0)),
            pl.BlockSpec((Cout, k9), lambda n: (0, 0)),
            pl.BlockSpec((Cout, 1), lambda n: (0, 0)),
        ],
        out_specs=pl.BlockSpec((1, Cout, hw), lambda n: (n, 0, 0)),
        compiler_params=pltpu.CompilerParams(dimension_semantics=("parallel",)),
    )(ab, pu, ps, w2, b2)
    return out.reshape(N, Cout, H, W)


# ------------------------------ Decoder module ------------------------------

def init_decoder_params(key):
    # Scaled-down VGG decoder channel widths (same topology as the 512->3 one).
    cfg = {
        "dec1": [(32, 16)],
        "dec2": [(16, 16), (16, 16), (16, 16), (16, 8)],
        "dec3": [(8, 8), (8, 4)],
        "dec4": [(4, 4), (4, 3)],
    }
    params = {}
    for stage, convs in cfg.items():
        layers = []
        for cin, cout in convs:
            key, kw, kb = jax.random.split(key, 3)
            w = jax.random.normal(kw, (3, 3, cin, cout), jnp.float32) * 0.1  # HWIO
            b = jax.random.normal(kb, (cout,), jnp.float32) * 0.1
            layers.append((w, b))
        params[stage] = layers
    params["sim_alpha"] = jnp.ones((1,), jnp.float32)
    params["sim_beta"] = jnp.ones((1,), jnp.float32)
    return params


def _forward(params, x, skip, fusion, conv_fn, fused_conv_fn):
    ab = jnp.concatenate([params["sim_alpha"], params["sim_beta"]]).astype(jnp.float32)
    d = x
    # dec_1: ReflPad -> Conv -> ReLU -> Upsample
    for w, b in params["dec1"]:
        d = conv_fn(d, w, b, True)
    d = upsample2x(d)

    def stage(d, convs, skip_feat):
        convs = list(convs)
        if fusion:
            (w, b), convs = convs[0], convs[1:]
            d = fused_conv_fn(d, skip_feat, ab, w, b, True)   # fusion folded into conv
        for w, b in convs:
            d = conv_fn(d, w, b, True)
        return d

    # dec_2 (+ fusion with skip['cwct_1']), then upsample
    d = stage(d, params["dec2"], skip["cwct_1"] if fusion else None)
    d = upsample2x(d)
    # dec_3 (+ fusion with skip['cwct_2']), then upsample
    d = stage(d, params["dec3"], skip["cwct_2"] if fusion else None)
    d = upsample2x(d)
    # dec_4 (last conv has no ReLU)
    w, b = params["dec4"][0]
    d = conv_fn(d, w, b, True)
    w, b = params["dec4"][1]
    d = conv_fn(d, w, b, False)
    return d


def decoder_forward(params, x, skip=None, fusion=True):
    return _forward(params, x, skip, fusion, conv3x3_reflect, conv3x3_reflect_fused)


# ------------------------------ pure-JAX reference ---------------------------
# Same math (bf16 conv inputs/weights, f32 accumulation + epilogue) via lax.conv.

def _conv3x3_ref(x, w, b, relu):
    xp = _reflect_pad_nchw(x).astype(jnp.bfloat16)
    y = lax.conv_general_dilated(
        xp, w.astype(jnp.bfloat16), (1, 1), "VALID",
        dimension_numbers=("NCHW", "HWIO", "NCHW"),
        preferred_element_type=jnp.float32,
        precision=lax.Precision.HIGHEST)
    y = y + b.astype(jnp.float32)[None, :, None, None]
    if relu:
        y = jnp.maximum(y, 0.0)
    return y


def _conv3x3_ref_fused(up, skip, ab, w, b, relu):
    u = up.astype(jnp.bfloat16).astype(jnp.float32)
    s = skip.astype(jnp.bfloat16).astype(jnp.float32)
    fused = (ab[0] * u + ab[1] * s).astype(jnp.bfloat16).astype(jnp.float32)
    return _conv3x3_ref(fused, w, b, relu)


def decoder_forward_ref(params, x, skip=None, fusion=True):
    return _forward(params, x, skip, fusion, _conv3x3_ref, _conv3x3_ref_fused)


# ----------------------------------- main ------------------------------------

if __name__ == "__main__":
    key = jax.random.PRNGKey(0)
    k_x, k_s1, k_s2, k_p = jax.random.split(key, 4)

    N, C, H, W = 2, 32, 8, 8                       # NCHW, like the PyTorch module
    x = jax.random.normal(k_x, (N, C, H, W), dtype=jnp.float32)

    # skip features must match dec1 (16 ch, 2x spatial) and dec2 (8 ch, 4x spatial)
    skip = {
        "cwct_1": jax.random.normal(k_s1, (N, 16, 2 * H, 2 * W), dtype=jnp.float32),
        "cwct_2": jax.random.normal(k_s2, (N, 8, 4 * H, 4 * W), dtype=jnp.float32),
    }

    params = init_decoder_params(k_p)

    fwd = jax.jit(functools.partial(decoder_forward, fusion=True))
    out = jax.block_until_ready(fwd(params, x, skip))

    ref = decoder_forward_ref(params, x, skip=skip, fusion=True)
    assert out.shape == (N, 3, 8 * H, 8 * W), out.shape
    max_err = float(jnp.max(jnp.abs(out - ref)))
    assert jnp.allclose(out, ref, rtol=1e-2, atol=1e-2), max_err

    print("KERNEL_OK")
</pallas_src>

<mosaic_0001>
module attributes {stable_mosaic.version = 11 : i64} {
  func.func @_conv_mm_kernel(%arg0: i32, %arg1: memref<1x288x64xbf16, #tpu.memory_space<vmem>>, %arg2: memref<16x288xbf16, #tpu.memory_space<vmem>>, %arg3: memref<16x1xf32, #tpu.memory_space<vmem>>, %arg4: memref<1x16x64xf32, #tpu.memory_space<vmem>>) attributes {dimension_semantics = [#tpu.dimension_semantics<parallel>], iteration_bounds = array<i64: 2>, scalar_prefetch = 0 : i64, scratch_operands = 0 : i64, tpu.core_type = #tpu.core_type<tc>, window_params = [{transform_indices = @transform_0, window_bounds = array<i64: 1, 288, 64>}, {pipeline_mode = #tpu.pipeline_mode<synchronous>, transform_indices = @transform_1, window_bounds = array<i64: 16, 288>}, {pipeline_mode = #tpu.pipeline_mode<synchronous>, transform_indices = @transform_2, window_bounds = array<i64: 16, 1>}, {transform_indices = @transform_3, window_bounds = array<i64: 1, 16, 64>}]} {
    %c0 = arith.constant 0 : index
    %c0_0 = arith.constant 0 : index
    %0 = vector.load %arg2[%c0, %c0_0] : memref<16x288xbf16, #tpu.memory_space<vmem>>, vector<16x288xbf16>
    %c0_1 = arith.constant 0 : index
    %c0_2 = arith.constant 0 : index
    %c0_3 = arith.constant 0 : index
    %1 = vector.load %arg1[%c0_1, %c0_2, %c0_3] : memref<1x288x64xbf16, #tpu.memory_space<vmem>>, vector<1x288x64xbf16>
    %2 = vector.shape_cast %1 : vector<1x288x64xbf16> to vector<288x64xbf16>
    %cst = arith.constant dense<0.000000e+00> : vector<16x64xf32>
    %3 = tpu.matmul %0, %2, %cst {dimension_numbers = #tpu.dot_dimension_numbers<[1], [0], [0], [1], [0, 0, 1, 1], [], []>} : vector<16x288xbf16>, vector<288x64xbf16>, vector<16x64xf32> -> vector<16x64xf32>
    %c0_4 = arith.constant 0 : index
    %c0_5 = arith.constant 0 : index
    %4 = vector.load %arg3[%c0_4, %c0_5] : memref<16x1xf32, #tpu.memory_space<vmem>>, vector<16x1xf32>
    %5 = vector.broadcast %4 : vector<16x1xf32> to vector<16x64xf32>
    %6 = arith.addf %3, %5 : vector<16x64xf32>
    %cst_6 = arith.constant 0.000000e+00 : f32
    %7 = vector.broadcast %cst_6 : f32 to vector<16x64xf32>
    %8 = arith.maximumf %6, %7 : vector<16x64xf32>
    %c0_7 = arith.constant 0 : index
    %c0_8 = arith.constant 0 : index
    %c0_9 = arith.constant 0 : index
    %9 = vector.load %arg4[%c0_7, %c0_8, %c0_9] : memref<1x16x64xf32, #tpu.memory_space<vmem>>, vector<1x16x64xf32>
    %10 = vector.shape_cast %9 : vector<1x16x64xf32> to vector<16x64xf32>
    %11 = vector.shape_cast %8 : vector<16x64xf32> to vector<1x16x64xf32>
    tpu.vector_store %arg4[%c0_7, %c0_8, %c0_9], %11 {strides = array<i32>} : memref<1x16x64xf32, #tpu.memory_space<vmem>>, vector<1x16x64xf32>,
    return
  }
  func.func @transform_0(%arg0: i32) -> (i32, i32, i32) {
    %c0_i32 = arith.constant 0 : i32
    %c0_i32_0 = arith.constant 0 : i32
    %c0_i32_1 = arith.constant 0 : i32
    return %arg0, %c0_i32, %c0_i32_0 : i32, i32, i32
  }
  func.func @transform_1(%arg0: i32) -> (i32, i32) {
    %c0_i32 = arith.constant 0 : i32
    %c0_i32_0 = arith.constant 0 : i32
    %c0_i32_1 = arith.constant 0 : i32
    return %c0_i32, %c0_i32_0 : i32, i32
  }
  func.func @transform_2(%arg0: i32) -> (i32, i32) {
    %c0_i32 = arith.constant 0 : i32
    %c0_i32_0 = arith.constant 0 : i32
    %c0_i32_1 = arith.constant 0 : i32
    return %c0_i32, %c0_i32_0 : i32, i32
  }
  func.func @transform_3(%arg0: i32) -> (i32, i32, i32) {
    %c0_i32 = arith.constant 0 : i32
    %c0_i32_0 = arith.constant 0 : i32
    %c0_i32_1 = arith.constant 0 : i32
    return %arg0, %c0_i32, %c0_i32_0 : i32, i32, i32
  }
}

module attributes {stable_mosaic.version = 11 : i64} {
  func.func @_fused_conv_mm_kernel(%arg0: i32, %arg1: memref<2xf32, #tpu.memory_space<smem>>, %arg2: memref<1x144x256xbf16, #tpu.memory_space<vmem>>, %arg3: memref<1x144x256xbf16, #tpu.memory_space<vmem>>, %arg4: memref<16x144xbf16, #tpu.memory_space<vmem>>, %arg5: memref<16x1xf32, #tpu.memory_space<vmem>>, %arg6: memref<1x16x256xf32, #tpu.memory_space<vmem>>) attributes {dimension_semantics = [#tpu.dimension_semantics<parallel>], iteration_bounds = array<i64: 2>, scalar_prefetch = 0 : i64, scratch_operands = 0 : i64, tpu.core_type = #tpu.core_type<tc>, window_params = [{transform_indices = @transform_0, window_bounds = array<i64: 2>}, {transform_indices = @transform_1, window_bounds = array<i64: 1, 144, 256>}, {transform_indices = @transform_2, window_bounds = array<i64: 1, 144, 256>}, {pipeline_mode = #tpu.pipeline_mode<synchronous>, transform_indices = @transform_3, window_bounds = array<i64: 16, 144>}, {pipeline_mode = #tpu.pipeline_mode<synchronous>, transform_indices = @transform_4, window_bounds = array<i64: 16, 1>}, {transform_indices = @transform_5, window_bounds = array<i64: 1, 16, 256>}]} {
    %c0 = arith.constant 0 : index
    %0 = memref.load %arg1[%c0] : memref<2xf32, #tpu.memory_space<smem>>
    %c1 = arith.constant 1 : index
    %1 = memref.load %arg1[%c1] : memref<2xf32, #tpu.memory_space<smem>>
    %c0_0 = arith.constant 0 : index
    %c0_1 = arith.constant 0 : index
    %c0_2 = arith.constant 0 : index
    %2 = vector.load %arg2[%c0_0, %c0_1, %c0_2] : memref<1x144x256xbf16, #tpu.memory_space<vmem>>, vector<1x144x256xbf16>
    %3 = vector.shape_cast %2 : vector<1x144x256xbf16> to vector<144x256xbf16>
    %4 = arith.extf %3 : vector<144x256xbf16> to vector<144x256xf32>
    %5 = vector.broadcast %0 : f32 to vector<144x256xf32>
    %6 = arith.mulf %5, %4 : vector<144x256xf32>
    %c0_3 = arith.constant 0 : index
    %c0_4 = arith.constant 0 : index
    %c0_5 = arith.constant 0 : index
    %7 = vector.load %arg3[%c0_3, %c0_4, %c0_5] : memref<1x144x256xbf16, #tpu.memory_space<vmem>>, vector<1x144x256xbf16>
    %8 = vector.shape_cast %7 : vector<1x144x256xbf16> to vector<144x256xbf16>
    %9 = arith.extf %8 : vector<144x256xbf16> to vector<144x256xf32>
    %10 = vector.broadcast %1 : f32 to vector<144x256xf32>
    %11 = arith.mulf %10, %9 : vector<144x256xf32>
    %12 = arith.addf %6, %11 : vector<144x256xf32>
    %13 = arith.truncf %12 : vector<144x256xf32> to vector<144x256xbf16>
    %c0_6 = arith.constant 0 : index
    %c0_7 = arith.constant 0 : index
    %14 = vector.load %arg4[%c0_6, %c0_7] : memref<16x144xbf16, #tpu.memory_space<vmem>>, vector<16x144xbf16>
    %cst = arith.constant dense<0.000000e+00> : vector<16x256xf32>
    %15 = tpu.matmul %14, %13, %cst {dimension_numbers = #tpu.dot_dimension_numbers<[1], [0], [0], [1], [0, 0, 1, 1], [], []>} : vector<16x144xbf16>, vector<144x256xbf16>, vector<16x256xf32> -> vector<16x256xf32>
    %c0_8 = arith.constant 0 : index
    %c0_9 = arith.constant 0 : index
    %16 = vector.load %arg5[%c0_8, %c0_9] : memref<16x1xf32, #tpu.memory_space<vmem>>, vector<16x1xf32>
    %17 = vector.broadcast %16 : vector<16x1xf32> to vector<16x256xf32>
    %18 = arith.addf %15, %17 : vector<16x256xf32>
    %cst_10 = arith.constant 0.000000e+00 : f32
    %19 = vector.broadcast %cst_10 : f32 to vector<16x256xf32>
    %20 = arith.maximumf %18, %19 : vector<16x256xf32>
    %c0_11 = arith.constant 0 : index
    %c0_12 = arith.constant 0 : index
    %c0_13 = arith.constant 0 : index
    %21 = vector.load %arg6[%c0_11, %c0_12, %c0_13] : memref<1x16x256xf32, #tpu.memory_space<vmem>>, vector<1x16x256xf32>
    %22 = vector.shape_cast %21 : vector<1x16x256xf32> to vector<16x256xf32>
    %23 = vector.shape_cast %20 : vector<16x256xf32> to vector<1x16x256xf32>
    tpu.vector_store %arg6[%c0_11, %c0_12, %c0_13], %23 {strides = array<i32>} : memref<1x16x256xf32, #tpu.memory_space<vmem>>, vector<1x16x256xf32>,
    return
  }
  func.func @transform_0(%arg0: i32) -> i32 {
    %c0_i32 = arith.constant 0 : i32
    %c0_i32_0 = arith.constant 0 : i32
    return %c0_i32 : i32
  }
  func.func @transform_1(%arg0: i32) -> (i32, i32, i32) {
    %c0_i32 = arith.constant 0 : i32
    %c0_i32_0 = arith.constant 0 : i32
    %c0_i32_1 = arith.constant 0 : i32
    return %arg0, %c0_i32, %c0_i32_0 : i32, i32, i32
  }
  func.func @transform_2(%arg0: i32) -> (i32, i32, i32) {
    %c0_i32 = arith.constant 0 : i32
    %c0_i32_0 = arith.constant 0 : i32
    %c0_i32_1 = arith.constant 0 : i32
    return %arg0, %c0_i32, %c0_i32_0 : i32, i32, i32
  }
  func.func @transform_3(%arg0: i32) -> (i32, i32) {
    %c0_i32 = arith.constant 0 : i32
    %c0_i32_0 = arith.constant 0 : i32
    %c0_i32_1 = arith.constant 0 : i32
    return %c0_i32, %c0_i32_0 : i32, i32
  }
  func.func @transform_4(%arg0: i32) -> (i32, i32) {
    %c0_i32 = arith.constant 0 : i32
    %c0_i32_0 = arith.constant 0 : i32
    %c0_i32_1 = arith.constant 0 : i32
    return %c0_i32, %c0_i32_0 : i32, i32
  }
  func.func @transform_5(%arg0: i32) -> (i32, i32, i32) {
    %c0_i32 = arith.constant 0 : i32
    %c0_i32_0 = arith.constant 0 : i32
    %c0_i32_1 = arith.constant 0 : i32
    return %arg0, %c0_i32, %c0_i32_0 : i32, i32, i32
  }
}

module attributes {stable_mosaic.version = 11 : i64} {
  func.func @_conv_mm_kernel(%arg0: i32, %arg1: memref<1x144x256xbf16, #tpu.memory_space<vmem>>, %arg2: memref<16x144xbf16, #tpu.memory_space<vmem>>, %arg3: memref<16x1xf32, #tpu.memory_space<vmem>>, %arg4: memref<1x16x256xf32, #tpu.memory_space<vmem>>) attributes {dimension_semantics = [#tpu.dimension_semantics<parallel>], iteration_bounds = array<i64: 2>, scalar_prefetch = 0 : i64, scratch_operands = 0 : i64, tpu.core_type = #tpu.core_type<tc>, window_params = [{transform_indices = @transform_0, window_bounds = array<i64: 1, 144, 256>}, {pipeline_mode = #tpu.pipeline_mode<synchronous>, transform_indices = @transform_1, window_bounds = array<i64: 16, 144>}, {pipeline_mode = #tpu.pipeline_mode<synchronous>, transform_indices = @transform_2, window_bounds = array<i64: 16, 1>}, {transform_indices = @transform_3, window_bounds = array<i64: 1, 16, 256>}]} {
    %c0 = arith.constant 0 : index
    %c0_0 = arith.constant 0 : index
    %0 = vector.load %arg2[%c0, %c0_0] : memref<16x144xbf16, #tpu.memory_space<vmem>>, vector<16x144xbf16>
    %c0_1 = arith.constant 0 : index
    %c0_2 = arith.constant 0 : index
    %c0_3 = arith.constant 0 : index
    %1 = vector.load %arg1[%c0_1, %c0_2, %c0_3] : memref<1x144x256xbf16, #tpu.memory_space<vmem>>, vector<1x144x256xbf16>
    %2 = vector.shape_cast %1 : vector<1x144x256xbf16> to vector<144x256xbf16>
    %cst = arith.constant dense<0.000000e+00> : vector<16x256xf32>
    %3 = tpu.matmul %0, %2, %cst {dimension_numbers = #tpu.dot_dimension_numbers<[1], [0], [0], [1], [0, 0, 1, 1], [], []>} : vector<16x144xbf16>, vector<144x256xbf16>, vector<16x256xf32> -> vector<16x256xf32>
    %c0_4 = arith.constant 0 : index
    %c0_5 = arith.constant 0 : index
    %4 = vector.load %arg3[%c0_4, %c0_5] : memref<16x1xf32, #tpu.memory_space<vmem>>, vector<16x1xf32>
    %5 = vector.broadcast %4 : vector<16x1xf32> to vector<16x256xf32>
    %6 = arith.addf %3, %5 : vector<16x256xf32>
    %cst_6 = arith.constant 0.000000e+00 : f32
    %7 = vector.broadcast %cst_6 : f32 to vector<16x256xf32>
    %8 = arith.maximumf %6, %7 : vector<16x256xf32>
    %c0_7 = arith.constant 0 : index
    %c0_8 = arith.constant 0 : index
    %c0_9 = arith.constant 0 : index
    %9 = vector.load %arg4[%c0_7, %c0_8, %c0_9] : memref<1x16x256xf32, #tpu.memory_space<vmem>>, vector<1x16x256xf32>
    %10 = vector.shape_cast %9 : vector<1x16x256xf32> to vector<16x256xf32>
    %11 = vector.shape_cast %8 : vector<16x256xf32> to vector<1x16x256xf32>
    tpu.vector_store %arg4[%c0_7, %c0_8, %c0_9], %11 {strides = array<i32>} : memref<1x16x256xf32, #tpu.memory_space<vmem>>, vector<1x16x256xf32>,
    return
  }
  func.func @transform_0(%arg0: i32) -> (i32, i32, i32) {
    %c0_i32 = arith.constant 0 : i32
    %c0_i32_0 = arith.constant 0 : i32
    %c0_i32_1 = arith.constant 0 : i32
    return %arg0, %c0_i32, %c0_i32_0 : i32, i32, i32
  }
  func.func @transform_1(%arg0: i32) -> (i32, i32) {
    %c0_i32 = arith.constant 0 : i32
    %c0_i32_0 = arith.constant 0 : i32
    %c0_i32_1 = arith.constant 0 : i32
    return %c0_i32, %c0_i32_0 : i32, i32
  }
  func.func @transform_2(%arg0: i32) -> (i32, i32) {
    %c0_i32 = arith.constant 0 : i32
    %c0_i32_0 = arith.constant 0 : i32
    %c0_i32_1 = arith.constant 0 : i32
    return %c0_i32, %c0_i32_0 : i32, i32
  }
  func.func @transform_3(%arg0: i32) -> (i32, i32, i32) {
    %c0_i32 = arith.constant 0 : i32
    %c0_i32_0 = arith.constant 0 : i32
    %c0_i32_1 = arith.constant 0 : i32
    return %arg0, %c0_i32, %c0_i32_0 : i32, i32, i32
  }
}

module attributes {stable_mosaic.version = 11 : i64} {
  func.func @_conv_mm_kernel(%arg0: i32, %arg1: memref<1x144x256xbf16, #tpu.memory_space<vmem>>, %arg2: memref<8x144xbf16, #tpu.memory_space<vmem>>, %arg3: memref<8x1xf32, #tpu.memory_space<vmem>>, %arg4: memref<1x8x256xf32, #tpu.memory_space<vmem>>) attributes {dimension_semantics = [#tpu.dimension_semantics<parallel>], iteration_bounds = array<i64: 2>, scalar_prefetch = 0 : i64, scratch_operands = 0 : i64, tpu.core_type = #tpu.core_type<tc>, window_params = [{transform_indices = @transform_0, window_bounds = array<i64: 1, 144, 256>}, {pipeline_mode = #tpu.pipeline_mode<synchronous>, transform_indices = @transform_1, window_bounds = array<i64: 8, 144>}, {pipeline_mode = #tpu.pipeline_mode<synchronous>, transform_indices = @transform_2, window_bounds = array<i64: 8, 1>}, {transform_indices = @transform_3, window_bounds = array<i64: 1, 8, 256>}]} {
    %c0 = arith.constant 0 : index
    %c0_0 = arith.constant 0 : index
    %0 = vector.load %arg2[%c0, %c0_0] : memref<8x144xbf16, #tpu.memory_space<vmem>>, vector<8x144xbf16>
    %c0_1 = arith.constant 0 : index
    %c0_2 = arith.constant 0 : index
    %c0_3 = arith.constant 0 : index
    %1 = vector.load %arg1[%c0_1, %c0_2, %c0_3] : memref<1x144x256xbf16, #tpu.memory_space<vmem>>, vector<1x144x256xbf16>
    %2 = vector.shape_cast %1 : vector<1x144x256xbf16> to vector<144x256xbf16>
    %cst = arith.constant dense<0.000000e+00> : vector<8x256xf32>
    %3 = tpu.matmul %0, %2, %cst {dimension_numbers = #tpu.dot_dimension_numbers<[1], [0], [0], [1], [0, 0, 1, 1], [], []>} : vector<8x144xbf16>, vector<144x256xbf16>, vector<8x256xf32> -> vector<8x256xf32>
    %c0_4 = arith.constant 0 : index
    %c0_5 = arith.constant 0 : index
    %4 = vector.load %arg3[%c0_4, %c0_5] : memref<8x1xf32, #tpu.memory_space<vmem>>, vector<8x1xf32>
    %5 = vector.broadcast %4 : vector<8x1xf32> to vector<8x256xf32>
    %6 = arith.addf %3, %5 : vector<8x256xf32>
    %cst_6 = arith.constant 0.000000e+00 : f32
    %7 = vector.broadcast %cst_6 : f32 to vector<8x256xf32>
    %8 = arith.maximumf %6, %7 : vector<8x256xf32>
    %c0_7 = arith.constant 0 : index
    %c0_8 = arith.constant 0 : index
    %c0_9 = arith.constant 0 : index
    %9 = vector.load %arg4[%c0_7, %c0_8, %c0_9] : memref<1x8x256xf32, #tpu.memory_space<vmem>>, vector<1x8x256xf32>
    %10 = vector.shape_cast %9 : vector<1x8x256xf32> to vector<8x256xf32>
    %11 = vector.shape_cast %8 : vector<8x256xf32> to vector<1x8x256xf32>
    tpu.vector_store %arg4[%c0_7, %c0_8, %c0_9], %11 {strides = array<i32>} : memref<1x8x256xf32, #tpu.memory_space<vmem>>, vector<1x8x256xf32>,
    return
  }
  func.func @transform_0(%arg0: i32) -> (i32, i32, i32) {
    %c0_i32 = arith.constant 0 : i32
    %c0_i32_0 = arith.constant 0 : i32
    %c0_i32_1 = arith.constant 0 : i32
    return %arg0, %c0_i32, %c0_i32_0 : i32, i32, i32
  }
  func.func @transform_1(%arg0: i32) -> (i32, i32) {
    %c0_i32 = arith.constant 0 : i32
    %c0_i32_0 = arith.constant 0 : i32
    %c0_i32_1 = arith.constant 0 : i32
    return %c0_i32, %c0_i32_0 : i32, i32
  }
  func.func @transform_2(%arg0: i32) -> (i32, i32) {
    %c0_i32 = arith.constant 0 : i32
    %c0_i32_0 = arith.constant 0 : i32
    %c0_i32_1 = arith.constant 0 : i32
    return %c0_i32, %c0_i32_0 : i32, i32
  }
  func.func @transform_3(%arg0: i32) -> (i32, i32, i32) {
    %c0_i32 = arith.constant 0 : i32
    %c0_i32_0 = arith.constant 0 : i32
    %c0_i32_1 = arith.constant 0 : i32
    return %arg0, %c0_i32, %c0_i32_0 : i32, i32, i32
  }
}

module attributes {stable_mosaic.version = 11 : i64} {
  func.func @_fused_conv_mm_kernel(%arg0: i32, %arg1: memref<2xf32, #tpu.memory_space<smem>>, %arg2: memref<1x72x1024xbf16, #tpu.memory_space<vmem>>, %arg3: memref<1x72x1024xbf16, #tpu.memory_space<vmem>>, %arg4: memref<8x72xbf16, #tpu.memory_space<vmem>>, %arg5: memref<8x1xf32, #tpu.memory_space<vmem>>, %arg6: memref<1x8x1024xf32, #tpu.memory_space<vmem>>) attributes {dimension_semantics = [#tpu.dimension_semantics<parallel>], iteration_bounds = array<i64: 2>, scalar_prefetch = 0 : i64, scratch_operands = 0 : i64, tpu.core_type = #tpu.core_type<tc>, window_params = [{transform_indices = @transform_0, window_bounds = array<i64: 2>}, {transform_indices = @transform_1, window_bounds = array<i64: 1, 72, 1024>}, {transform_indices = @transform_2, window_bounds = array<i64: 1, 72, 1024>}, {pipeline_mode = #tpu.pipeline_mode<synchronous>, transform_indices = @transform_3, window_bounds = array<i64: 8, 72>}, {pipeline_mode = #tpu.pipeline_mode<synchronous>, transform_indices = @transform_4, window_bounds = array<i64: 8, 1>}, {transform_indices = @transform_5, window_bounds = array<i64: 1, 8, 1024>}]} {
    %c0 = arith.constant 0 : index
    %0 = memref.load %arg1[%c0] : memref<2xf32, #tpu.memory_space<smem>>
    %c1 = arith.constant 1 : index
    %1 = memref.load %arg1[%c1] : memref<2xf32, #tpu.memory_space<smem>>
    %c0_0 = arith.constant 0 : index
    %c0_1 = arith.constant 0 : index
    %c0_2 = arith.constant 0 : index
    %2 = vector.load %arg2[%c0_0, %c0_1, %c0_2] : memref<1x72x1024xbf16, #tpu.memory_space<vmem>>, vector<1x72x1024xbf16>
    %3 = vector.shape_cast %2 : vector<1x72x1024xbf16> to vector<72x1024xbf16>
    %4 = arith.extf %3 : vector<72x1024xbf16> to vector<72x1024xf32>
    %5 = vector.broadcast %0 : f32 to vector<72x1024xf32>
    %6 = arith.mulf %5, %4 : vector<72x1024xf32>
    %c0_3 = arith.constant 0 : index
    %c0_4 = arith.constant 0 : index
    %c0_5 = arith.constant 0 : index
    %7 = vector.load %arg3[%c0_3, %c0_4, %c0_5] : memref<1x72x1024xbf16, #tpu.memory_space<vmem>>, vector<1x72x1024xbf16>
    %8 = vector.shape_cast %7 : vector<1x72x1024xbf16> to vector<72x1024xbf16>
    %9 = arith.extf %8 : vector<72x1024xbf16> to vector<72x1024xf32>
    %10 = vector.broadcast %1 : f32 to vector<72x1024xf32>
    %11 = arith.mulf %10, %9 : vector<72x1024xf32>
    %12 = arith.addf %6, %11 : vector<72x1024xf32>
    %13 = arith.truncf %12 : vector<72x1024xf32> to vector<72x1024xbf16>
    %c0_6 = arith.constant 0 : index
    %c0_7 = arith.constant 0 : index
    %14 = vector.load %arg4[%c0_6, %c0_7] : memref<8x72xbf16, #tpu.memory_space<vmem>>, vector<8x72xbf16>
    %cst = arith.constant dense<0.000000e+00> : vector<8x1024xf32>
    %15 = tpu.matmul %14, %13, %cst {dimension_numbers = #tpu.dot_dimension_numbers<[1], [0], [0], [1], [0, 0, 1, 1], [], []>} : vector<8x72xbf16>, vector<72x1024xbf16>, vector<8x1024xf32> -> vector<8x1024xf32>
    %c0_8 = arith.constant 0 : index
    %c0_9 = arith.constant 0 : index
    %16 = vector.load %arg5[%c0_8, %c0_9] : memref<8x1xf32, #tpu.memory_space<vmem>>, vector<8x1xf32>
    %17 = vector.broadcast %16 : vector<8x1xf32> to vector<8x1024xf32>
    %18 = arith.addf %15, %17 : vector<8x1024xf32>
    %cst_10 = arith.constant 0.000000e+00 : f32
    %19 = vector.broadcast %cst_10 : f32 to vector<8x1024xf32>
    %20 = arith.maximumf %18, %19 : vector<8x1024xf32>
    %c0_11 = arith.constant 0 : index
    %c0_12 = arith.constant 0 : index
    %c0_13 = arith.constant 0 : index
    %21 = vector.load %arg6[%c0_11, %c0_12, %c0_13] : memref<1x8x1024xf32, #tpu.memory_space<vmem>>, vector<1x8x1024xf32>
    %22 = vector.shape_cast %21 : vector<1x8x1024xf32> to vector<8x1024xf32>
    %23 = vector.shape_cast %20 : vector<8x1024xf32> to vector<1x8x1024xf32>
    tpu.vector_store %arg6[%c0_11, %c0_12, %c0_13], %23 {strides = array<i32>} : memref<1x8x1024xf32, #tpu.memory_space<vmem>>, vector<1x8x1024xf32>,
    return
  }
  func.func @transform_0(%arg0: i32) -> i32 {
    %c0_i32 = arith.constant 0 : i32
    %c0_i32_0 = arith.constant 0 : i32
    return %c0_i32 : i32
  }
  func.func @transform_1(%arg0: i32) -> (i32, i32, i32) {
    %c0_i32 = arith.constant 0 : i32
    %c0_i32_0 = arith.constant 0 : i32
    %c0_i32_1 = arith.constant 0 : i32
    return %arg0, %c0_i32, %c0_i32_0 : i32, i32, i32
  }
  func.func @transform_2(%arg0: i32) -> (i32, i32, i32) {
    %c0_i32 = arith.constant 0 : i32
    %c0_i32_0 = arith.constant 0 : i32
    %c0_i32_1 = arith.constant 0 : i32
    return %arg0, %c0_i32, %c0_i32_0 : i32, i32, i32
  }
  func.func @transform_3(%arg0: i32) -> (i32, i32) {
    %c0_i32 = arith.constant 0 : i32
    %c0_i32_0 = arith.constant 0 : i32
    %c0_i32_1 = arith.constant 0 : i32
    return %c0_i32, %c0_i32_0 : i32, i32
  }
  func.func @transform_4(%arg0: i32) -> (i32, i32) {
    %c0_i32 = arith.constant 0 : i32
    %c0_i32_0 = arith.constant 0 : i32
    %c0_i32_1 = arith.constant 0 : i32
    return %c0_i32, %c0_i32_0 : i32, i32
  }
  func.func @transform_5(%arg0: i32) -> (i32, i32, i32) {
    %c0_i32 = arith.constant 0 : i32
    %c0_i32_0 = arith.constant 0 : i32
    %c0_i32_1 = arith.constant 0 : i32
    return %arg0, %c0_i32, %c0_i32_0 : i32, i32, i32
  }
}

module attributes {stable_mosaic.version = 11 : i64} {
  func.func @_conv_mm_kernel(%arg0: i32, %arg1: memref<1x72x1024xbf16, #tpu.memory_space<vmem>>, %arg2: memref<4x72xbf16, #tpu.memory_space<vmem>>, %arg3: memref<4x1xf32, #tpu.memory_space<vmem>>, %arg4: memref<1x4x1024xf32, #tpu.memory_space<vmem>>) attributes {dimension_semantics = [#tpu.dimension_semantics<parallel>], iteration_bounds = array<i64: 2>, scalar_prefetch = 0 : i64, scratch_operands = 0 : i64, tpu.core_type = #tpu.core_type<tc>, window_params = [{transform_indices = @transform_0, window_bounds = array<i64: 1, 72, 1024>}, {pipeline_mode = #tpu.pipeline_mode<synchronous>, transform_indices = @transform_1, window_bounds = array<i64: 4, 72>}, {pipeline_mode = #tpu.pipeline_mode<synchronous>, transform_indices = @transform_2, window_bounds = array<i64: 4, 1>}, {transform_indices = @transform_3, window_bounds = array<i64: 1, 4, 1024>}]} {
    %c0 = arith.constant 0 : index
    %c0_0 = arith.constant 0 : index
    %0 = vector.load %arg2[%c0, %c0_0] : memref<4x72xbf16, #tpu.memory_space<vmem>>, vector<4x72xbf16>
    %c0_1 = arith.constant 0 : index
    %c0_2 = arith.constant 0 : index
    %c0_3 = arith.constant 0 : index
    %1 = vector.load %arg1[%c0_1, %c0_2, %c0_3] : memref<1x72x1024xbf16, #tpu.memory_space<vmem>>, vector<1x72x1024xbf16>
    %2 = vector.shape_cast %1 : vector<1x72x1024xbf16> to vector<72x1024xbf16>
    %cst = arith.constant dense<0.000000e+00> : vector<4x1024xf32>
    %3 = tpu.matmul %0, %2, %cst {dimension_numbers = #tpu.dot_dimension_numbers<[1], [0], [0], [1], [0, 0, 1, 1], [], []>} : vector<4x72xbf16>, vector<72x1024xbf16>, vector<4x1024xf32> -> vector<4x1024xf32>
    %c0_4 = arith.constant 0 : index
    %c0_5 = arith.constant 0 : index
    %4 = vector.load %arg3[%c0_4, %c0_5] : memref<4x1xf32, #tpu.memory_space<vmem>>, vector<4x1xf32>
    %5 = vector.broadcast %4 : vector<4x1xf32> to vector<4x1024xf32>
    %6 = arith.addf %3, %5 : vector<4x1024xf32>
    %cst_6 = arith.constant 0.000000e+00 : f32
    %7 = vector.broadcast %cst_6 : f32 to vector<4x1024xf32>
    %8 = arith.maximumf %6, %7 : vector<4x1024xf32>
    %c0_7 = arith.constant 0 : index
    %c0_8 = arith.constant 0 : index
    %c0_9 = arith.constant 0 : index
    %9 = vector.load %arg4[%c0_7, %c0_8, %c0_9] : memref<1x4x1024xf32, #tpu.memory_space<vmem>>, vector<1x4x1024xf32>
    %10 = vector.shape_cast %9 : vector<1x4x1024xf32> to vector<4x1024xf32>
    %11 = vector.shape_cast %8 : vector<4x1024xf32> to vector<1x4x1024xf32>
    tpu.vector_store %arg4[%c0_7, %c0_8, %c0_9], %11 {strides = array<i32>} : memref<1x4x1024xf32, #tpu.memory_space<vmem>>, vector<1x4x1024xf32>,
    return
  }
  func.func @transform_0(%arg0: i32) -> (i32, i32, i32) {
    %c0_i32 = arith.constant 0 : i32
    %c0_i32_0 = arith.constant 0 : i32
    %c0_i32_1 = arith.constant 0 : i32
    return %arg0, %c0_i32, %c0_i32_0 : i32, i32, i32
  }
  func.func @transform_1(%arg0: i32) -> (i32, i32) {
    %c0_i32 = arith.constant 0 : i32
    %c0_i32_0 = arith.constant 0 : i32
    %c0_i32_1 = arith.constant 0 : i32
    return %c0_i32, %c0_i32_0 : i32, i32
  }
  func.func @transform_2(%arg0: i32) -> (i32, i32) {
    %c0_i32 = arith.constant 0 : i32
    %c0_i32_0 = arith.constant 0 : i32
    %c0_i32_1 = arith.constant 0 : i32
    return %c0_i32, %c0_i32_0 : i32, i32
  }
  func.func @transform_3(%arg0: i32) -> (i32, i32, i32) {
    %c0_i32 = arith.constant 0 : i32
    %c0_i32_0 = arith.constant 0 : i32
    %c0_i32_1 = arith.constant 0 : i32
    return %arg0, %c0_i32, %c0_i32_0 : i32, i32, i32
  }
}

module attributes {stable_mosaic.version = 11 : i64} {
  func.func @_conv_mm_kernel(%arg0: i32, %arg1: memref<1x36x4096xbf16, #tpu.memory_space<vmem>>, %arg2: memref<4x36xbf16, #tpu.memory_space<vmem>>, %arg3: memref<4x1xf32, #tpu.memory_space<vmem>>, %arg4: memref<1x4x4096xf32, #tpu.memory_space<vmem>>) attributes {dimension_semantics = [#tpu.dimension_semantics<parallel>], iteration_bounds = array<i64: 2>, scalar_prefetch = 0 : i64, scratch_operands = 0 : i64, tpu.core_type = #tpu.core_type<tc>, window_params = [{transform_indices = @transform_0, window_bounds = array<i64: 1, 36, 4096>}, {pipeline_mode = #tpu.pipeline_mode<synchronous>, transform_indices = @transform_1, window_bounds = array<i64: 4, 36>}, {pipeline_mode = #tpu.pipeline_mode<synchronous>, transform_indices = @transform_2, window_bounds = array<i64: 4, 1>}, {transform_indices = @transform_3, window_bounds = array<i64: 1, 4, 4096>}]} {
    %c0 = arith.constant 0 : index
    %c0_0 = arith.constant 0 : index
    %0 = vector.load %arg2[%c0, %c0_0] : memref<4x36xbf16, #tpu.memory_space<vmem>>, vector<4x36xbf16>
    %c0_1 = arith.constant 0 : index
    %c0_2 = arith.constant 0 : index
    %c0_3 = arith.constant 0 : index
    %1 = vector.load %arg1[%c0_1, %c0_2, %c0_3] : memref<1x36x4096xbf16, #tpu.memory_space<vmem>>, vector<1x36x4096xbf16>
    %2 = vector.shape_cast %1 : vector<1x36x4096xbf16> to vector<36x4096xbf16>
    %cst = arith.constant dense<0.000000e+00> : vector<4x4096xf32>
    %3 = tpu.matmul %0, %2, %cst {dimension_numbers = #tpu.dot_dimension_numbers<[1], [0], [0], [1], [0, 0, 1, 1], [], []>} : vector<4x36xbf16>, vector<36x4096xbf16>, vector<4x4096xf32> -> vector<4x4096xf32>
    %c0_4 = arith.constant 0 : index
    %c0_5 = arith.constant 0 : index
    %4 = vector.load %arg3[%c0_4, %c0_5] : memref<4x1xf32, #tpu.memory_space<vmem>>, vector<4x1xf32>
    %5 = vector.broadcast %4 : vector<4x1xf32> to vector<4x4096xf32>
    %6 = arith.addf %3, %5 : vector<4x4096xf32>
    %cst_6 = arith.constant 0.000000e+00 : f32
    %7 = vector.broadcast %cst_6 : f32 to vector<4x4096xf32>
    %8 = arith.maximumf %6, %7 : vector<4x4096xf32>
    %c0_7 = arith.constant 0 : index
    %c0_8 = arith.constant 0 : index
    %c0_9 = arith.constant 0 : index
    %9 = vector.load %arg4[%c0_7, %c0_8, %c0_9] : memref<1x4x4096xf32, #tpu.memory_space<vmem>>, vector<1x4x4096xf32>
    %10 = vector.shape_cast %9 : vector<1x4x4096xf32> to vector<4x4096xf32>
    %11 = vector.shape_cast %8 : vector<4x4096xf32> to vector<1x4x4096xf32>
    tpu.vector_store %arg4[%c0_7, %c0_8, %c0_9], %11 {strides = array<i32>} : memref<1x4x4096xf32, #tpu.memory_space<vmem>>, vector<1x4x4096xf32>,
    return
  }
  func.func @transform_0(%arg0: i32) -> (i32, i32, i32) {
    %c0_i32 = arith.constant 0 : i32
    %c0_i32_0 = arith.constant 0 : i32
    %c0_i32_1 = arith.constant 0 : i32
    return %arg0, %c0_i32, %c0_i32_0 : i32, i32, i32
  }
  func.func @transform_1(%arg0: i32) -> (i32, i32) {
    %c0_i32 = arith.constant 0 : i32
    %c0_i32_0 = arith.constant 0 : i32
    %c0_i32_1 = arith.constant 0 : i32
    return %c0_i32, %c0_i32_0 : i32, i32
  }
  func.func @transform_2(%arg0: i32) -> (i32, i32) {
    %c0_i32 = arith.constant 0 : i32
    %c0_i32_0 = arith.constant 0 : i32
    %c0_i32_1 = arith.constant 0 : i32
    return %c0_i32, %c0_i32_0 : i32, i32
  }
  func.func @transform_3(%arg0: i32) -> (i32, i32, i32) {
    %c0_i32 = arith.constant 0 : i32
    %c0_i32_0 = arith.constant 0 : i32
    %c0_i32_1 = arith.constant 0 : i32
    return %arg0, %c0_i32, %c0_i32_0 : i32, i32, i32
  }
}

module attributes {stable_mosaic.version = 11 : i64} {
  func.func @_conv_mm_kernel(%arg0: i32, %arg1: memref<1x36x4096xbf16, #tpu.memory_space<vmem>>, %arg2: memref<3x36xbf16, #tpu.memory_space<vmem>>, %arg3: memref<3x1xf32, #tpu.memory_space<vmem>>, %arg4: memref<1x3x4096xf32, #tpu.memory_space<vmem>>) attributes {dimension_semantics = [#tpu.dimension_semantics<parallel>], iteration_bounds = array<i64: 2>, scalar_prefetch = 0 : i64, scratch_operands = 0 : i64, tpu.core_type = #tpu.core_type<tc>, window_params = [{transform_indices = @transform_0, window_bounds = array<i64: 1, 36, 4096>}, {pipeline_mode = #tpu.pipeline_mode<synchronous>, transform_indices = @transform_1, window_bounds = array<i64: 3, 36>}, {pipeline_mode = #tpu.pipeline_mode<synchronous>, transform_indices = @transform_2, window_bounds = array<i64: 3, 1>}, {transform_indices = @transform_3, window_bounds = array<i64: 1, 3, 4096>}]} {
    %c0 = arith.constant 0 : index
    %c0_0 = arith.constant 0 : index
    %0 = vector.load %arg2[%c0, %c0_0] : memref<3x36xbf16, #tpu.memory_space<vmem>>, vector<3x36xbf16>
    %c0_1 = arith.constant 0 : index
    %c0_2 = arith.constant 0 : index
    %c0_3 = arith.constant 0 : index
    %1 = vector.load %arg1[%c0_1, %c0_2, %c0_3] : memref<1x36x4096xbf16, #tpu.memory_space<vmem>>, vector<1x36x4096xbf16>
    %2 = vector.shape_cast %1 : vector<1x36x4096xbf16> to vector<36x4096xbf16>
    %cst = arith.constant dense<0.000000e+00> : vector<3x4096xf32>
    %3 = tpu.matmul %0, %2, %cst {dimension_numbers = #tpu.dot_dimension_numbers<[1], [0], [0], [1], [0, 0, 1, 1], [], []>} : vector<3x36xbf16>, vector<36x4096xbf16>, vector<3x4096xf32> -> vector<3x4096xf32>
    %c0_4 = arith.constant 0 : index
    %c0_5 = arith.constant 0 : index
    %4 = vector.load %arg3[%c0_4, %c0_5] : memref<3x1xf32, #tpu.memory_space<vmem>>, vector<3x1xf32>
    %5 = vector.broadcast %4 : vector<3x1xf32> to vector<3x4096xf32>
    %6 = arith.addf %3, %5 : vector<3x4096xf32>
    %c0_6 = arith.constant 0 : index
    %c0_7 = arith.constant 0 : index
    %c0_8 = arith.constant 0 : index
    %7 = vector.load %arg4[%c0_6, %c0_7, %c0_8] : memref<1x3x4096xf32, #tpu.memory_space<vmem>>, vector<1x3x4096xf32>
    %8 = vector.shape_cast %7 : vector<1x3x4096xf32> to vector<3x4096xf32>
    %9 = vector.shape_cast %6 : vector<3x4096xf32> to vector<1x3x4096xf32>
    tpu.vector_store %arg4[%c0_6, %c0_7, %c0_8], %9 {strides = array<i32>} : memref<1x3x4096xf32, #tpu.memory_space<vmem>>, vector<1x3x4096xf32>,
    return
  }
  func.func @transform_0(%arg0: i32) -> (i32, i32, i32) {
    %c0_i32 = arith.constant 0 : i32
    %c0_i32_0 = arith.constant 0 : i32
    %c0_i32_1 = arith.constant 0 : i32
    return %arg0, %c0_i32, %c0_i32_0 : i32, i32, i32
  }
  func.func @transform_1(%arg0: i32) -> (i32, i32) {
    %c0_i32 = arith.constant 0 : i32
    %c0_i32_0 = arith.constant 0 : i32
    %c0_i32_1 = arith.constant 0 : i32
    return %c0_i32, %c0_i32_0 : i32, i32
  }
  func.func @transform_2(%arg0: i32) -> (i32, i32) {
    %c0_i32 = arith.constant 0 : i32
    %c0_i32_0 = arith.constant 0 : i32
    %c0_i32_1 = arith.constant 0 : i32
    return %c0_i32, %c0_i32_0 : i32, i32
  }
  func.func @transform_3(%arg0: i32) -> (i32, i32, i32) {
    %c0_i32 = arith.constant 0 : i32
    %c0_i32_0 = arith.constant 0 : i32
    %c0_i32_1 = arith.constant 0 : i32
    return %arg0, %c0_i32, %c0_i32_0 : i32, i32, i32
  }
}

</mosaic_0001>

<bundles_post_ra>
// kernel: decoder_forward.9
= control target key start
LH: loop header
LB: loop body
LE: loop exit
PB: predicated region body
PF: predicated region fallthrough
CT: control target
= control target key end

     0   :  { %s625_s12 = smov 0   ;;  %s681_s0 = inlined_call_operand.vmem [shape: bf16[2,288,64], index: 0, kind: input, shape index: {}]   ;;  %s682_s1 = inlined_call_operand.vmem [shape: bf16[16,288], index: 1, kind: input, shape index: {}]   ;;  %s683_s2 = inlined_call_operand.vmem [shape: f32[16,1], index: 2, kind: input, shape index: {}]   ;;  %s684_s3 = inlined_call_operand.vmem [shape: f32[2,16,64], index: 3, kind: output, shape index: {}]  }
   0x1 LB: > { %s493_s13 = sadd.s32 4294967295, %s600_s12   ;;  %p497_p0 = scmp.ge.s32.totalorder %s600_s12, 1  ;;  %s600_s12 = sphi %s625_s12, %s13_s12  }
   0x2   : > { %p137_p1 = scmp.lt.s32.totalorder %s600_s12, 3 }
   0x4   : > { %p138_p2 = pnand %p497_p0, %p137_p1 }
   0x5   : > { %p161_p3 = scmp.lt.s32.totalorder (!%p138_p2), %s493_s13, 1 }
   0x6   : > { %141 = sbr.rel (%p138_p2) target bundleno = 256 (0x100), region = 32 }
   0xb   : > { %v602_v0 = vmov 0.0   ;;  %v592_v1 = vld [vmem:[%s682_s1 + $0x4] ss:$12 sps:$4 sm:$0xff]   ;;  %s686_s13 = smov (!%p161_p3, %s493_s13), 1  ;;  %vm603_vm0 = vmmov 0   ;;  %v604_v2 = vmov 0  }
   0xc   : > { %551 = vmatprep.subr.bf16.mxu1 %v602_v0  ;;  %555 = vmatprep.mubr.msk.bf16.mxu1 %vm603_vm0, %v602_v0  ;;  %v212_v3 = vld [vmem:[%s683_s2] sm:$0xff]  ;;  %s559_s18 = smul.u32 144, %s686_s13  ;;  %v213_v4 = vld [vmem:[%s683_s2 + $0x8] sm:$0xff]  ;;  %vm347_vm1 = vcmask 261120   ;;  %s525_s28 = sshll.u32 %s686_s13, 4  ;;  %vm435_vm2 = vcmask 523264  }
   0xd   : > { %383 = vmatprep.mubr.bf16.mxu0 %v592_v1  ;;  %571 = vset.pattern.permute.xlu0 %v604_v2  ;;  %v593_v19 = vld [vmem:[%s682_s1 + $0x8] ss:$12 sps:$4 sm:$0xff]   ;;  %v590_v24 = vld [vmem:[%s682_s1] ss:$12 sps:$4 sm:$0xff]   ;;  %s170_s4 = scalar_lea.vmem %s684_s3, %s525_s28 }
   0xe   : > { %216 = vperm.xlu0 %571, %v212_v3   ;;  %s648_s23 = scalar_lea.vmem %s681_s0, %s559_s18 }
   0xf   : > { %v572_v5 = vld [vmem:[%s648_s23 + $0x78] sm:$0xff]   ;;  %v574_v7 = vld [vmem:[%s648_s23 + $0x70] sm:$0xff]   ;;  %v576_v9 = vld [vmem:[%s648_s23 + $0x68] sm:$0xff]  }
  0x10   : > { %v573_v6 = vld [vmem:[%s648_s23 + $0x38] sm:$0xff]   ;;  %526 = vmatprep.subr.bf16.mxu0 %v572_v5  ;;  %v575_v8 = vld [vmem:[%s648_s23 + $0x30] sm:$0xff]   ;;  %v577_v10 = vld [vmem:[%s648_s23 + $0x28] sm:$0xff]  }
  0x11   : > { %527 = vmatpush3.bf16.msra.mxu0 %v573_v6  ;;  %v578_v11 = vld [vmem:[%s648_s23 + $0x60] sm:$0xff]   ;;  %v580_v13 = vld [vmem:[%s648_s23 + $0x58] sm:$0xff]   ;;  %v586_v14 = vld [vmem:[%s648_s23 + $0x88] sm:$0xff]  }
  0x12   : > { %221 = vperm.xlu0 %571, %v213_v4   ;;  %528 = vmatprep.subr.bf16.mxu0 %v574_v7  ;;  %v579_v12 = vld [vmem:[%s648_s23 + $0x20] sm:$0xff]   ;;  %v581_v15 = vld [vmem:[%s648_s23 + $0x18] sm:$0xff]   ;;  %v582_v16 = vld [vmem:[%s648_s23 + $0x50] sm:$0xff]  }
  0x13   : > { %552 = vmatpush3.bf16.msra.mxu1 %v586_v14  ;;  %v589_v17 = vld [vmem:[%s648_s23 + $0x80] sm:$0xff]   ;;  %v583_v18 = vld [vmem:[%s648_s23 + $0x10] sm:$0xff]   ;;  %v584_v20 = vld [vmem:[%s648_s23 + $0x48] sm:$0xff]  }
  0x14   : > { %553 = vmatprep.subr.bf16.mxu1 %v602_v0  ;;  %v585_v21 = vld [vmem:[%s648_s23 + $0x8] sm:$0xff]   ;;  %v587_v22 = vld [vmem:[%s648_s23 + $0x40] sm:$0xff]  }
  0x15   : > { %529 = vmatpush3.bf16.msra.mxu0 %v575_v8  ;;  %v588_v23 = vld [vmem:[%s648_s23] sm:$0xff]  }
  0x16   : > { %530 = vmatprep.subr.bf16.mxu0 %v576_v9 }
  0x17   : > { %554 = vmatpush3.bf16.msra.mxu1 %v589_v17 }
  0x19   : > { %531 = vmatpush3.bf16.msra.mxu0 %v577_v10 }
  0x1a   : > { %532 = vmatprep.subr.bf16.mxu0 %v578_v11  ;;  %556 = vmatmul.mubr.msk.bf16.vlgmr.msra.gmra.mxu1 %vm347_vm1, %v593_v19 }
  0x1d   : > { %533 = vmatpush3.bf16.msra.mxu0 %v579_v12 }
  0x1e   : > { %534 = vmatprep.subr.bf16.mxu0 %v580_v13 }
  0x21   : > { %535 = vmatpush3.bf16.msra.mxu0 %v581_v15 }
  0x22   : > { %536 = vmatprep.subr.bf16.mxu0 %v582_v16 }
  0x25   : > { %537 = vmatpush3.bf16.msra.mxu0 %v583_v18 }
  0x26   : > { %538 = vmatprep.subr.bf16.mxu0 %v584_v20 }
  0x29   : > { %539 = vmatpush3.bf16.msra.mxu0 %v585_v21 }
  0x2a   : > { %540 = vmatprep.subr.bf16.mxu0 %v587_v22 }
  0x2d   : > { %541 = vmatpush3.bf16.msra.mxu0 %v588_v23 }
  0x30   : > { %384 = vmatmul.mubr.bf16.vlgmr.msra.gmra.mxu0 %v590_v24 }
  0x89   : > { %v217_v30 = vpop.permute.xlu0 %216 }
  0x8d   : > { %v222_v38 = vpop.permute.xlu0 %221 }
  0xda   : > { %v426_v25 = vpop.f32.mrf.mxu1 }
  0xdc   : > { %v557_v26 = vpop.f32.mrf.mxu1 }
  0xde   : > { %v429_v27 = vpop.f32.mrf.mxu1 }
  0xe0   : > { %v558_v28 = vpop.f32.mrf.mxu1 }
  0xf0   : > { %v542_v29 = vpop.f32.mrf.mxu0 }
  0xf2   : > { %v543_v31 = vpop.f32.mrf.mxu0 }
  0xf3   : > { %v544_v32 = vadd.f32 %v543_v31, %v542_v29 }
  0xf4   : > { %v545_v33 = vpop.f32.mrf.mxu0 }
  0xf5   : > { %v386_v34 = vadd.f32 %v544_v32, %v217_v30 }
  0xf6   : > { %v546_v35 = vpop.f32.mrf.mxu0 }
  0xf7   : > { %v427_v36 = vadd.f32 %v426_v25, %v386_v34  ;;  %v547_v37 = vadd.f32 %v546_v35, %v545_v33 }
  0xf9   : > { %v433_v39 = vmax.f32 %v427_v36, 0.0  ;;  %v389_v40 = vadd.f32 %v547_v37, %v222_v38 }
  0xfb   : > { %436 = vst.msk [vmem:[%s170_s4] sm:$0xff] %vm435_vm2, %v433_v39  ;;  %v430_v41 = vadd.f32 %v429_v27, %v389_v40 }
  0xfd   : > { %v434_v42 = vmax.f32 %v430_v41, 0.0 }
  0xff   : > { %437 = vst.msk [vmem:[%s170_s4 + $0x8] sm:$0xff] %vm435_vm2, %v434_v42 }
 0x100 PF: > { %s13_s12 = sadd.s32 1, %s600_s12  }
 0x101   : > { %p10_p4 = scmp.ge.s32.totalorder %s13_s12, 4  }
 0x103   :  { %12 = sbr.rel (!%p10_p4) target bundleno = 1 (0x1), region = 62 }

// kernel: decoder_forward.10
= control target key start
LH: loop header
LB: loop body
LE: loop exit
PB: predicated region body
PF: predicated region fallthrough
CT: control target
= control target key end

     0   :  { %10 = vsyncpa [#allocation3], 0  ;;  %s757_s18 = smov 0   ;;  %s931_s0 = inlined_call_operand.vmem [shape: f32[2], index: 0, kind: input, shape index: {}]   ;;  %s932_s1 = inlined_call_operand.vmem [shape: bf16[2,144,256], index: 1, kind: input, shape index: {}]   ;;  %s933_s2 = inlined_call_operand.vmem [shape: bf16[2,144,256], index: 2, kind: input, shape index: {}]   ;;  %s934_s3 = inlined_call_operand.vmem [shape: bf16[16,144], index: 3, kind: input, shape index: {}]   ;;  %s935_s4 = inlined_call_operand.vmem [shape: f32[16,1], index: 4, kind: input, shape index: {}]   ;;  %s936_s5 = inlined_call_operand.vmem [shape: f32[2,16,256], index: 5, kind: output, shape index: {}]  }
   0x1 LB: > { %s763_s19 = sadd.s32 4294967295, %s723_s18   ;;  %p657_p0 = scmp.ge.s32.totalorder %s723_s18, 1  ;;  %s723_s18 = sphi %s757_s18, %s16_s18  }
   0x2   : > { %p162_p1 = scmp.lt.s32.totalorder %s723_s18, 3  ;;  %s175_s22 = sshll.u32 %s931_s0, 4  ;;  %s176_s22 = int_to_ptr.vmem [resolvable:$true] %s175_s22 }
   0x3   : > { %p682_p3 = scmp.eq.s32.totalorder %s763_s19, 0  ;;  %s698_s24 = scalar_lea.vmem %s176_s22, 16 }
   0x4   : > { %p770_p2 = pnand %p657_p0, %p162_p1  ;;  %p699_p6 = scmp.ne.s32.totalorder %s176_s22, %s698_s24 }
   0x5   : > { %p706_p10 = scmp.lt.s32.totalorder %s176_s22, %s176_s22  ;;  %p707_p11 = scmp.lt.s32.totalorder %s698_s24, %s698_s24 }
   0x6   : > { %p678_p4 = pneg %p770_p2 }
   0x7   : > { %p708_p12 = por %p707_p11, %p706_p10 }
   0x8   : > { %p679_p5 = pnand %p682_p3, %p678_p4 }
   0xa   : > { %p700_p7 = pneg %p679_p5 }
   0xc   : > { %p701_p8 = pnand %p700_p7, %p699_p6 }
   0xe   : > { %p702_p9 = pneg %p701_p8 }
  0x10   : > { %p709_p13 = pnand %p708_p12, %p702_p9 }
  0x12   : > { %712 = shalt.err (!%p709_p13)
}
  0x13   : > { %s725_s25 = smov [#allocation2]   ;;  %210 = sbr.rel (%p770_p2) target bundleno = 296 (0x128), region = 40 }
  0x14   : > { %681 = dma.vmem_to_smem (!%p679_p5), %s176_s22, 16, %s725_s25, [#allocation3]  }
  0x18   : > { %718 = dma.done.wait (%p682_p3), [#allocation3], 16  }
  0x19   : > { %720 = vsyncadd (%p682_p3), [#allocation3], 4294967280 }
  0x1a   : > { %216 = sfence }
  0x1b   : > { %p244_p0 = scmp.lt.s32.totalorder %s763_s19, 1  ;;  %s260_s26 = sld [smem:[#allocation2]]  ;;  %vm521_vm0 = vcmask 130048   ;;  %v697_v0 = vld [vmem:[%s934_s3 + $0x4] ss:$8 sps:$4 sm:$0xff]   ;;  %v726_v2 = vmov 0  }
  0x1c   : > { %s666_s27 = sld [smem:[#allocation2 + $0x1]]  ;;  %v500_v1 = vld [vmem:[%s935_s4] sm:$0xff]  ;;  %669 = vmatprep.mubr.msk.bf16.mxu0 %vm521_vm0, %v697_v0  ;;  %694 = vset.pattern.permute.xlu0 %v726_v2  ;;  %v501_v3 = vld [vmem:[%s935_s4 + $0x8] sm:$0xff] }
  0x1d   : > { %s939_s19 = smov (!%p244_p0, %s763_s19), 1  ;;  %504 = vperm.xlu0 %694, %v500_v1  }
  0x1e   : > { %s673_s7 = smul.u32 144, %s939_s19  ;;  %s672_s20 = sshll.u32 %s939_s19, 5 }
  0x1f   : > { %s258_s23 = scalar_lea.vmem %s936_s5, %s672_s20 }
  0x20   : > { %s802_s12 = scalar_lea.vmem %s932_s1, %s673_s7  ;;  %s807_s15 = scalar_lea.vmem %s933_s2, %s673_s7 }
  0x21   : > { %v809_v4 = vstv %s260_s26  ;;  %v276_v5 = vld [vmem:[%s802_s12 + $0x70] sm:$0xff]  ;;  %v277_v6 = vld [vmem:[%s802_s12 + $0x78] sm:$0xff]  ;;  %509 = vperm.xlu0 %694, %v501_v3   ;;  %v274_v18 = vld [vmem:[%s802_s12 + $0x60] sm:$0xff] }
  0x22   : > { %v367_v7 = vld [vmem:[%s807_s15 + $0x70] sm:$0xff]  ;;  %v814_v8 = vstv %s666_s27  ;;  %v309_v9 = vunpack.c.h.bf16 %v276_v5  ;;  %v311_v10 = vunpack.c.h.bf16 %v277_v6  ;;  %v368_v11 = vld [vmem:[%s807_s15 + $0x78] sm:$0xff]  ;;  %v308_v13 = vunpack.c.l.bf16 %v276_v5  ;;  %v275_v19 = vld [vmem:[%s802_s12 + $0x68] sm:$0xff] }
  0x23   : > { %v400_v12 = vunpack.c.h.bf16 %v367_v7  ;;  %v402_v14 = vunpack.c.h.bf16 %v368_v11  ;;  %v310_v15 = vunpack.c.l.bf16 %v277_v6  ;;  %v399_v16 = vunpack.c.l.bf16 %v367_v7  ;;  %v365_v20 = vld [vmem:[%s807_s15 + $0x60] sm:$0xff]  ;;  %v366_v25 = vld [vmem:[%s807_s15 + $0x68] sm:$0xff]  ;;  %v272_v42 = vld [vmem:[%s802_s12 + $0x50] sm:$0xff] }
  0x24   : > { %v401_v17 = vunpack.c.l.bf16 %v368_v11  ;;  %v346_v21 = vmul.f32 %v809_v4, %v309_v9  ;;  %v348_v22 = vmul.f32 %v809_v4, %v311_v10  ;;  %v345_v24 = vmul.f32 %v809_v4, %v308_v13  ;;  %v273_v43 = vld [vmem:[%s802_s12 + $0x58] sm:$0xff]  ;;  %v363_v48 = vld [vmem:[%s807_s15 + $0x50] sm:$0xff]  ;;  %v270_v2 = vld [vmem:[%s802_s12 + $0x40] sm:$0xff] }
  0x25   : > { %v437_v23 = vmul.f32 %v814_v8, %v400_v12  ;;  %v439_v26 = vmul.f32 %v814_v8, %v402_v14  ;;  %v347_v27 = vmul.f32 %v809_v4, %v310_v15  ;;  %v436_v28 = vmul.f32 %v814_v8, %v399_v16  ;;  %v364_v49 = vld [vmem:[%s807_s15 + $0x58] sm:$0xff]  ;;  %v271_v9 = vld [vmem:[%s802_s12 + $0x48] sm:$0xff]  ;;  %v361_v14 = vld [vmem:[%s807_s15 + $0x40] sm:$0xff] }
  0x26   : > { %v438_v29 = vmul.f32 %v814_v8, %v401_v17  ;;  %v305_v31 = vunpack.c.h.bf16 %v274_v18  ;;  %v307_v32 = vunpack.c.h.bf16 %v275_v19  ;;  %v396_v33 = vunpack.c.h.bf16 %v365_v20  ;;  %v362_v15 = vld [vmem:[%s807_s15 + $0x48] sm:$0xff] }
  0x27   : > { %v473_v30 = vadd.f32 %v437_v23, %v346_v21  ;;  %v475_v34 = vadd.f32 %v439_v26, %v348_v22  ;;  %v472_v35 = vadd.f32 %v436_v28, %v345_v24  ;;  %v398_v37 = vunpack.c.h.bf16 %v366_v25  ;;  %v268_v28 = vld [vmem:[%s802_s12 + $0x30] sm:$0xff] }
  0x28   : > { %v474_v36 = vadd.f32 %v438_v29, %v347_v27  ;;  %v342_v38 = vmul.f32 %v809_v4, %v305_v31  ;;  %v344_v39 = vmul.f32 %v809_v4, %v307_v32  ;;  %v433_v40 = vmul.f32 %v814_v8, %v396_v33 }
  0x29   : > { %v304_v41 = vunpack.c.l.bf16 %v274_v18  ;;  %v495_v44 = vpack.c.bf16 %v475_v34, %v473_v30  ;;  %v435_v46 = vmul.f32 %v814_v8, %v398_v37  ;;  %v306_v47 = vunpack.c.l.bf16 %v275_v19  ;;  %v269_v37 = vld [vmem:[%s802_s12 + $0x38] sm:$0xff] }
  0x2a   : > { %v494_v45 = vpack.c.bf16 %v474_v36, %v472_v35  ;;  %v469_v50 = vadd.f32 %v433_v40, %v342_v38  ;;  %v395_v52 = vunpack.c.l.bf16 %v365_v20  ;;  %v397_v53 = vunpack.c.l.bf16 %v366_v25  ;;  %v359_v38 = vld [vmem:[%s807_s15 + $0x30] sm:$0xff] }
  0x2b   : > { %v341_v51 = vmul.f32 %v809_v4, %v304_v41  ;;  %525 = vmatprep.subr.bf16.mxu0 %v495_v44  ;;  %v471_v54 = vadd.f32 %v435_v46, %v344_v39  ;;  %v343_v55 = vmul.f32 %v809_v4, %v306_v47  ;;  %v301_v56 = vunpack.c.h.bf16 %v272_v42 }
  0x2c   : > { %v303_v57 = vunpack.c.h.bf16 %v273_v43  ;;  %526 = vmatpush1.bf16.msra.mxu0 %v494_v45  ;;  %v432_v58 = vmul.f32 %v814_v8, %v395_v52  ;;  %v434_v59 = vmul.f32 %v814_v8, %v397_v53  ;;  %v392_v60 = vunpack.c.h.bf16 %v363_v48 }
  0x2d   : > { %v394_v61 = vunpack.c.h.bf16 %v364_v49  ;;  %v493_v62 = vpack.c.bf16 %v471_v54, %v469_v50  ;;  %v338_v63 = vmul.f32 %v809_v4, %v301_v56  ;;  %v300_v1 = vunpack.c.l.bf16 %v272_v42  ;;  %v266_v56 = vld [vmem:[%s802_s12 + $0x20] sm:$0xff] }
  0x2e   : > { %v340_v0 = vmul.f32 %v809_v4, %v303_v57  ;;  %v468_v3 = vadd.f32 %v432_v58, %v341_v51  ;;  %v470_v5 = vadd.f32 %v434_v59, %v343_v55  ;;  %v429_v6 = vmul.f32 %v814_v8, %v392_v60 }
  0x2f   : > { %v431_v7 = vmul.f32 %v814_v8, %v394_v61  ;;  %527 = vmatprep.subr.bf16.mxu0 %v493_v62  ;;  %v302_v10 = vunpack.c.l.bf16 %v273_v43  ;;  %v337_v11 = vmul.f32 %v809_v4, %v300_v1  ;;  %v391_v12 = vunpack.c.l.bf16 %v363_v48  ;;  %v360_v43 = vld [vmem:[%s807_s15 + $0x38] sm:$0xff]  ;;  %v267_v61 = vld [vmem:[%s802_s12 + $0x28] sm:$0xff] }
  0x30   : > { %v393_v13 = vunpack.c.l.bf16 %v364_v49  ;;  %v492_v16 = vpack.c.bf16 %v470_v5, %v468_v3  ;;  %v465_v17 = vadd.f32 %v429_v6, %v338_v63  ;;  %v297_v19 = vunpack.c.h.bf16 %v270_v2  ;;  %v358_v3 = vld [vmem:[%s807_s15 + $0x28] sm:$0xff] }
  0x31   : > { %v467_v18 = vadd.f32 %v431_v7, %v340_v0  ;;  %v339_v20 = vmul.f32 %v809_v4, %v302_v10  ;;  %v428_v21 = vmul.f32 %v814_v8, %v391_v12  ;;  %v299_v23 = vunpack.c.h.bf16 %v271_v9 }
  0x32   : > { %v430_v22 = vmul.f32 %v814_v8, %v393_v13  ;;  %528 = vmatpush1.bf16.msra.mxu0 %v492_v16  ;;  %v334_v25 = vmul.f32 %v809_v4, %v297_v19  ;;  %v388_v26 = vunpack.c.h.bf16 %v361_v14  ;;  %v390_v27 = vunpack.c.h.bf16 %v362_v15 }
  0x33   : > { %v491_v24 = vpack.c.bf16 %v467_v18, %v465_v17  ;;  %v464_v29 = vadd.f32 %v428_v21, %v337_v11  ;;  %v336_v31 = vmul.f32 %v809_v4, %v299_v23  ;;  %v296_v32 = vunpack.c.l.bf16 %v270_v2  ;;  %v357_v2 = vld [vmem:[%s807_s15 + $0x20] sm:$0xff]  ;;  %v264_v18 = vld [vmem:[%s802_s12 + $0x10] sm:$0xff]  ;;  %v265_v23 = vld [vmem:[%s802_s12 + $0x18] sm:$0xff] }
  0x34   : > { %v466_v30 = vadd.f32 %v430_v22, %v339_v20  ;;  %v425_v33 = vmul.f32 %v814_v8, %v388_v26  ;;  %v427_v34 = vmul.f32 %v814_v8, %v390_v27  ;;  %v298_v35 = vunpack.c.l.bf16 %v271_v9 }
  0x35   : > { %529 = vmatprep.subr.bf16.mxu0 %v491_v24  ;;  %v387_v36 = vunpack.c.l.bf16 %v361_v14  ;;  %v333_v40 = vmul.f32 %v809_v4, %v296_v32  ;;  %v389_v41 = vunpack.c.l.bf16 %v362_v15  ;;  %v293_v42 = vunpack.c.h.bf16 %v268_v28 }
  0x36   : > { %v490_v39 = vpack.c.bf16 %v466_v30, %v464_v29  ;;  %v461_v44 = vadd.f32 %v425_v33, %v334_v25  ;;  %v463_v45 = vadd.f32 %v427_v34, %v336_v31  ;;  %v335_v46 = vmul.f32 %v809_v4, %v298_v35  ;;  %v356_v33 = vld [vmem:[%s807_s15 + $0x18] sm:$0xff] }
  0x37   : > { %v424_v47 = vmul.f32 %v814_v8, %v387_v36  ;;  %v426_v48 = vmul.f32 %v814_v8, %v389_v41  ;;  %v295_v49 = vunpack.c.h.bf16 %v269_v37  ;;  %v330_v50 = vmul.f32 %v809_v4, %v293_v42 }
  0x38   : > { %530 = vmatpush1.bf16.msra.mxu0 %v490_v39  ;;  %v384_v51 = vunpack.c.h.bf16 %v359_v38  ;;  %v489_v52 = vpack.c.bf16 %v463_v45, %v461_v44  ;;  %v386_v54 = vunpack.c.h.bf16 %v360_v43  ;;  %v292_v55 = vunpack.c.l.bf16 %v268_v28  ;;  %v355_v28 = vld [vmem:[%s807_s15 + $0x10] sm:$0xff] }
  0x39   : > { %v460_v53 = vadd.f32 %v424_v47, %v333_v40  ;;  %v462_v57 = vadd.f32 %v426_v48, %v335_v46  ;;  %v332_v58 = vmul.f32 %v809_v4, %v295_v49  ;;  %v294_v60 = vunpack.c.l.bf16 %v269_v37  ;;  %v262_v46 = vld [vmem:[%s802_s12] sm:$0xff] }
  0x3a   : > { %v421_v59 = vmul.f32 %v814_v8, %v384_v51  ;;  %531 = vmatprep.subr.bf16.mxu0 %v489_v52  ;;  %v423_v62 = vmul.f32 %v814_v8, %v386_v54  ;;  %v329_v63 = vmul.f32 %v809_v4, %v292_v55  ;;  %v383_v0 = vunpack.c.l.bf16 %v359_v38  ;;  %v263_v51 = vld [vmem:[%s802_s12 + $0x8] sm:$0xff] }
  0x3b   : > { %v385_v1 = vunpack.c.l.bf16 %v360_v43  ;;  %v488_v5 = vpack.c.bf16 %v462_v57, %v460_v53  ;;  %v331_v7 = vmul.f32 %v809_v4, %v294_v60  ;;  %v289_v9 = vunpack.c.h.bf16 %v266_v56  ;;  %v354_v57 = vld [vmem:[%s807_s15 + $0x8] sm:$0xff] }
  0x3c   : > { %v457_v6 = vadd.f32 %v421_v59, %v330_v50  ;;  %v459_v10 = vadd.f32 %v423_v62, %v332_v58  ;;  %v420_v11 = vmul.f32 %v814_v8, %v383_v0  ;;  %v291_v13 = vunpack.c.h.bf16 %v267_v61 }
  0x3d   : > { %v422_v12 = vmul.f32 %v814_v8, %v385_v1  ;;  %532 = vmatpush1.bf16.msra.mxu0 %v488_v5  ;;  %v326_v14 = vmul.f32 %v809_v4, %v289_v9  ;;  %v380_v15 = vunpack.c.h.bf16 %v357_v2  ;;  %v382_v16 = vunpack.c.h.bf16 %v358_v3 }
  0x3e   : > { %v288_v17 = vunpack.c.l.bf16 %v266_v56  ;;  %v487_v19 = vpack.c.bf16 %v459_v10, %v457_v6  ;;  %v456_v20 = vadd.f32 %v420_v11, %v329_v63  ;;  %v328_v22 = vmul.f32 %v809_v4, %v291_v13  ;;  %v353_v56 = vld [vmem:[%s807_s15] sm:$0xff]  ;;  %v279_v13 = vld [vmem:[%s802_s12 + $0x88] sm:$0xff] }
  0x3f   : > { %v458_v21 = vadd.f32 %v422_v12, %v331_v7  ;;  %v417_v24 = vmul.f32 %v814_v8, %v380_v15  ;;  %v419_v25 = vmul.f32 %v814_v8, %v382_v16  ;;  %v290_v26 = vunpack.c.l.bf16 %v267_v61  ;;  %v278_v7 = vld [vmem:[%s802_s12 + $0x80] sm:$0xff] }
  0x40   : > { %v325_v27 = vmul.f32 %v809_v4, %v288_v17  ;;  %533 = vmatprep.subr.bf16.mxu0 %v487_v19  ;;  %v379_v30 = vunpack.c.l.bf16 %v357_v2  ;;  %v381_v31 = vunpack.c.l.bf16 %v358_v3  ;;  %v285_v32 = vunpack.c.h.bf16 %v264_v18 }
  0x41   : > { %v486_v29 = vpack.c.bf16 %v458_v21, %v456_v20  ;;  %v453_v34 = vadd.f32 %v417_v24, %v326_v14  ;;  %v455_v35 = vadd.f32 %v419_v25, %v328_v22  ;;  %v327_v36 = vmul.f32 %v809_v4, %v290_v26 }
  0x42   : > { %v287_v37 = vunpack.c.h.bf16 %v265_v23  ;;  %v416_v38 = vmul.f32 %v814_v8, %v379_v30  ;;  %v418_v39 = vmul.f32 %v814_v8, %v381_v31  ;;  %v322_v40 = vmul.f32 %v809_v4, %v285_v32 }
  0x43   : > { %534 = vmatpush1.bf16.msra.mxu0 %v486_v29  ;;  %v376_v41 = vunpack.c.h.bf16 %v355_v28  ;;  %v485_v42 = vpack.c.bf16 %v455_v35, %v453_v34  ;;  %v378_v44 = vunpack.c.h.bf16 %v356_v33  ;;  %v284_v45 = vunpack.c.l.bf16 %v264_v18  ;;  %v369_v18 = vld [vmem:[%s807_s15 + $0x80] sm:$0xff] }
  0x44   : > { %v324_v43 = vmul.f32 %v809_v4, %v287_v37  ;;  %v452_v47 = vadd.f32 %v416_v38, %v325_v27  ;;  %v454_v48 = vadd.f32 %v418_v39, %v327_v36  ;;  %v286_v50 = vunpack.c.l.bf16 %v265_v23  ;;  %v370_v23 = vld [vmem:[%s807_s15 + $0x88] sm:$0xff] }
  0x45   : > { %v413_v49 = vmul.f32 %v814_v8, %v376_v41  ;;  %535 = vmatprep.subr.bf16.mxu0 %v485_v42  ;;  %v415_v52 = vmul.f32 %v814_v8, %v378_v44  ;;  %v321_v53 = vmul.f32 %v809_v4, %v284_v45  ;;  %v375_v54 = vunpack.c.l.bf16 %v355_v28 }
  0x46   : > { %v377_v55 = vunpack.c.l.bf16 %v356_v33  ;;  %v484_v58 = vpack.c.bf16 %v454_v48, %v452_v47  ;;  %v323_v60 = vmul.f32 %v809_v4, %v286_v50  ;;  %v281_v61 = vunpack.c.h.bf16 %v262_v46 }
  0x47   : > { %v449_v59 = vadd.f32 %v413_v49, %v322_v40  ;;  %v451_v62 = vadd.f32 %v415_v52, %v324_v43  ;;  %v412_v63 = vmul.f32 %v814_v8, %v375_v54  ;;  %v283_v1 = vunpack.c.h.bf16 %v263_v51  ;;  %v695_v54 = vld [vmem:[%s934_s3] ss:$8 sps:$4 sm:$0xff]  }
  0x48   : > { %v414_v0 = vmul.f32 %v814_v8, %v377_v55  ;;  %536 = vmatpush1.bf16.msra.mxu0 %v484_v58  ;;  %v318_v2 = vmul.f32 %v809_v4, %v281_v61  ;;  %v372_v3 = vunpack.c.h.bf16 %v353_v56  ;;  %v374_v5 = vunpack.c.h.bf16 %v354_v57 }
  0x49   : > { %v280_v6 = vunpack.c.l.bf16 %v262_v46  ;;  %v483_v9 = vpack.c.bf16 %v451_v62, %v449_v59  ;;  %v448_v10 = vadd.f32 %v412_v63, %v321_v53  ;;  %v320_v12 = vmul.f32 %v809_v4, %v283_v1 }
  0x4a   : > { %v450_v11 = vadd.f32 %v414_v0, %v323_v60  ;;  %v409_v14 = vmul.f32 %v814_v8, %v372_v3  ;;  %v411_v15 = vmul.f32 %v814_v8, %v374_v5  ;;  %v282_v16 = vunpack.c.l.bf16 %v263_v51 }
  0x4b   : > { %v317_v17 = vmul.f32 %v809_v4, %v280_v6  ;;  %537 = vmatprep.subr.bf16.mxu0 %v483_v9  ;;  %v371_v20 = vunpack.c.l.bf16 %v353_v56  ;;  %v373_v21 = vunpack.c.l.bf16 %v354_v57  ;;  %v313_v22 = vunpack.c.h.bf16 %v278_v7 }
  0x4c   : > { %v482_v19 = vpack.c.bf16 %v450_v11, %v448_v10  ;;  %v445_v24 = vadd.f32 %v409_v14, %v318_v2  ;;  %v447_v25 = vadd.f32 %v411_v15, %v320_v12  ;;  %v319_v26 = vmul.f32 %v809_v4, %v282_v16 }
  0x4d   : > { %v315_v27 = vunpack.c.h.bf16 %v279_v13  ;;  %v408_v28 = vmul.f32 %v814_v8, %v371_v20  ;;  %v410_v29 = vmul.f32 %v814_v8, %v373_v21  ;;  %v350_v30 = vmul.f32 %v809_v4, %v313_v22 }
  0x4e   : > { %538 = vmatpush1.bf16.msra.mxu0 %v482_v19  ;;  %v404_v31 = vunpack.c.h.bf16 %v369_v18  ;;  %v481_v32 = vpack.c.bf16 %v447_v25, %v445_v24  ;;  %v406_v34 = vunpack.c.h.bf16 %v370_v23  ;;  %v312_v35 = vunpack.c.l.bf16 %v278_v7 }
  0x4f   : > { %v352_v33 = vmul.f32 %v809_v4, %v315_v27  ;;  %v444_v36 = vadd.f32 %v408_v28, %v317_v17  ;;  %v446_v37 = vadd.f32 %v410_v29, %v319_v26  ;;  %v314_v39 = vunpack.c.l.bf16 %v279_v13 }
  0x50   : > { %v441_v38 = vmul.f32 %v814_v8, %v404_v31  ;;  %539 = vmatprep.subr.bf16.mxu0 %v481_v32  ;;  %v443_v40 = vmul.f32 %v814_v8, %v406_v34  ;;  %v349_v41 = vmul.f32 %v809_v4, %v312_v35  ;;  %v403_v42 = vunpack.c.l.bf16 %v369_v18 }
  0x51   : > { %v405_v43 = vunpack.c.l.bf16 %v370_v23  ;;  %v480_v44 = vpack.c.bf16 %v446_v37, %v444_v36  ;;  %v351_v46 = vmul.f32 %v809_v4, %v314_v39 }
  0x52   : > { %v477_v45 = vadd.f32 %v441_v38, %v350_v30  ;;  %v479_v47 = vadd.f32 %v443_v40, %v352_v33  ;;  %v440_v48 = vmul.f32 %v814_v8, %v403_v42 }
  0x53   : > { %v442_v49 = vmul.f32 %v814_v8, %v405_v43  ;;  %540 = vmatpush1.bf16.msra.mxu0 %v480_v44 }
  0x54   : > { %v497_v50 = vpack.c.bf16 %v479_v47, %v477_v45  ;;  %v476_v51 = vadd.f32 %v440_v48, %v349_v41 }
  0x55   : > { %v478_v52 = vadd.f32 %v442_v49, %v351_v46 }
  0x56   : > { %555 = vmatprep.subr.bf16.mxu0 %v497_v50 }
  0x57   : > { %v496_v53 = vpack.c.bf16 %v478_v52, %v476_v51 }
  0x59   : > { %556 = vmatpush2.bf16.msra.mxu0 %v496_v53 }
  0x5c   : > { %558 = vmatmul.mubr.bf16.vlgmr.msra.gmra.mxu0 %v695_v54 }
  0x98   : > { %v505_v55 = vpop.permute.xlu0 %504 }
  0x9c   : > { %v510_v59 = vpop.permute.xlu0 %509 }
 0x11c   : > { %v559_v4 = vpop.f32.mrf.mxu0 }
 0x11d   : > { %v560_v56 = vadd.f32 %v559_v4, %v505_v55 }
 0x11e   : > { %v561_v8 = vpop.f32.mrf.mxu0 }
 0x11f   : > { %v568_v57 = vmax.f32 %v560_v56, 0.0  ;;  %v562_v58 = vadd.f32 %v561_v8, %v505_v55 }
 0x120   : > { %v563_v60 = vpop.f32.mrf.mxu0 }
 0x121   : > { %572 = vst [vmem:[%s258_s23] sm:$0xff] %v568_v57  ;;  %v569_v61 = vmax.f32 %v562_v58, 0.0  ;;  %v564_v62 = vadd.f32 %v563_v60, %v510_v59 }
 0x122   : > { %v565_v63 = vpop.f32.mrf.mxu0 }
 0x123   : > { %573 = vst [vmem:[%s258_s23 + $0x8] sm:$0xff] %v569_v61  ;;  %v570_v0 = vmax.f32 %v564_v62, 0.0  ;;  %v566_v1 = vadd.f32 %v565_v63, %v510_v59 }
 0x125   : > { %574 = vst [vmem:[%s258_s23 + $0x10] sm:$0xff] %v570_v0  ;;  %v571_v2 = vmax.f32 %v566_v1, 0.0 }
 0x127   : > { %575 = vst [vmem:[%s258_s23 + $0x18] sm:$0xff] %v571_v2 }
 0x128 PF: > { %s16_s18 = sadd.s32 1, %s723_s18  }
 0x129   : > { %p13_p1 = scmp.ge.s32.totalorder %s16_s18, 4  }
 0x12b   :  { %15 = sbr.rel (!%p13_p1) target bundleno = 1 (0x1), region = 78 }
 0x130   :  { %597 = vsyncpa [#allocation3], 1 }
 0x131   :  { %599 = vsyncpa [#allocation3 + $0x1], 1 }

// kernel: decoder_forward.11
= control target key start
LH: loop header
LB: loop body
LE: loop exit
PB: predicated region body
PF: predicated region fallthrough
CT: control target
= control target key end

     0   :  { %s515_s12 = smov 0   ;;  %s568_s0 = inlined_call_operand.vmem [shape: bf16[2,144,256], index: 0, kind: input, shape index: {}]   ;;  %s569_s1 = inlined_call_operand.vmem [shape: bf16[16,144], index: 1, kind: input, shape index: {}]   ;;  %s570_s2 = inlined_call_operand.vmem [shape: f32[16,1], index: 2, kind: input, shape index: {}]   ;;  %s571_s3 = inlined_call_operand.vmem [shape: f32[2,16,256], index: 3, kind: output, shape index: {}]  }
   0x1 LB: > { %s413_s13 = sadd.s32 4294967295, %s492_s12   ;;  %p417_p0 = scmp.ge.s32.totalorder %s492_s12, 1  ;;  %s492_s12 = sphi %s515_s12, %s13_s12  }
   0x2   : > { %p137_p1 = scmp.lt.s32.totalorder %s492_s12, 3 }
   0x4   : > { %p138_p2 = pnand %p417_p0, %p137_p1 }
   0x5   : > { %p161_p3 = scmp.lt.s32.totalorder (!%p138_p2), %s413_s13, 1 }
   0x6   : > { %141 = sbr.rel (%p138_p2) target bundleno = 256 (0x100), region = 32 }
   0xb   : > { %vm303_vm0 = vcmask 130048   ;;  %v485_v0 = vld [vmem:[%s569_s1 + $0x4] ss:$8 sps:$4 sm:$0xff]   ;;  %s573_s13 = smov (!%p161_p3, %s413_s13), 1  ;;  %v494_v2 = vmov 0  }
   0xc   : > { %v192_v1 = vld [vmem:[%s570_s2] sm:$0xff]  ;;  %455 = vset.pattern.permute.xlu0 %v494_v2  ;;  %441 = vmatprep.mubr.msk.bf16.mxu0 %vm303_vm0, %v485_v0  ;;  %s445_s18 = smul.u32 144, %s573_s13  ;;  %v193_v3 = vld [vmem:[%s570_s2 + $0x8] sm:$0xff]  ;;  %s444_s26 = sshll.u32 %s573_s13, 5 }
   0xd   : > { %196 = vperm.xlu0 %455, %v192_v1   ;;  %v483_v22 = vld [vmem:[%s569_s1] ss:$8 sps:$4 sm:$0xff]   ;;  %s170_s29 = scalar_lea.vmem %s571_s3, %s444_s26 }
   0xe   : > { %s538_s23 = scalar_lea.vmem %s568_s0, %s445_s18 }
   0xf   : > { %v456_v4 = vld [vmem:[%s538_s23 + $0x74] ss:$8 sps:$4 sm:$0xff]   ;;  %v458_v5 = vld [vmem:[%s538_s23 + $0x70] ss:$8 sps:$4 sm:$0xff]   ;;  %v459_v6 = vld [vmem:[%s538_s23 + $0x64] ss:$8 sps:$4 sm:$0xff]  }
  0x10   : > { %307 = vmatprep.subr.bf16.mxu0 %v456_v4  ;;  %v461_v7 = vld [vmem:[%s538_s23 + $0x60] ss:$8 sps:$4 sm:$0xff]   ;;  %v462_v8 = vld [vmem:[%s538_s23 + $0x54] ss:$8 sps:$4 sm:$0xff]   ;;  %v464_v9 = vld [vmem:[%s538_s23 + $0x50] ss:$8 sps:$4 sm:$0xff]  }
  0x11   : > { %201 = vperm.xlu0 %455, %v193_v3   ;;  %308 = vmatpush1.bf16.msra.mxu0 %v458_v5  ;;  %v465_v10 = vld [vmem:[%s538_s23 + $0x44] ss:$8 sps:$4 sm:$0xff]   ;;  %v467_v11 = vld [vmem:[%s538_s23 + $0x40] ss:$8 sps:$4 sm:$0xff]   ;;  %v468_v12 = vld [vmem:[%s538_s23 + $0x34] ss:$8 sps:$4 sm:$0xff]  }
  0x12   : > { %309 = vmatprep.subr.bf16.mxu0 %v459_v6  ;;  %v470_v13 = vld [vmem:[%s538_s23 + $0x30] ss:$8 sps:$4 sm:$0xff]   ;;  %v471_v14 = vld [vmem:[%s538_s23 + $0x24] ss:$8 sps:$4 sm:$0xff]   ;;  %v473_v15 = vld [vmem:[%s538_s23 + $0x20] ss:$8 sps:$4 sm:$0xff]  }
  0x13   : > { %v474_v16 = vld [vmem:[%s538_s23 + $0x14] ss:$8 sps:$4 sm:$0xff]   ;;  %v476_v17 = vld [vmem:[%s538_s23 + $0x10] ss:$8 sps:$4 sm:$0xff]   ;;  %v477_v18 = vld [vmem:[%s538_s23 + $0x4] ss:$8 sps:$4 sm:$0xff]  }
  0x14   : > { %v479_v19 = vld [vmem:[%s538_s23] ss:$8 sps:$4 sm:$0xff]   ;;  %v480_v20 = vld [vmem:[%s538_s23 + $0x84] ss:$8 sps:$4 sm:$0xff]  }
  0x15   : > { %310 = vmatpush1.bf16.msra.mxu0 %v461_v7  ;;  %v482_v21 = vld [vmem:[%s538_s23 + $0x80] ss:$8 sps:$4 sm:$0xff]  }
  0x16   : > { %311 = vmatprep.subr.bf16.mxu0 %v462_v8 }
  0x19   : > { %312 = vmatpush1.bf16.msra.mxu0 %v464_v9 }
  0x1a   : > { %313 = vmatprep.subr.bf16.mxu0 %v465_v10 }
  0x1d   : > { %314 = vmatpush1.bf16.msra.mxu0 %v467_v11 }
  0x1e   : > { %315 = vmatprep.subr.bf16.mxu0 %v468_v12 }
  0x21   : > { %316 = vmatpush1.bf16.msra.mxu0 %v470_v13 }
  0x22   : > { %317 = vmatprep.subr.bf16.mxu0 %v471_v14 }
  0x25   : > { %318 = vmatpush1.bf16.msra.mxu0 %v473_v15 }
  0x26   : > { %319 = vmatprep.subr.bf16.mxu0 %v474_v16 }
  0x29   : > { %320 = vmatpush1.bf16.msra.mxu0 %v476_v17 }
  0x2a   : > { %321 = vmatprep.subr.bf16.mxu0 %v477_v18 }
  0x2d   : > { %322 = vmatpush1.bf16.msra.mxu0 %v479_v19 }
  0x2e   : > { %337 = vmatprep.subr.bf16.mxu0 %v480_v20 }
  0x31   : > { %338 = vmatpush2.bf16.msra.mxu0 %v482_v21 }
  0x34   : > { %340 = vmatmul.mubr.bf16.vlgmr.msra.gmra.mxu0 %v483_v22 }
  0x88   : > { %v197_v23 = vpop.permute.xlu0 %196 }
  0x8c   : > { %v202_v29 = vpop.permute.xlu0 %201 }
  0xf4   : > { %v341_v24 = vpop.f32.mrf.mxu0 }
  0xf5   : > { %v342_v25 = vadd.f32 %v341_v24, %v197_v23 }
  0xf6   : > { %v343_v26 = vpop.f32.mrf.mxu0 }
  0xf7   : > { %v350_v27 = vmax.f32 %v342_v25, 0.0  ;;  %v344_v28 = vadd.f32 %v343_v26, %v197_v23 }
  0xf8   : > { %v345_v30 = vpop.f32.mrf.mxu0 }
  0xf9   : > { %354 = vst [vmem:[%s170_s29] sm:$0xff] %v350_v27  ;;  %v351_v31 = vmax.f32 %v344_v28, 0.0  ;;  %v346_v32 = vadd.f32 %v345_v30, %v202_v29 }
  0xfa   : > { %v347_v33 = vpop.f32.mrf.mxu0 }
  0xfb   : > { %355 = vst [vmem:[%s170_s29 + $0x8] sm:$0xff] %v351_v31  ;;  %v352_v34 = vmax.f32 %v346_v32, 0.0  ;;  %v348_v35 = vadd.f32 %v347_v33, %v202_v29 }
  0xfd   : > { %356 = vst [vmem:[%s170_s29 + $0x10] sm:$0xff] %v352_v34  ;;  %v353_v36 = vmax.f32 %v348_v35, 0.0 }
  0xff   : > { %357 = vst [vmem:[%s170_s29 + $0x18] sm:$0xff] %v353_v36 }
 0x100 PF: > { %s13_s12 = sadd.s32 1, %s492_s12  }
 0x101   : > { %p10_p4 = scmp.ge.s32.totalorder %s13_s12, 4  }
 0x103   :  { %12 = sbr.rel (!%p10_p4) target bundleno = 1 (0x1), region = 62 }

// kernel: decoder_forward.13
= control target key start
LH: loop header
LB: loop body
LE: loop exit
PB: predicated region body
PF: predicated region fallthrough
CT: control target
= control target key end

     0   :  { %s498_s12 = smov 0   ;;  %s545_s0 = inlined_call_operand.vmem [shape: bf16[2,144,256], index: 0, kind: input, shape index: {}]   ;;  %s546_s1 = inlined_call_operand.vmem [shape: bf16[8,144], index: 1, kind: input, shape index: {}]   ;;  %s547_s2 = inlined_call_operand.vmem [shape: f32[8,1], index: 2, kind: input, shape index: {}]   ;;  %s548_s3 = inlined_call_operand.vmem [shape: f32[2,8,256], index: 3, kind: output, shape index: {}]  }
   0x1 LB: > { %s397_s13 = sadd.s32 4294967295, %s475_s12   ;;  %p401_p0 = scmp.ge.s32.totalorder %s475_s12, 1  ;;  %s475_s12 = sphi %s498_s12, %s13_s12  }
   0x2   : > { %p137_p1 = scmp.lt.s32.totalorder %s475_s12, 3 }
   0x4   : > { %p138_p2 = pnand %p401_p0, %p137_p1 }
   0x5   : > { %p161_p3 = scmp.lt.s32.totalorder (!%p138_p2), %s397_s13, 1 }
   0x6   : > { %141 = sbr.rel (%p138_p2) target bundleno = 252 (0xfc), region = 32 }
   0xb   : > { %v172_v0 = vld [vmem:[%s546_s1] sm:$0xff]  ;;  %vm293_vm0 = vcmask 130048   ;;  %v477_v3 = vmov 0   ;;  %s550_s13 = smov (!%p161_p3, %s397_s13), 1 }
   0xc   : > { %v191_v1 = vld [vmem:[%s547_s2] sm:$0xff]  ;;  %v406_v2 = vcombine.high %v172_v0, %v172_v0  ;;  %439 = vset.pattern.permute.xlu0 %v477_v3  ;;  %s429_s18 = smul.u32 144, %s550_s13  ;;  %v405_v22 = vcombine.low %v172_v0, %v172_v0  ;;  %s428_s22 = sshll.u32 %s550_s13, 4 }
   0xd   : > { %194 = vperm.xlu0 %439, %v191_v1   ;;  %s170_s25 = scalar_lea.vmem %s548_s3, %s428_s22 }
   0xe   : > { %425 = vmatprep.mubr.msk.bf16.mxu0 %vm293_vm0, %v406_v2  ;;  %s518_s21 = scalar_lea.vmem %s545_s0, %s429_s18 }
   0xf   : > { %v440_v4 = vld [vmem:[%s518_s21 + $0x74] ss:$8 sps:$4 sm:$0xff]   ;;  %v442_v5 = vld [vmem:[%s518_s21 + $0x70] ss:$8 sps:$4 sm:$0xff]   ;;  %v443_v6 = vld [vmem:[%s518_s21 + $0x64] ss:$8 sps:$4 sm:$0xff]  }
  0x10   : > { %297 = vmatprep.subr.bf16.mxu0 %v440_v4  ;;  %v445_v7 = vld [vmem:[%s518_s21 + $0x60] ss:$8 sps:$4 sm:$0xff]   ;;  %v446_v8 = vld [vmem:[%s518_s21 + $0x54] ss:$8 sps:$4 sm:$0xff]   ;;  %v448_v9 = vld [vmem:[%s518_s21 + $0x50] ss:$8 sps:$4 sm:$0xff]  }
  0x11   : > { %298 = vmatpush1.bf16.msra.mxu0 %v442_v5  ;;  %v449_v10 = vld [vmem:[%s518_s21 + $0x44] ss:$8 sps:$4 sm:$0xff]   ;;  %v451_v11 = vld [vmem:[%s518_s21 + $0x40] ss:$8 sps:$4 sm:$0xff]   ;;  %v452_v12 = vld [vmem:[%s518_s21 + $0x34] ss:$8 sps:$4 sm:$0xff]  }
  0x12   : > { %299 = vmatprep.subr.bf16.mxu0 %v443_v6  ;;  %v454_v13 = vld [vmem:[%s518_s21 + $0x30] ss:$8 sps:$4 sm:$0xff]   ;;  %v455_v14 = vld [vmem:[%s518_s21 + $0x24] ss:$8 sps:$4 sm:$0xff]   ;;  %v457_v15 = vld [vmem:[%s518_s21 + $0x20] ss:$8 sps:$4 sm:$0xff]  }
  0x13   : > { %v458_v16 = vld [vmem:[%s518_s21 + $0x14] ss:$8 sps:$4 sm:$0xff]   ;;  %v460_v17 = vld [vmem:[%s518_s21 + $0x10] ss:$8 sps:$4 sm:$0xff]   ;;  %v461_v18 = vld [vmem:[%s518_s21 + $0x4] ss:$8 sps:$4 sm:$0xff]  }
  0x14   : > { %v463_v19 = vld [vmem:[%s518_s21] ss:$8 sps:$4 sm:$0xff]   ;;  %v464_v20 = vld [vmem:[%s518_s21 + $0x84] ss:$8 sps:$4 sm:$0xff]  }
  0x15   : > { %300 = vmatpush1.bf16.msra.mxu0 %v445_v7  ;;  %v466_v21 = vld [vmem:[%s518_s21 + $0x80] ss:$8 sps:$4 sm:$0xff]  }
  0x16   : > { %301 = vmatprep.subr.bf16.mxu0 %v446_v8 }
  0x19   : > { %302 = vmatpush1.bf16.msra.mxu0 %v448_v9 }
  0x1a   : > { %303 = vmatprep.subr.bf16.mxu0 %v449_v10 }
  0x1d   : > { %304 = vmatpush1.bf16.msra.mxu0 %v451_v11 }
  0x1e   : > { %305 = vmatprep.subr.bf16.mxu0 %v452_v12 }
  0x21   : > { %306 = vmatpush1.bf16.msra.mxu0 %v454_v13 }
  0x22   : > { %307 = vmatprep.subr.bf16.mxu0 %v455_v14 }
  0x25   : > { %308 = vmatpush1.bf16.msra.mxu0 %v457_v15 }
  0x26   : > { %309 = vmatprep.subr.bf16.mxu0 %v458_v16 }
  0x29   : > { %310 = vmatpush1.bf16.msra.mxu0 %v460_v17 }
  0x2a   : > { %311 = vmatprep.subr.bf16.mxu0 %v461_v18 }
  0x2d   : > { %312 = vmatpush1.bf16.msra.mxu0 %v463_v19 }
  0x2e   : > { %327 = vmatprep.subr.bf16.mxu0 %v464_v20 }
  0x31   : > { %328 = vmatpush2.bf16.msra.mxu0 %v466_v21 }
  0x34   : > { %330 = vmatmul.mubr.bf16.vlgmr.msra.gmra.mxu0 %v405_v22 }
  0x88   : > { %v195_v23 = vpop.permute.xlu0 %194 }
  0xf4   : > { %v331_v24 = vpop.f32.mrf.mxu0 }
  0xf5   : > { %v332_v25 = vadd.f32 %v331_v24, %v195_v23 }
  0xf6   : > { %v333_v26 = vpop.f32.mrf.mxu0 }
  0xf7   : > { %v338_v27 = vmax.f32 %v332_v25, 0.0  ;;  %v334_v28 = vadd.f32 %v333_v26, %v195_v23 }
  0xf8   : > { %v335_v29 = vpop.f32.mrf.mxu0 }
  0xf9   : > { %340 = vst [vmem:[%s170_s25] sm:$0xff] %v338_v27  ;;  %v339_v30 = vmax.f32 %v334_v28, 0.0 }
  0xfa   : > { %v336_v31 = vpop.f32.mrf.mxu0 }
  0xfb   : > { %341 = vst [vmem:[%s170_s25 + $0x8] sm:$0xff] %v339_v30 }
  0xfc PF: > { %s13_s12 = sadd.s32 1, %s475_s12  }
  0xfd   : > { %p10_p4 = scmp.ge.s32.totalorder %s13_s12, 4  }
  0xff   :  { %12 = sbr.rel (!%p10_p4) target bundleno = 1 (0x1), region = 62 }

// kernel: decoder_forward.14
= control target key start
LH: loop header
LB: loop body
LE: loop exit
PB: predicated region body
PF: predicated region fallthrough
CT: control target
= control target key end

     0   :  { %10 = vsyncpa [#allocation3], 0  ;;  %s1135_s18 = smov 0   ;;  %s1448_s0 = inlined_call_operand.vmem [shape: f32[2], index: 0, kind: input, shape index: {}]   ;;  %s1449_s1 = inlined_call_operand.vmem [shape: bf16[2,72,1024], index: 1, kind: input, shape index: {}]   ;;  %s1450_s2 = inlined_call_operand.vmem [shape: bf16[2,72,1024], index: 2, kind: input, shape index: {}]   ;;  %s1451_s3 = inlined_call_operand.vmem [shape: bf16[8,72], index: 3, kind: input, shape index: {}]   ;;  %s1452_s4 = inlined_call_operand.vmem [shape: f32[8,1], index: 4, kind: input, shape index: {}]   ;;  %s1453_s5 = inlined_call_operand.vmem [shape: f32[2,8,1024], index: 5, kind: output, shape index: {}]  }
   0x1 LB: > { %s1141_s19 = sadd.s32 4294967295, %s1101_s18   ;;  %p1033_p0 = scmp.ge.s32.totalorder %s1101_s18, 1  ;;  %s1101_s18 = sphi %s1135_s18, %s16_s18  }
   0x2   : > { %p162_p1 = scmp.lt.s32.totalorder %s1101_s18, 3  ;;  %s175_s22 = sshll.u32 %s1448_s0, 4  ;;  %s176_s22 = int_to_ptr.vmem [resolvable:$true] %s175_s22 }
   0x3   : > { %p1063_p3 = scmp.eq.s32.totalorder %s1141_s19, 0  ;;  %s1076_s24 = scalar_lea.vmem %s176_s22, 16 }
   0x4   : > { %p1148_p2 = pnand %p1033_p0, %p162_p1  ;;  %p1077_p6 = scmp.ne.s32.totalorder %s176_s22, %s1076_s24 }
   0x5   : > { %p1084_p10 = scmp.lt.s32.totalorder %s176_s22, %s176_s22  ;;  %p1085_p11 = scmp.lt.s32.totalorder %s1076_s24, %s1076_s24 }
   0x6   : > { %p1059_p4 = pneg %p1148_p2 }
   0x7   : > { %p1086_p12 = por %p1085_p11, %p1084_p10 }
   0x8   : > { %p1060_p5 = pnand %p1063_p3, %p1059_p4 }
   0xa   : > { %p1078_p7 = pneg %p1060_p5 }
   0xc   : > { %p1079_p8 = pnand %p1078_p7, %p1077_p6 }
   0xe   : > { %p1080_p9 = pneg %p1079_p8 }
  0x10   : > { %p1087_p13 = pnand %p1086_p12, %p1080_p9 }
  0x12   : > { %1090 = shalt.err (!%p1087_p13)
}
  0x13   : > { %s1103_s25 = smov [#allocation2]   ;;  %210 = sbr.rel (%p1148_p2) target bundleno = 342 (0x156), region = 40 }
  0x14   : > { %1062 = dma.vmem_to_smem (!%p1060_p5), %s176_s22, 16, %s1103_s25, [#allocation3]  }
  0x18   : > { %1096 = dma.done.wait (%p1063_p3), [#allocation3], 16  }
  0x19   : > { %1098 = vsyncadd (%p1063_p3), [#allocation3], 4294967280 }
  0x1a   : > { %216 = sfence }
  0x1b   : > { %p244_p0 = scmp.lt.s32.totalorder %s1141_s19, 1  ;;  %s260_s26 = sld [smem:[#allocation2]]  ;;  %v1104_v0 = vmov 0   ;;  %v737_v1 = vld [vmem:[%s1452_s4] sm:$0xff]  ;;  %vm747_vm0 = vcmask 1043456   ;;  %vm743_vm1 = vcmask 588800  }
  0x1c   : > { %s1042_s27 = sld [smem:[#allocation2 + $0x1]]  ;;  %804 = vmatprep.mubr.bf16.mxu0 %v1104_v0  ;;  %845 = vmatprep.mubr.bf16.mxu1 %v1104_v0 }
  0x1d   : > { %s1456_s19 = smov (!%p244_p0, %s1141_s19), 1  ;;  %1075 = vset.pattern.permute.xlu0 %v1104_v0 }
  0x1e   : > { %740 = vperm.xlu0 %1075, %v737_v1   ;;  %s1054_s30 = smul.u32 288, %s1456_s19  ;;  %s1053_s14 = sshll.u32 %s1456_s19, 6 }
  0x1f   : > { %s1435_s17 = scalar_lea.vmem %s1453_s5, %s1053_s14 }
  0x20   : > { %s1177_s8 = scalar_lea.vmem %s1449_s1, %s1054_s30  ;;  %s1182_s11 = scalar_lea.vmem %s1450_s2, %s1054_s30 }
  0x21   : > { %v1184_v2 = vstv %s260_s26  ;;  %v294_v3 = vld [vmem:[%s1177_s8 + $0x100] sm:$0xff]  ;;  %v295_v6 = vld [vmem:[%s1177_s8 + $0x108] sm:$0xff] }
  0x22   : > { %v475_v4 = vld [vmem:[%s1182_s11 + $0x100] sm:$0xff]  ;;  %v1188_v5 = vstv %s1042_s27  ;;  %v363_v7 = vunpack.c.h.bf16 %v294_v3  ;;  %v365_v9 = vunpack.c.h.bf16 %v295_v6  ;;  %v476_v10 = vld [vmem:[%s1182_s11 + $0x108] sm:$0xff]  ;;  %v362_v11 = vunpack.c.l.bf16 %v294_v3 }
  0x23   : > { %v544_v8 = vunpack.c.h.bf16 %v475_v4  ;;  %v546_v12 = vunpack.c.h.bf16 %v476_v10  ;;  %v543_v13 = vunpack.c.l.bf16 %v475_v4  ;;  %v364_v14 = vunpack.c.l.bf16 %v295_v6  ;;  %v286_v16 = vld [vmem:[%s1177_s8 + $0xc0] sm:$0xff]  ;;  %v287_v36 = vld [vmem:[%s1177_s8 + $0xc8] sm:$0xff] }
  0x24   : > { %v545_v15 = vunpack.c.l.bf16 %v476_v10  ;;  %v290_v17 = vld [vmem:[%s1177_s8 + $0xe0] sm:$0xff]  ;;  %v436_v19 = vmul.f32 %v1184_v2, %v363_v7  ;;  %v438_v21 = vmul.f32 %v1184_v2, %v365_v9  ;;  %v435_v22 = vmul.f32 %v1184_v2, %v362_v11  ;;  %v291_v37 = vld [vmem:[%s1177_s8 + $0xe8] sm:$0xff] }
  0x25   : > { %v467_v18 = vld [vmem:[%s1182_s11 + $0xc0] sm:$0xff]  ;;  %v617_v20 = vmul.f32 %v1188_v5, %v544_v8  ;;  %v619_v24 = vmul.f32 %v1188_v5, %v546_v12  ;;  %v616_v25 = vmul.f32 %v1188_v5, %v543_v13  ;;  %v437_v26 = vmul.f32 %v1184_v2, %v364_v14  ;;  %v468_v38 = vld [vmem:[%s1182_s11 + $0xc8] sm:$0xff] }
  0x26   : > { %v471_v23 = vld [vmem:[%s1182_s11 + $0xe0] sm:$0xff]  ;;  %v618_v27 = vmul.f32 %v1188_v5, %v545_v15  ;;  %v347_v29 = vunpack.c.h.bf16 %v286_v16  ;;  %v355_v30 = vunpack.c.h.bf16 %v290_v17  ;;  %v528_v31 = vunpack.c.h.bf16 %v467_v18  ;;  %v472_v43 = vld [vmem:[%s1182_s11 + $0xe8] sm:$0xff] }
  0x27   : > { %v689_v28 = vadd.f32 %v617_v20, %v436_v19  ;;  %v691_v32 = vadd.f32 %v619_v24, %v438_v21  ;;  %v688_v33 = vadd.f32 %v616_v25, %v435_v22  ;;  %v536_v35 = vunpack.c.h.bf16 %v471_v23  ;;  %v278_v7 = vld [vmem:[%s1177_s8 + $0x80] sm:$0xff]  ;;  %v279_v19 = vld [vmem:[%s1177_s8 + $0x88] sm:$0xff] }
  0x28   : > { %v690_v34 = vadd.f32 %v618_v27, %v437_v26  ;;  %v420_v40 = vmul.f32 %v1184_v2, %v347_v29  ;;  %v428_v41 = vmul.f32 %v1184_v2, %v355_v30  ;;  %v601_v42 = vmul.f32 %v1188_v5, %v528_v31  ;;  %v282_v12 = vld [vmem:[%s1177_s8 + $0xa0] sm:$0xff] }
  0x29   : > { %v729_v39 = vpack.c.bf16 %v689_v28, %v689_v28  ;;  %v731_v44 = vpack.c.bf16 %v691_v32, %v691_v32  ;;  %v728_v45 = vpack.c.bf16 %v688_v33, %v688_v33  ;;  %v609_v47 = vmul.f32 %v1188_v5, %v536_v35  ;;  %v283_v28 = vld [vmem:[%s1177_s8 + $0xa8] sm:$0xff] }
  0x2a   : > { %v730_v46 = vpack.c.bf16 %v690_v34, %v690_v34  ;;  %v673_v48 = vadd.f32 %v601_v42, %v420_v40  ;;  %v349_v49 = vunpack.c.h.bf16 %v287_v36  ;;  %v357_v50 = vunpack.c.h.bf16 %v291_v37  ;;  %v460_v33 = vld [vmem:[%s1182_s11 + $0x88] sm:$0xff] }
  0x2b   : > { %1043 = vmatprep.subr.msk.bf16.mxu0 %vm747_vm0, %v729_v39  ;;  %v530_v51 = vunpack.c.h.bf16 %v468_v38  ;;  %1045 = vmatprep.subr.msk.bf16.mxu1 %vm747_vm0, %v731_v44  ;;  %v749_v52 = vsel %vm747_vm0, %v728_v45, 0  ;;  %v681_v54 = vadd.f32 %v609_v47, %v428_v41  ;;  %v538_v55 = vunpack.c.h.bf16 %v472_v43  ;;  %v464_v34 = vld [vmem:[%s1182_s11 + $0xa8] sm:$0xff] }
  0x2c   : > { %v755_v53 = vsel %vm747_vm0, %v730_v46, 0  ;;  %779 = vmatpush1.bf16.msra.mxu0 %v749_v52  ;;  %v422_v56 = vmul.f32 %v1184_v2, %v349_v49  ;;  %v430_v57 = vmul.f32 %v1184_v2, %v357_v50  ;;  %v346_v59 = vunpack.c.l.bf16 %v286_v16 }
  0x2d   : > { %820 = vmatpush1.bf16.msra.mxu1 %v755_v53  ;;  %v603_v58 = vmul.f32 %v1188_v5, %v530_v51  ;;  %v721_v60 = vpack.c.bf16 %v681_v54, %v673_v48  ;;  %v611_v61 = vmul.f32 %v1188_v5, %v538_v55  ;;  %v354_v62 = vunpack.c.l.bf16 %v290_v17  ;;  %v459_v17 = vld [vmem:[%s1182_s11 + $0x80] sm:$0xff] }
  0x2e   : > { %v527_v63 = vunpack.c.l.bf16 %v467_v18  ;;  %v419_v3 = vmul.f32 %v1184_v2, %v346_v59  ;;  %v535_v4 = vunpack.c.l.bf16 %v471_v23  ;;  %v348_v6 = vunpack.c.l.bf16 %v287_v36  ;;  %v463_v18 = vld [vmem:[%s1182_s11 + $0xa0] sm:$0xff] }
  0x2f   : > { %v675_v1 = vadd.f32 %v603_v58, %v422_v56  ;;  %780 = vmatprep.subr.bf16.mxu0 %v721_v60  ;;  %v683_v8 = vadd.f32 %v611_v61, %v430_v57  ;;  %v427_v9 = vmul.f32 %v1184_v2, %v354_v62  ;;  %v356_v11 = vunpack.c.l.bf16 %v291_v37  ;;  %v270_v59 = vld [vmem:[%s1177_s8 + $0x40] sm:$0xff] }
  0x30   : > { %v600_v10 = vmul.f32 %v1188_v5, %v527_v63  ;;  %v608_v13 = vmul.f32 %v1188_v5, %v535_v4  ;;  %v421_v14 = vmul.f32 %v1184_v2, %v348_v6  ;;  %v529_v15 = vunpack.c.l.bf16 %v468_v38 }
  0x31   : > { %v537_v16 = vunpack.c.l.bf16 %v472_v43  ;;  %v723_v20 = vpack.c.bf16 %v683_v8, %v675_v1  ;;  %v429_v22 = vmul.f32 %v1184_v2, %v356_v11  ;;  %v331_v23 = vunpack.c.h.bf16 %v278_v7  ;;  %v274_v1 = vld [vmem:[%s1177_s8 + $0x60] sm:$0xff] }
  0x32   : > { %v672_v21 = vadd.f32 %v600_v10, %v419_v3  ;;  %v680_v24 = vadd.f32 %v608_v13, %v427_v9  ;;  %v602_v25 = vmul.f32 %v1188_v5, %v529_v15  ;;  %v339_v27 = vunpack.c.h.bf16 %v282_v12  ;;  %v451_v8 = vld [vmem:[%s1182_s11 + $0x40] sm:$0xff]  ;;  %v271_v10 = vld [vmem:[%s1177_s8 + $0x48] sm:$0xff] }
  0x33   : > { %v610_v26 = vmul.f32 %v1188_v5, %v537_v16  ;;  %821 = vmatprep.subr.bf16.mxu1 %v723_v20  ;;  %v404_v29 = vmul.f32 %v1184_v2, %v331_v23  ;;  %v512_v30 = vunpack.c.h.bf16 %v459_v17  ;;  %v520_v31 = vunpack.c.h.bf16 %v463_v18  ;;  %v455_v9 = vld [vmem:[%s1182_s11 + $0x60] sm:$0xff] }
  0x34   : > { %v333_v32 = vunpack.c.h.bf16 %v279_v19  ;;  %v720_v35 = vpack.c.bf16 %v680_v24, %v672_v21  ;;  %v674_v36 = vadd.f32 %v602_v25, %v421_v14  ;;  %v412_v38 = vmul.f32 %v1184_v2, %v339_v27  ;;  %v452_v24 = vld [vmem:[%s1182_s11 + $0x48] sm:$0xff] }
  0x35   : > { %v682_v37 = vadd.f32 %v610_v26, %v429_v22  ;;  %v585_v39 = vmul.f32 %v1188_v5, %v512_v30  ;;  %v593_v40 = vmul.f32 %v1188_v5, %v520_v31  ;;  %v341_v41 = vunpack.c.h.bf16 %v283_v28  ;;  %v456_v25 = vld [vmem:[%s1182_s11 + $0x68] sm:$0xff] }
  0x36   : > { %v406_v42 = vmul.f32 %v1184_v2, %v333_v32  ;;  %781 = vmatpush1.bf16.msra.mxu0 %v720_v35  ;;  %v514_v44 = vunpack.c.h.bf16 %v460_v33  ;;  %v522_v45 = vunpack.c.h.bf16 %v464_v34  ;;  %v330_v46 = vunpack.c.l.bf16 %v278_v7 }
  0x37   : > { %v722_v43 = vpack.c.bf16 %v682_v37, %v674_v36  ;;  %v657_v47 = vadd.f32 %v585_v39, %v404_v29  ;;  %v665_v48 = vadd.f32 %v593_v40, %v412_v38  ;;  %v414_v49 = vmul.f32 %v1184_v2, %v341_v41 }
  0x38   : > { %v338_v50 = vunpack.c.l.bf16 %v282_v12  ;;  %v587_v51 = vmul.f32 %v1188_v5, %v514_v44  ;;  %v595_v52 = vmul.f32 %v1188_v5, %v522_v45  ;;  %v403_v53 = vmul.f32 %v1184_v2, %v330_v46 }
  0x39   : > { %822 = vmatpush1.bf16.msra.mxu1 %v722_v43  ;;  %v511_v54 = vunpack.c.l.bf16 %v459_v17  ;;  %v713_v55 = vpack.c.bf16 %v665_v48, %v657_v47  ;;  %v519_v57 = vunpack.c.l.bf16 %v463_v18  ;;  %v332_v58 = vunpack.c.l.bf16 %v279_v19  ;;  %v275_v19 = vld [vmem:[%s1177_s8 + $0x68] sm:$0xff] }
  0x3a   : > { %v411_v56 = vmul.f32 %v1184_v2, %v338_v50  ;;  %v659_v60 = vadd.f32 %v587_v51, %v406_v42  ;;  %v667_v61 = vadd.f32 %v595_v52, %v414_v49  ;;  %v340_v63 = vunpack.c.l.bf16 %v283_v28  ;;  %v262_v50 = vld [vmem:[%s1177_s8] sm:$0xff] }
  0x3b   : > { %v584_v62 = vmul.f32 %v1188_v5, %v511_v54  ;;  %782 = vmatprep.subr.bf16.mxu0 %v713_v55  ;;  %v592_v3 = vmul.f32 %v1188_v5, %v519_v57  ;;  %v405_v4 = vmul.f32 %v1184_v2, %v332_v58  ;;  %v513_v6 = vunpack.c.l.bf16 %v460_v33  ;;  %v266_v55 = vld [vmem:[%s1177_s8 + $0x20] sm:$0xff] }
  0x3c   : > { %v521_v7 = vunpack.c.l.bf16 %v464_v34  ;;  %v715_v11 = vpack.c.bf16 %v667_v61, %v659_v60  ;;  %v413_v13 = vmul.f32 %v1184_v2, %v340_v63  ;;  %v315_v14 = vunpack.c.h.bf16 %v270_v59  ;;  %v443_v60 = vld [vmem:[%s1182_s11] sm:$0xff] }
  0x3d   : > { %v656_v12 = vadd.f32 %v584_v62, %v403_v53  ;;  %v664_v15 = vadd.f32 %v592_v3, %v411_v56  ;;  %v586_v16 = vmul.f32 %v1188_v5, %v513_v6  ;;  %v323_v18 = vunpack.c.h.bf16 %v274_v1  ;;  %v447_v61 = vld [vmem:[%s1182_s11 + $0x20] sm:$0xff]  ;;  %v263_v62 = vld [vmem:[%s1177_s8 + $0x8] sm:$0xff] }
  0x3e   : > { %v594_v17 = vmul.f32 %v1188_v5, %v521_v7  ;;  %823 = vmatprep.subr.bf16.mxu1 %v715_v11  ;;  %v388_v20 = vmul.f32 %v1184_v2, %v315_v14  ;;  %v496_v21 = vunpack.c.h.bf16 %v451_v8  ;;  %v504_v22 = vunpack.c.h.bf16 %v455_v9 }
  0x3f   : > { %v317_v23 = vunpack.c.h.bf16 %v271_v10  ;;  %v712_v26 = vpack.c.bf16 %v664_v15, %v656_v12  ;;  %v658_v27 = vadd.f32 %v586_v16, %v405_v4  ;;  %v396_v29 = vmul.f32 %v1184_v2, %v323_v18  ;;  %v444_v15 = vld [vmem:[%s1182_s11 + $0x8] sm:$0xff] }
  0x40   : > { %v666_v28 = vadd.f32 %v594_v17, %v413_v13  ;;  %v569_v30 = vmul.f32 %v1188_v5, %v496_v21  ;;  %v577_v31 = vmul.f32 %v1188_v5, %v504_v22  ;;  %v325_v32 = vunpack.c.h.bf16 %v275_v19  ;;  %v448_v16 = vld [vmem:[%s1182_s11 + $0x28] sm:$0xff] }
  0x41   : > { %v390_v33 = vmul.f32 %v1184_v2, %v317_v23  ;;  %783 = vmatpush1.bf16.msra.mxu0 %v712_v26  ;;  %v498_v35 = vunpack.c.h.bf16 %v452_v24  ;;  %v506_v36 = vunpack.c.h.bf16 %v456_v25  ;;  %v314_v37 = vunpack.c.l.bf16 %v270_v59 }
  0x42   : > { %v714_v34 = vpack.c.bf16 %v666_v28, %v658_v27  ;;  %v641_v38 = vadd.f32 %v569_v30, %v388_v20  ;;  %v649_v39 = vadd.f32 %v577_v31, %v396_v29  ;;  %v398_v40 = vmul.f32 %v1184_v2, %v325_v32 }
  0x43   : > { %v322_v41 = vunpack.c.l.bf16 %v274_v1  ;;  %v571_v42 = vmul.f32 %v1188_v5, %v498_v35  ;;  %v579_v43 = vmul.f32 %v1188_v5, %v506_v36  ;;  %v387_v44 = vmul.f32 %v1184_v2, %v314_v37 }
  0x44   : > { %824 = vmatpush1.bf16.msra.mxu1 %v714_v34  ;;  %v495_v45 = vunpack.c.l.bf16 %v451_v8  ;;  %v705_v46 = vpack.c.bf16 %v649_v39, %v641_v38  ;;  %v503_v48 = vunpack.c.l.bf16 %v455_v9  ;;  %v316_v49 = vunpack.c.l.bf16 %v271_v10  ;;  %v267_v10 = vld [vmem:[%s1177_s8 + $0x28] sm:$0xff] }
  0x45   : > { %v395_v47 = vmul.f32 %v1184_v2, %v322_v41  ;;  %v643_v51 = vadd.f32 %v571_v42, %v390_v33  ;;  %v651_v52 = vadd.f32 %v579_v43, %v398_v40  ;;  %v324_v54 = vunpack.c.l.bf16 %v275_v19  ;;  %v296_v41 = vld [vmem:[%s1177_s8 + $0x110] sm:$0xff] }
  0x46   : > { %v568_v53 = vmul.f32 %v1188_v5, %v495_v45  ;;  %784 = vmatprep.subr.bf16.mxu0 %v705_v46  ;;  %v576_v56 = vmul.f32 %v1188_v5, %v503_v48  ;;  %v389_v57 = vmul.f32 %v1184_v2, %v316_v49  ;;  %v497_v58 = vunpack.c.l.bf16 %v452_v24  ;;  %v477_v46 = vld [vmem:[%s1182_s11 + $0x110] sm:$0xff] }
  0x47   : > { %v505_v59 = vunpack.c.l.bf16 %v456_v25  ;;  %v707_v63 = vpack.c.bf16 %v651_v52, %v643_v51  ;;  %v397_v3 = vmul.f32 %v1184_v2, %v324_v54  ;;  %v299_v4 = vunpack.c.h.bf16 %v262_v50  ;;  %v297_v51 = vld [vmem:[%s1177_s8 + $0x118] sm:$0xff] }
  0x48   : > { %v640_v1 = vadd.f32 %v568_v53, %v387_v44  ;;  %v648_v6 = vadd.f32 %v576_v56, %v395_v47  ;;  %v570_v7 = vmul.f32 %v1188_v5, %v497_v58  ;;  %v307_v9 = vunpack.c.h.bf16 %v266_v55  ;;  %v478_v52 = vld [vmem:[%s1182_s11 + $0x118] sm:$0xff] }
  0x49   : > { %v578_v8 = vmul.f32 %v1188_v5, %v505_v59  ;;  %825 = vmatprep.subr.bf16.mxu1 %v707_v63  ;;  %v372_v11 = vmul.f32 %v1184_v2, %v299_v4  ;;  %v480_v12 = vunpack.c.h.bf16 %v443_v60  ;;  %v488_v13 = vunpack.c.h.bf16 %v447_v61 }
  0x4a   : > { %v301_v14 = vunpack.c.h.bf16 %v263_v62  ;;  %v704_v17 = vpack.c.bf16 %v648_v6, %v640_v1  ;;  %v642_v18 = vadd.f32 %v570_v7, %v389_v57  ;;  %v380_v20 = vmul.f32 %v1184_v2, %v307_v9 }
  0x4b   : > { %v650_v19 = vadd.f32 %v578_v8, %v397_v3  ;;  %v553_v21 = vmul.f32 %v1188_v5, %v480_v12  ;;  %v561_v22 = vmul.f32 %v1188_v5, %v488_v13  ;;  %v309_v23 = vunpack.c.h.bf16 %v267_v10  ;;  %v1307_v8 = vld [vmem:[%s1177_s8 + $0xd0] sm:$0xff] }
  0x4c   : > { %v374_v24 = vmul.f32 %v1184_v2, %v301_v14  ;;  %785 = vmatpush1.bf16.msra.mxu0 %v704_v17  ;;  %v482_v26 = vunpack.c.h.bf16 %v444_v15  ;;  %v490_v27 = vunpack.c.h.bf16 %v448_v16  ;;  %v298_v28 = vunpack.c.l.bf16 %v262_v50  ;;  %v292_v13 = vld [vmem:[%s1177_s8 + $0xf0] sm:$0xff] }
  0x4d   : > { %v706_v25 = vpack.c.bf16 %v650_v19, %v642_v18  ;;  %v625_v29 = vadd.f32 %v553_v21, %v372_v11  ;;  %v633_v30 = vadd.f32 %v561_v22, %v380_v20  ;;  %v382_v31 = vmul.f32 %v1184_v2, %v309_v23  ;;  %v469_v23 = vld [vmem:[%s1182_s11 + $0xd0] sm:$0xff] }
  0x4e   : > { %v306_v32 = vunpack.c.l.bf16 %v266_v55  ;;  %v555_v33 = vmul.f32 %v1188_v5, %v482_v26  ;;  %v563_v34 = vmul.f32 %v1188_v5, %v490_v27  ;;  %v371_v35 = vmul.f32 %v1184_v2, %v298_v28 }
  0x4f   : > { %826 = vmatpush1.bf16.msra.mxu1 %v706_v25  ;;  %v479_v36 = vunpack.c.l.bf16 %v443_v60  ;;  %v697_v37 = vpack.c.bf16 %v633_v30, %v625_v29  ;;  %v487_v39 = vunpack.c.l.bf16 %v447_v61  ;;  %v300_v40 = vunpack.c.l.bf16 %v263_v62  ;;  %v289_v29 = vld [vmem:[%s1177_s8 + $0xd8] sm:$0xff] }
  0x50   : > { %v379_v38 = vmul.f32 %v1184_v2, %v306_v32  ;;  %v627_v42 = vadd.f32 %v555_v33, %v374_v24  ;;  %v635_v43 = vadd.f32 %v563_v34, %v382_v31  ;;  %v308_v45 = vunpack.c.l.bf16 %v267_v10  ;;  %v473_v24 = vld [vmem:[%s1182_s11 + $0xf0] sm:$0xff]  ;;  %v293_v34 = vld [vmem:[%s1177_s8 + $0xf8] sm:$0xff] }
  0x51   : > { %v552_v44 = vmul.f32 %v1188_v5, %v479_v36  ;;  %786 = vmatprep.subr.bf16.mxu0 %v697_v37  ;;  %v560_v47 = vmul.f32 %v1188_v5, %v487_v39  ;;  %v373_v48 = vmul.f32 %v1184_v2, %v300_v40  ;;  %v481_v49 = vunpack.c.l.bf16 %v444_v15  ;;  %v1316_v15 = vld [vmem:[%s1451_s3] sm:$0xf]  ;;  %v470_v39 = vld [vmem:[%s1182_s11 + $0xd8] sm:$0xff] }
  0x52   : > { %v489_v50 = vunpack.c.l.bf16 %v448_v16  ;;  %v699_v53 = vpack.c.bf16 %v635_v43, %v627_v42  ;;  %v381_v55 = vmul.f32 %v1184_v2, %v308_v45  ;;  %v367_v56 = vunpack.c.h.bf16 %v296_v41 }
  0x53   : > { %v624_v54 = vadd.f32 %v552_v44, %v371_v35  ;;  %v632_v57 = vadd.f32 %v560_v47, %v379_v38  ;;  %v554_v58 = vmul.f32 %v1188_v5, %v481_v49  ;;  %v548_v60 = vunpack.c.h.bf16 %v477_v46 }
  0x54   : > { %v562_v59 = vmul.f32 %v1188_v5, %v489_v50  ;;  %827 = vmatprep.subr.bf16.mxu1 %v699_v53  ;;  %v440_v61 = vmul.f32 %v1184_v2, %v367_v56  ;;  %v369_v62 = vunpack.c.h.bf16 %v297_v51  ;;  %v550_v63 = vunpack.c.h.bf16 %v478_v52 }
  0x55   : > { %v366_v1 = vunpack.c.l.bf16 %v296_v41  ;;  %v696_v3 = vpack.c.bf16 %v632_v57, %v624_v54  ;;  %v626_v4 = vadd.f32 %v554_v58, %v373_v48  ;;  %v621_v7 = vmul.f32 %v1188_v5, %v548_v60  ;;  %v474_v48 = vld [vmem:[%s1182_s11 + $0xf8] sm:$0xff] }
  0x56   : > { %v634_v6 = vadd.f32 %v562_v59, %v381_v55  ;;  %v442_v9 = vmul.f32 %v1184_v2, %v369_v62  ;;  %v623_v10 = vmul.f32 %v1188_v5, %v550_v63  ;;  %v547_v12 = vunpack.c.l.bf16 %v477_v46 }
  0x57   : > { %v439_v11 = vmul.f32 %v1184_v2, %v366_v1  ;;  %787 = vmatpush1.bf16.msra.mxu0 %v696_v3  ;;  %v693_v16 = vadd.f32 %v621_v7, %v440_v61  ;;  %v368_v17 = vunpack.c.l.bf16 %v297_v51  ;;  %v549_v18 = vunpack.c.l.bf16 %v478_v52  ;;  %v280_v1 = vld [vmem:[%s1177_s8 + $0x90] sm:$0xff] }
  0x58   : > { %v698_v14 = vpack.c.bf16 %v634_v6, %v626_v4  ;;  %v695_v19 = vadd.f32 %v623_v10, %v442_v9  ;;  %v620_v20 = vmul.f32 %v1188_v5, %v547_v12  ;;  %v350_v21 = vunpack.c.l.bf16 %v1307_v8 }
  0x59   : > { %v351_v22 = vunpack.c.h.bf16 %v1307_v8  ;;  %v733_v25 = vpack.c.bf16 %v693_v16, %v693_v16  ;;  %v441_v26 = vmul.f32 %v1184_v2, %v368_v17  ;;  %v622_v27 = vmul.f32 %v1188_v5, %v549_v18  ;;  %v284_v8 = vld [vmem:[%s1177_s8 + $0xb0] sm:$0xff] }
  0x5a   : > { %828 = vmatpush1.bf16.msra.mxu1 %v698_v14  ;;  %v358_v28 = vunpack.c.l.bf16 %v292_v13  ;;  %1044 = vmatmul.mubr.msk.bf16.vlgmr.msra.gmra.mxu0 %vm743_vm1, %v1316_v15  ;;  %v735_v30 = vpack.c.bf16 %v695_v19, %v695_v19  ;;  %v692_v31 = vadd.f32 %v620_v20, %v439_v11  ;;  %v359_v32 = vunpack.c.h.bf16 %v292_v13  ;;  %v461_v13 = vld [vmem:[%s1182_s11 + $0x90] sm:$0xff] }
  0x5b   : > { %v424_v33 = vmul.f32 %v1184_v2, %v351_v22  ;;  %1047 = vmatprep.subr.msk.bf16.mxu0 %vm747_vm0, %v733_v25  ;;  %v694_v35 = vadd.f32 %v622_v27, %v441_v26  ;;  %v531_v36 = vunpack.c.l.bf16 %v469_v23  ;;  %v532_v37 = vunpack.c.h.bf16 %v469_v23  ;;  %886 = vmatprep.mubr.bf16.mxu0 %v1104_v0  ;;  %v465_v19 = vld [vmem:[%s1182_s11 + $0xb0] sm:$0xff] }
  0x5c   : > { %v539_v38 = vunpack.c.l.bf16 %v473_v24  ;;  %1049 = vmatprep.subr.msk.bf16.mxu1 %vm747_vm0, %v735_v30  ;;  %v732_v40 = vpack.c.bf16 %v692_v31, %v692_v31  ;;  %v432_v41 = vmul.f32 %v1184_v2, %v359_v32  ;;  %v540_v42 = vunpack.c.h.bf16 %v473_v24  ;;  %v281_v24 = vld [vmem:[%s1177_s8 + $0x98] sm:$0xff] }
  0x5d   : > { %1046 = vmatmul.mubr.msk.bf16.vlgmr.msra.gmra.mxu1 %vm743_vm1, %v1316_v15  ;;  %v352_v43 = vunpack.c.l.bf16 %v289_v29  ;;  %v734_v44 = vpack.c.bf16 %v694_v35, %v694_v35  ;;  %v605_v45 = vmul.f32 %v1188_v5, %v532_v37  ;;  %v353_v46 = vunpack.c.h.bf16 %v289_v29  ;;  %v285_v29 = vld [vmem:[%s1177_s8 + $0xb8] sm:$0xff] }
  0x5e   : > { %v360_v47 = vunpack.c.l.bf16 %v293_v34  ;;  %927 = vmatprep.mubr.bf16.mxu1 %v1104_v0  ;;  %v761_v49 = vsel %vm747_vm0, %v732_v40, 0  ;;  %v613_v50 = vmul.f32 %v1188_v5, %v540_v42  ;;  %v361_v51 = vunpack.c.h.bf16 %v293_v34  ;;  %v462_v30 = vld [vmem:[%s1182_s11 + $0x98] sm:$0xff] }
  0x5f   : > { %v533_v52 = vunpack.c.l.bf16 %v470_v39  ;;  %861 = vmatpush1.bf16.msra.mxu0 %v761_v49  ;;  %v767_v53 = vsel %vm747_vm0, %v734_v44, 0  ;;  %v677_v54 = vadd.f32 %v605_v45, %v424_v33  ;;  %v426_v55 = vmul.f32 %v1184_v2, %v353_v46  ;;  %v466_v35 = vld [vmem:[%s1182_s11 + $0xb8] sm:$0xff] }
  0x60   : > { %v534_v56 = vunpack.c.h.bf16 %v470_v39  ;;  %902 = vmatpush1.bf16.msra.mxu1 %v767_v53  ;;  %v685_v57 = vadd.f32 %v613_v50, %v432_v41  ;;  %v434_v58 = vmul.f32 %v1184_v2, %v361_v51  ;;  %v541_v0 = vunpack.c.l.bf16 %v474_v48 }
  0x61   : > { %v542_v59 = vunpack.c.h.bf16 %v474_v48  ;;  %v423_v61 = vmul.f32 %v1184_v2, %v350_v21  ;;  %v431_v62 = vmul.f32 %v1184_v2, %v358_v28  ;;  %v604_v63 = vmul.f32 %v1188_v5, %v531_v36 }
  0x62   : > { %v607_v60 = vmul.f32 %v1188_v5, %v534_v56  ;;  %v725_v3 = vpack.c.bf16 %v685_v57, %v677_v54  ;;  %v612_v6 = vmul.f32 %v1188_v5, %v539_v38  ;;  %v425_v7 = vmul.f32 %v1184_v2, %v352_v43  ;;  %v272_v56 = vld [vmem:[%s1177_s8 + $0x50] sm:$0xff] }
  0x63   : > { %v615_v4 = vmul.f32 %v1188_v5, %v542_v59  ;;  %v676_v10 = vadd.f32 %v604_v63, %v423_v61  ;;  %v433_v11 = vmul.f32 %v1184_v2, %v360_v47  ;;  %v606_v12 = vmul.f32 %v1188_v5, %v533_v52 }
  0x64   : > { %v679_v9 = vadd.f32 %v607_v60, %v426_v55  ;;  %862 = vmatprep.subr.bf16.mxu0 %v725_v3  ;;  %v684_v16 = vadd.f32 %v612_v6, %v431_v62  ;;  %v614_v17 = vmul.f32 %v1188_v5, %v541_v0  ;;  %v334_v18 = vunpack.c.l.bf16 %v280_v1  ;;  %v276_v60 = vld [vmem:[%s1177_s8 + $0x70] sm:$0xff] }
  0x65   : > { %v687_v14 = vadd.f32 %v615_v4, %v434_v58  ;;  %v678_v20 = vadd.f32 %v606_v12, %v425_v7  ;;  %v335_v21 = vunpack.c.h.bf16 %v280_v1  ;;  %v342_v22 = vunpack.c.l.bf16 %v284_v8  ;;  %v453_v3 = vld [vmem:[%s1182_s11 + $0x50] sm:$0xff] }
  0x66   : > { %v343_v23 = vunpack.c.h.bf16 %v284_v8  ;;  %v724_v26 = vpack.c.bf16 %v684_v16, %v676_v10  ;;  %v686_v27 = vadd.f32 %v614_v17, %v433_v11  ;;  %v515_v28 = vunpack.c.l.bf16 %v461_v13 }
  0x67   : > { %v727_v25 = vpack.c.bf16 %v687_v14, %v679_v9  ;;  %v408_v31 = vmul.f32 %v1184_v2, %v335_v21  ;;  %v516_v33 = vunpack.c.h.bf16 %v461_v13  ;;  %v523_v34 = vunpack.c.l.bf16 %v465_v19  ;;  %v457_v9 = vld [vmem:[%s1182_s11 + $0x70] sm:$0xff]  ;;  %v273_v14 = vld [vmem:[%s1177_s8 + $0x58] sm:$0xff] }
  0x68   : > { %v416_v32 = vmul.f32 %v1184_v2, %v343_v23  ;;  %863 = vmatpush1.bf16.msra.mxu0 %v724_v26  ;;  %v726_v36 = vpack.c.bf16 %v686_v27, %v678_v20  ;;  %v524_v37 = vunpack.c.h.bf16 %v465_v19  ;;  %v336_v38 = vunpack.c.l.bf16 %v281_v24  ;;  %v277_v20 = vld [vmem:[%s1177_s8 + $0x78] sm:$0xff] }
  0x69   : > { %903 = vmatprep.subr.bf16.mxu1 %v727_v25  ;;  %v337_v39 = vunpack.c.h.bf16 %v281_v24  ;;  %v589_v40 = vmul.f32 %v1188_v5, %v516_v33  ;;  %v344_v41 = vunpack.c.l.bf16 %v285_v29  ;;  %v345_v42 = vunpack.c.h.bf16 %v285_v29  ;;  %v454_v21 = vld [vmem:[%s1182_s11 + $0x58] sm:$0xff] }
  0x6a   : > { %v517_v43 = vunpack.c.l.bf16 %v462_v30  ;;  %904 = vmatpush1.bf16.msra.mxu1 %v726_v36  ;;  %v597_v44 = vmul.f32 %v1188_v5, %v524_v37  ;;  %v518_v46 = vunpack.c.h.bf16 %v462_v30  ;;  %v525_v47 = vunpack.c.l.bf16 %v466_v35  ;;  %v458_v26 = vld [vmem:[%s1182_s11 + $0x78] sm:$0xff] }
  0x6b   : > { %v410_v45 = vmul.f32 %v1184_v2, %v337_v39  ;;  %v661_v48 = vadd.f32 %v589_v40, %v408_v31  ;;  %v418_v49 = vmul.f32 %v1184_v2, %v345_v42  ;;  %v526_v50 = vunpack.c.h.bf16 %v466_v35 }
  0x6c   : > { %v407_v51 = vmul.f32 %v1184_v2, %v334_v18  ;;  %v669_v52 = vadd.f32 %v597_v44, %v416_v32  ;;  %v591_v53 = vmul.f32 %v1188_v5, %v518_v46  ;;  %v415_v54 = vmul.f32 %v1184_v2, %v342_v22 }
  0x6d   : > { %v588_v55 = vmul.f32 %v1188_v5, %v515_v28  ;;  %v599_v57 = vmul.f32 %v1188_v5, %v526_v50  ;;  %v596_v58 = vmul.f32 %v1188_v5, %v523_v34  ;;  %v409_v0 = vmul.f32 %v1184_v2, %v336_v38 }
  0x6e   : > { %v417_v59 = vmul.f32 %v1184_v2, %v344_v41  ;;  %v717_v61 = vpack.c.bf16 %v669_v52, %v661_v48  ;;  %v663_v62 = vadd.f32 %v591_v53, %v410_v45  ;;  %v590_v1 = vmul.f32 %v1188_v5, %v517_v43  ;;  %v268_v52 = vld [vmem:[%s1177_s8 + $0x30] sm:$0xff] }
  0x6f   : > { %v660_v63 = vadd.f32 %v588_v55, %v407_v51  ;;  %v671_v4 = vadd.f32 %v599_v57, %v418_v49  ;;  %v668_v6 = vadd.f32 %v596_v58, %v415_v54  ;;  %v598_v7 = vmul.f32 %v1188_v5, %v525_v47  ;;  %v264_v47 = vld [vmem:[%s1177_s8 + $0x10] sm:$0xff] }
  0x70   : > { %v318_v8 = vunpack.c.l.bf16 %v272_v56  ;;  %864 = vmatprep.subr.bf16.mxu0 %v717_v61  ;;  %v662_v10 = vadd.f32 %v590_v1, %v409_v0  ;;  %v319_v11 = vunpack.c.h.bf16 %v272_v56  ;;  %v326_v12 = vunpack.c.l.bf16 %v276_v60  ;;  %v445_v57 = vld [vmem:[%s1182_s11 + $0x10] sm:$0xff] }
  0x71   : > { %v327_v13 = vunpack.c.h.bf16 %v276_v60  ;;  %v719_v16 = vpack.c.bf16 %v671_v4, %v663_v62  ;;  %v716_v17 = vpack.c.bf16 %v668_v6, %v660_v63  ;;  %v670_v18 = vadd.f32 %v598_v7, %v417_v59  ;;  %v449_v61 = vld [vmem:[%s1182_s11 + $0x30] sm:$0xff]  ;;  %v265_v4 = vld [vmem:[%s1177_s8 + $0x18] sm:$0xff] }
  0x72   : > { %v499_v19 = vunpack.c.l.bf16 %v453_v3  ;;  %v392_v22 = vmul.f32 %v1184_v2, %v319_v11  ;;  %v500_v24 = vunpack.c.h.bf16 %v453_v3  ;;  %v507_v25 = vunpack.c.l.bf16 %v457_v9  ;;  %v446_v11 = vld [vmem:[%s1182_s11 + $0x18] sm:$0xff] }
  0x73   : > { %v400_v23 = vmul.f32 %v1184_v2, %v327_v13  ;;  %905 = vmatprep.subr.bf16.mxu1 %v719_v16  ;;  %865 = vmatpush1.bf16.msra.mxu0 %v716_v17  ;;  %v718_v27 = vpack.c.bf16 %v670_v18, %v662_v10  ;;  %v508_v28 = vunpack.c.h.bf16 %v457_v9  ;;  %v320_v29 = vunpack.c.l.bf16 %v273_v14  ;;  %v269_v10 = vld [vmem:[%s1177_s8 + $0x38] sm:$0xff] }
  0x74   : > { %v321_v30 = vunpack.c.h.bf16 %v273_v14  ;;  %v573_v31 = vmul.f32 %v1188_v5, %v500_v24  ;;  %v328_v32 = vunpack.c.l.bf16 %v277_v20  ;;  %v329_v33 = vunpack.c.h.bf16 %v277_v20  ;;  %v450_v17 = vld [vmem:[%s1182_s11 + $0x38] sm:$0xff] }
  0x75   : > { %v501_v34 = vunpack.c.l.bf16 %v454_v21  ;;  %906 = vmatpush1.bf16.msra.mxu1 %v718_v27  ;;  %v581_v35 = vmul.f32 %v1188_v5, %v508_v28  ;;  %v502_v37 = vunpack.c.h.bf16 %v454_v21  ;;  %v509_v38 = vunpack.c.l.bf16 %v458_v26 }
  0x76   : > { %v394_v36 = vmul.f32 %v1184_v2, %v321_v30  ;;  %v645_v39 = vadd.f32 %v573_v31, %v392_v22  ;;  %v402_v40 = vmul.f32 %v1184_v2, %v329_v33  ;;  %v510_v41 = vunpack.c.h.bf16 %v458_v26 }
  0x77   : > { %v391_v42 = vmul.f32 %v1184_v2, %v318_v8  ;;  %v653_v43 = vadd.f32 %v581_v35, %v400_v23  ;;  %v575_v44 = vmul.f32 %v1188_v5, %v502_v37  ;;  %v399_v45 = vmul.f32 %v1184_v2, %v326_v12 }
  0x78   : > { %v572_v46 = vmul.f32 %v1188_v5, %v499_v19  ;;  %v583_v48 = vmul.f32 %v1188_v5, %v510_v41  ;;  %v580_v49 = vmul.f32 %v1188_v5, %v507_v25  ;;  %v393_v50 = vmul.f32 %v1184_v2, %v320_v29 }
  0x79   : > { %v401_v51 = vmul.f32 %v1184_v2, %v328_v32  ;;  %v709_v53 = vpack.c.bf16 %v653_v43, %v645_v39  ;;  %v647_v54 = vadd.f32 %v575_v44, %v394_v36  ;;  %v574_v56 = vmul.f32 %v1188_v5, %v501_v34 }
  0x7a   : > { %v644_v55 = vadd.f32 %v572_v46, %v391_v42  ;;  %v655_v58 = vadd.f32 %v583_v48, %v402_v40  ;;  %v652_v0 = vadd.f32 %v580_v49, %v399_v45  ;;  %v582_v59 = vmul.f32 %v1188_v5, %v509_v38 }
  0x7b   : > { %v302_v60 = vunpack.c.l.bf16 %v264_v47  ;;  %866 = vmatprep.subr.bf16.mxu0 %v709_v53  ;;  %v646_v62 = vadd.f32 %v574_v56, %v393_v50  ;;  %v303_v63 = vunpack.c.h.bf16 %v264_v47  ;;  %v310_v1 = vunpack.c.l.bf16 %v268_v52 }
  0x7c   : > { %v311_v3 = vunpack.c.h.bf16 %v268_v52  ;;  %v711_v6 = vpack.c.bf16 %v655_v58, %v647_v54  ;;  %v708_v7 = vpack.c.bf16 %v652_v0, %v644_v55  ;;  %v654_v8 = vadd.f32 %v582_v59, %v401_v51 }
  0x7d   : > { %v483_v9 = vunpack.c.l.bf16 %v445_v57  ;;  %v376_v12 = vmul.f32 %v1184_v2, %v303_v63  ;;  %v484_v14 = vunpack.c.h.bf16 %v445_v57  ;;  %v491_v16 = vunpack.c.l.bf16 %v449_v61 }
  0x7e   : > { %v384_v13 = vmul.f32 %v1184_v2, %v311_v3  ;;  %907 = vmatprep.subr.bf16.mxu1 %v711_v6  ;;  %867 = vmatpush1.bf16.msra.mxu0 %v708_v7  ;;  %v710_v18 = vpack.c.bf16 %v654_v8, %v646_v62  ;;  %v492_v19 = vunpack.c.h.bf16 %v449_v61  ;;  %v304_v20 = vunpack.c.l.bf16 %v265_v4 }
  0x7f   : > { %v305_v21 = vunpack.c.h.bf16 %v265_v4  ;;  %v557_v22 = vmul.f32 %v1188_v5, %v484_v14  ;;  %v312_v23 = vunpack.c.l.bf16 %v269_v10  ;;  %v313_v24 = vunpack.c.h.bf16 %v269_v10 }
  0x80   : > { %v485_v25 = vunpack.c.l.bf16 %v446_v11  ;;  %908 = vmatpush1.bf16.msra.mxu1 %v710_v18  ;;  %v565_v26 = vmul.f32 %v1188_v5, %v492_v19  ;;  %v486_v28 = vunpack.c.h.bf16 %v446_v11  ;;  %v493_v29 = vunpack.c.l.bf16 %v450_v17 }
  0x81   : > { %v378_v27 = vmul.f32 %v1184_v2, %v305_v21  ;;  %v629_v30 = vadd.f32 %v557_v22, %v376_v12  ;;  %v386_v31 = vmul.f32 %v1184_v2, %v313_v24  ;;  %v494_v32 = vunpack.c.h.bf16 %v450_v17 }
  0x82   : > { %v375_v33 = vmul.f32 %v1184_v2, %v302_v60  ;;  %v637_v34 = vadd.f32 %v565_v26, %v384_v13  ;;  %v559_v35 = vmul.f32 %v1188_v5, %v486_v28  ;;  %v383_v36 = vmul.f32 %v1184_v2, %v310_v1 }
  0x83   : > { %v556_v37 = vmul.f32 %v1188_v5, %v483_v9  ;;  %v567_v38 = vmul.f32 %v1188_v5, %v494_v32  ;;  %v564_v39 = vmul.f32 %v1188_v5, %v491_v16  ;;  %v377_v40 = vmul.f32 %v1184_v2, %v304_v20 }
  0x84   : > { %v385_v41 = vmul.f32 %v1184_v2, %v312_v23  ;;  %v701_v42 = vpack.c.bf16 %v637_v34, %v629_v30  ;;  %v631_v43 = vadd.f32 %v559_v35, %v378_v27  ;;  %v558_v45 = vmul.f32 %v1188_v5, %v485_v25 }
  0x85   : > { %v628_v44 = vadd.f32 %v556_v37, %v375_v33  ;;  %v639_v46 = vadd.f32 %v567_v38, %v386_v31  ;;  %v636_v47 = vadd.f32 %v564_v39, %v383_v36  ;;  %v566_v48 = vmul.f32 %v1188_v5, %v493_v29 }
  0x86   : > { %868 = vmatprep.subr.bf16.mxu0 %v701_v42  ;;  %v630_v49 = vadd.f32 %v558_v45, %v377_v40 }
  0x87   : > { %v703_v50 = vpack.c.bf16 %v639_v46, %v631_v43  ;;  %v700_v51 = vpack.c.bf16 %v636_v47, %v628_v44  ;;  %v638_v52 = vadd.f32 %v566_v48, %v385_v41 }
  0x89   : > { %909 = vmatprep.subr.bf16.mxu1 %v703_v50  ;;  %869 = vmatpush1.bf16.msra.mxu0 %v700_v51  ;;  %v702_v53 = vpack.c.bf16 %v638_v52, %v630_v49 }
  0x8b   : > { %910 = vmatpush1.bf16.msra.mxu1 %v702_v53 }
  0x8c   : > { %1048 = vmatmul.mubr.msk.bf16.vlgmr.msra.gmra.mxu0 %vm743_vm1, %v1316_v15 }
  0x8e   : > { %1050 = vmatmul.mubr.msk.bf16.vlgmr.msra.gmra.mxu1 %vm743_vm1, %v1316_v15 }
  0x99   : > { %v741_v2 = vpop.permute.xlu0 %740 }
 0x11a   : > { %v806_v54 = vpop.f32.mrf.mxu0 }
 0x11b   : > { %v807_v55 = vadd.f32 %v806_v54, %v741_v2 }
 0x11c   : > { %v808_v56 = vpop.f32.mrf.mxu0 }
 0x11d   : > { %v847_v5 = vpop.f32.mrf.mxu1  ;;  %v936_v58 = vmax.f32 %v807_v55, 0.0  ;;  %v809_v0 = vadd.f32 %v808_v56, %v741_v2 }
 0x11e   : > { %v848_v57 = vadd.f32 %v847_v5, %v741_v2  ;;  %v810_v15 = vpop.f32.mrf.mxu0 }
 0x11f   : > { %v849_v59 = vpop.f32.mrf.mxu1  ;;  %944 = vst [vmem:[%s1435_s17] sm:$0xff] %v936_v58  ;;  %v937_v61 = vmax.f32 %v809_v0, 0.0 }
 0x120   : > { %v938_v60 = vmax.f32 %v848_v57, 0.0  ;;  %v850_v62 = vadd.f32 %v849_v59, %v741_v2  ;;  %v811_v1 = vpop.f32.mrf.mxu0 }
 0x121   : > { %v851_v63 = vpop.f32.mrf.mxu1  ;;  %945 = vst [vmem:[%s1435_s17 + $0x8] sm:$0xff] %v937_v61 }
 0x122   : > { %946 = vst [vmem:[%s1435_s17 + $0x10] sm:$0xff] %v938_v60  ;;  %v939_v3 = vmax.f32 %v850_v62, 0.0 }
 0x123   : > { %v852_v4 = vpop.f32.mrf.mxu1 }
 0x124   : > { %947 = vst [vmem:[%s1435_s17 + $0x18] sm:$0xff] %v939_v3 }
 0x14c   : > { %v888_v6 = vpop.f32.mrf.mxu0 }
 0x14d   : > { %v889_v7 = vadd.f32 %v888_v6, %v741_v2 }
 0x14e   : > { %v929_v8 = vpop.f32.mrf.mxu1  ;;  %v890_v9 = vpop.f32.mrf.mxu0 }
 0x14f   : > { %v940_v10 = vmax.f32 %v889_v7, 0.0  ;;  %v930_v11 = vadd.f32 %v929_v8, %v741_v2  ;;  %v891_v12 = vadd.f32 %v890_v9, %v741_v2 }
 0x150   : > { %v931_v13 = vpop.f32.mrf.mxu1  ;;  %v892_v14 = vpop.f32.mrf.mxu0 }
 0x151   : > { %948 = vst [vmem:[%s1435_s17 + $0x20] sm:$0xff] %v940_v10  ;;  %v942_v16 = vmax.f32 %v930_v11, 0.0  ;;  %v941_v17 = vmax.f32 %v891_v12, 0.0  ;;  %v932_v18 = vadd.f32 %v931_v13, %v741_v2 }
 0x152   : > { %v933_v19 = vpop.f32.mrf.mxu1  ;;  %v893_v20 = vpop.f32.mrf.mxu0 }
 0x153   : > { %950 = vst [vmem:[%s1435_s17 + $0x30] sm:$0xff] %v942_v16  ;;  %949 = vst [vmem:[%s1435_s17 + $0x28] sm:$0xff] %v941_v17  ;;  %v943_v21 = vmax.f32 %v932_v18, 0.0 }
 0x154   : > { %v934_v22 = vpop.f32.mrf.mxu1 }
 0x155   : > { %951 = vst [vmem:[%s1435_s17 + $0x38] sm:$0xff] %v943_v21 }
 0x156 PF: > { %s16_s18 = sadd.s32 1, %s1101_s18  }
 0x157   : > { %p13_p1 = scmp.ge.s32.totalorder %s16_s18, 4  }
 0x159   :  { %15 = sbr.rel (!%p13_p1) target bundleno = 1 (0x1), region = 78 }
 0x15e   :  { %973 = vsyncpa [#allocation3], 1 }
 0x15f   :  { %975 = vsyncpa [#allocation3 + $0x1], 1 }

// kernel: decoder_forward.15
= control target key start
LH: loop header
LB: loop body
LE: loop exit
PB: predicated region body
PF: predicated region fallthrough
CT: control target
= control target key end

     0   :  { %s778_s12 = smov 0   ;;  %s860_s0 = inlined_call_operand.vmem [shape: bf16[2,72,1024], index: 0, kind: input, shape index: {}]   ;;  %s861_s1 = inlined_call_operand.vmem [shape: bf16[4,72], index: 1, kind: input, shape index: {}]   ;;  %s862_s2 = inlined_call_operand.vmem [shape: f32[4,1], index: 2, kind: input, shape index: {}]   ;;  %s863_s3 = inlined_call_operand.vmem [shape: f32[2,4,1024], index: 3, kind: output, shape index: {}]  }
   0x1 LB: > { %s671_s13 = sadd.s32 4294967295, %s755_s12   ;;  %p675_p0 = scmp.ge.s32.totalorder %s755_s12, 1  ;;  %s755_s12 = sphi %s778_s12, %s13_s12  }
   0x2   : > { %p137_p1 = scmp.lt.s32.totalorder %s755_s12, 3 }
   0x4   : > { %p138_p2 = pnand %p675_p0, %p137_p1 }
   0x5   : > { %p161_p3 = scmp.lt.s32.totalorder (!%p138_p2), %s671_s13, 1 }
   0x6   : > { %141 = sbr.rel (%p138_p2) target bundleno = 260 (0x104), region = 32 }
   0xb   : > { %v757_v0 = vmov 0   ;;  %v209_v1 = vld [vmem:[%s862_s2] sm:$0xf]  ;;  %s865_s13 = smov (!%p161_p3, %s671_s13), 1  ;;  %vm399_vm0 = vcmask 1043456   ;;  %vm395_vm1 = vcmask 588800  }
   0xc   : > { %456 = vmatprep.mubr.bf16.mxu0 %v757_v0  ;;  %497 = vmatprep.mubr.bf16.mxu1 %v757_v0  ;;  %s730_s16 = smul.u32 288, %s865_s13  ;;  %v172_v52 = vld [vmem:[%s861_s1] sm:$0x3]  ;;  %s729_s22 = sshll.u32 %s865_s13, 5 }
   0xd   : > { %740 = vset.pattern.permute.xlu0 %v757_v0  ;;  %s170_s25 = scalar_lea.vmem %s863_s3, %s729_s22 }
   0xe   : > { %212 = vperm.xlu0 %740, %v209_v1   ;;  %s798_s19 = scalar_lea.vmem %s860_s0, %s730_s16 }
   0xf   : > { %v205_v2 = vld [vmem:[%s798_s19 + $0x100] sm:$0xff]  ;;  %v206_v3 = vld [vmem:[%s798_s19 + $0x108] sm:$0xff]  ;;  %v207_v40 = vld [vmem:[%s798_s19 + $0x110] sm:$0xff] }
  0x10   : > { %v197_v4 = vld [vmem:[%s798_s19 + $0xc0] sm:$0xff]  ;;  %v712_v5 = vcombine.high %v205_v2, %v205_v2  ;;  %v714_v6 = vcombine.high %v206_v3, %v206_v3  ;;  %v711_v7 = vcombine.low %v205_v2, %v205_v2  ;;  %v713_v8 = vcombine.low %v206_v3, %v206_v3  ;;  %v198_v10 = vld [vmem:[%s798_s19 + $0xc8] sm:$0xff]  ;;  %v208_v41 = vld [vmem:[%s798_s19 + $0x118] sm:$0xff] }
  0x11   : > { %v201_v9 = vld [vmem:[%s798_s19 + $0xe0] sm:$0xff]  ;;  %v202_v11 = vld [vmem:[%s798_s19 + $0xe8] sm:$0xff]  ;;  %v716_v44 = vcombine.high %v207_v40, %v207_v40  ;;  %v718_v45 = vcombine.high %v208_v41, %v208_v41  ;;  %v715_v46 = vcombine.low %v207_v40, %v207_v40  ;;  %v717_v47 = vcombine.low %v208_v41, %v208_v41  ;;  %v199_v48 = vld [vmem:[%s798_s19 + $0xd0] sm:$0xff] }
  0x12   : > { %v704_v12 = vcombine.high %v197_v4, %v201_v9  ;;  %v706_v13 = vcombine.high %v198_v10, %v202_v11  ;;  %v189_v14 = vld [vmem:[%s798_s19 + $0x80] sm:$0xff]  ;;  %v190_v16 = vld [vmem:[%s798_s19 + $0x88] sm:$0xff]  ;;  %719 = vmatprep.subr.msk.bf16.mxu0 %vm399_vm0, %v712_v5  ;;  %721 = vmatprep.subr.msk.bf16.mxu1 %vm399_vm0, %v714_v6  ;;  %v401_v17 = vsel %vm399_vm0, %v711_v7, 0  ;;  %v407_v18 = vsel %vm399_vm0, %v713_v8, 0  ;;  %v203_v49 = vld [vmem:[%s798_s19 + $0xf0] sm:$0xff] }
  0x13   : > { %v193_v15 = vld [vmem:[%s798_s19 + $0xa0] sm:$0xff]  ;;  %v194_v19 = vld [vmem:[%s798_s19 + $0xa8] sm:$0xff]  ;;  %431 = vmatpush1.bf16.msra.mxu0 %v401_v17  ;;  %472 = vmatpush1.bf16.msra.mxu1 %v407_v18  ;;  %v703_v20 = vcombine.low %v197_v4, %v201_v9  ;;  %v705_v21 = vcombine.low %v198_v10, %v202_v11  ;;  %v200_v50 = vld [vmem:[%s798_s19 + $0xd8] sm:$0xff]  ;;  %v413_v53 = vsel %vm399_vm0, %v715_v46, 0  ;;  %v419_v54 = vsel %vm399_vm0, %v717_v47, 0 }
  0x14   : > { %432 = vmatprep.subr.bf16.mxu0 %v704_v12  ;;  %473 = vmatprep.subr.bf16.mxu1 %v706_v13  ;;  %v696_v22 = vcombine.high %v189_v14, %v193_v15  ;;  %v698_v23 = vcombine.high %v190_v16, %v194_v19  ;;  %v181_v24 = vld [vmem:[%s798_s19 + $0x40] sm:$0xff]  ;;  %v182_v26 = vld [vmem:[%s798_s19 + $0x48] sm:$0xff]  ;;  %v695_v28 = vcombine.low %v189_v14, %v193_v15  ;;  %v204_v51 = vld [vmem:[%s798_s19 + $0xf8] sm:$0xff] }
  0x15   : > { %v185_v25 = vld [vmem:[%s798_s19 + $0x60] sm:$0xff]  ;;  %v186_v27 = vld [vmem:[%s798_s19 + $0x68] sm:$0xff]  ;;  %v697_v29 = vcombine.low %v190_v16, %v194_v19  ;;  %v708_v55 = vcombine.high %v199_v48, %v203_v49  ;;  %v710_v56 = vcombine.high %v200_v50, %v204_v51  ;;  %v191_v57 = vld [vmem:[%s798_s19 + $0x90] sm:$0xff]  ;;  %v707_v61 = vcombine.low %v199_v48, %v203_v49 }
  0x16   : > { %v688_v30 = vcombine.high %v181_v24, %v185_v25  ;;  %v690_v31 = vcombine.high %v182_v26, %v186_v27  ;;  %v173_v32 = vld [vmem:[%s798_s19] sm:$0xff]  ;;  %v174_v34 = vld [vmem:[%s798_s19 + $0x8] sm:$0xff]  ;;  %v687_v36 = vcombine.low %v181_v24, %v185_v25  ;;  %v689_v37 = vcombine.low %v182_v26, %v186_v27  ;;  %v195_v58 = vld [vmem:[%s798_s19 + $0xb0] sm:$0xff] }
  0x17   : > { %433 = vmatpush1.bf16.msra.mxu0 %v703_v20  ;;  %474 = vmatpush1.bf16.msra.mxu1 %v705_v21  ;;  %v177_v33 = vld [vmem:[%s798_s19 + $0x20] sm:$0xff]  ;;  %v178_v35 = vld [vmem:[%s798_s19 + $0x28] sm:$0xff]  ;;  %v192_v59 = vld [vmem:[%s798_s19 + $0x98] sm:$0xff]  ;;  %v709_v62 = vcombine.low %v200_v50, %v204_v51  ;;  %v700_v63 = vcombine.high %v191_v57, %v195_v58  ;;  %v699_v6 = vcombine.low %v191_v57, %v195_v58 }
  0x18   : > { %434 = vmatprep.subr.bf16.mxu0 %v696_v22  ;;  %475 = vmatprep.subr.bf16.mxu1 %v698_v23  ;;  %v680_v38 = vcombine.high %v173_v32, %v177_v33  ;;  %v682_v39 = vcombine.high %v174_v34, %v178_v35  ;;  %v679_v42 = vcombine.low %v173_v32, %v177_v33  ;;  %v196_v60 = vld [vmem:[%s798_s19 + $0xb8] sm:$0xff]  ;;  %v183_v2 = vld [vmem:[%s798_s19 + $0x50] sm:$0xff] }
  0x19   : > { %v681_v43 = vcombine.low %v174_v34, %v178_v35  ;;  %v702_v1 = vcombine.high %v192_v59, %v196_v60  ;;  %v187_v3 = vld [vmem:[%s798_s19 + $0x70] sm:$0xff]  ;;  %v184_v4 = vld [vmem:[%s798_s19 + $0x58] sm:$0xff]  ;;  %v701_v7 = vcombine.low %v192_v59, %v196_v60 }
  0x1a   : > { %v188_v5 = vld [vmem:[%s798_s19 + $0x78] sm:$0xff]  ;;  %v692_v8 = vcombine.high %v183_v2, %v187_v3  ;;  %v175_v10 = vld [vmem:[%s798_s19 + $0x10] sm:$0xff]  ;;  %v691_v14 = vcombine.low %v183_v2, %v187_v3 }
  0x1b   : > { %435 = vmatpush1.bf16.msra.mxu0 %v695_v28  ;;  %476 = vmatpush1.bf16.msra.mxu1 %v697_v29  ;;  %v694_v9 = vcombine.high %v184_v4, %v188_v5  ;;  %v179_v11 = vld [vmem:[%s798_s19 + $0x30] sm:$0xff]  ;;  %v176_v12 = vld [vmem:[%s798_s19 + $0x18] sm:$0xff]  ;;  %v693_v15 = vcombine.low %v184_v4, %v188_v5 }
  0x1c   : > { %436 = vmatprep.subr.bf16.mxu0 %v688_v30  ;;  %477 = vmatprep.subr.bf16.mxu1 %v690_v31  ;;  %v180_v13 = vld [vmem:[%s798_s19 + $0x38] sm:$0xff]  ;;  %v684_v16 = vcombine.high %v175_v10, %v179_v11  ;;  %v683_v17 = vcombine.low %v175_v10, %v179_v11 }
  0x1d   : > { %v685_v18 = vcombine.low %v176_v12, %v180_v13 }
  0x1f   : > { %437 = vmatpush1.bf16.msra.mxu0 %v687_v36  ;;  %478 = vmatpush1.bf16.msra.mxu1 %v689_v37 }
  0x20   : > { %438 = vmatprep.subr.bf16.mxu0 %v680_v38  ;;  %479 = vmatprep.subr.bf16.mxu1 %v682_v39 }
  0x23   : > { %439 = vmatpush1.bf16.msra.mxu0 %v679_v42  ;;  %480 = vmatpush1.bf16.msra.mxu1 %v681_v43 }
  0x24   : > { %723 = vmatprep.subr.msk.bf16.mxu0 %vm399_vm0, %v716_v44  ;;  %725 = vmatprep.subr.msk.bf16.mxu1 %vm399_vm0, %v718_v45 }
  0x26   : > { %720 = vmatmul.mubr.msk.bf16.vlgmr.msra.gmra.mxu0 %vm395_vm1, %v172_v52  ;;  %722 = vmatmul.mubr.msk.bf16.vlgmr.msra.gmra.mxu1 %vm395_vm1, %v172_v52 }
  0x27   : > { %513 = vmatpush1.bf16.msra.mxu0 %v413_v53  ;;  %554 = vmatpush1.bf16.msra.mxu1 %v419_v54 }
  0x28   : > { %514 = vmatprep.subr.bf16.mxu0 %v708_v55  ;;  %555 = vmatprep.subr.bf16.mxu1 %v710_v56 }
  0x29   : > { %538 = vmatprep.mubr.bf16.mxu0 %v757_v0  ;;  %579 = vmatprep.mubr.bf16.mxu1 %v757_v0  ;;  %v686_v0 = vcombine.high %v176_v12, %v180_v13 }
  0x2b   : > { %515 = vmatpush1.bf16.msra.mxu0 %v707_v61  ;;  %556 = vmatpush1.bf16.msra.mxu1 %v709_v62 }
  0x2c   : > { %516 = vmatprep.subr.bf16.mxu0 %v700_v63  ;;  %557 = vmatprep.subr.bf16.mxu1 %v702_v1 }
  0x2f   : > { %517 = vmatpush1.bf16.msra.mxu0 %v699_v6  ;;  %558 = vmatpush1.bf16.msra.mxu1 %v701_v7 }
  0x30   : > { %518 = vmatprep.subr.bf16.mxu0 %v692_v8  ;;  %559 = vmatprep.subr.bf16.mxu1 %v694_v9 }
  0x33   : > { %519 = vmatpush1.bf16.msra.mxu0 %v691_v14  ;;  %560 = vmatpush1.bf16.msra.mxu1 %v693_v15 }
  0x34   : > { %520 = vmatprep.subr.bf16.mxu0 %v684_v16  ;;  %561 = vmatprep.subr.bf16.mxu1 %v686_v0 }
  0x37   : > { %521 = vmatpush1.bf16.msra.mxu0 %v683_v17  ;;  %562 = vmatpush1.bf16.msra.mxu1 %v685_v18 }
  0x3a   : > { %724 = vmatmul.mubr.msk.bf16.vlgmr.msra.gmra.mxu0 %vm395_vm1, %v172_v52  ;;  %726 = vmatmul.mubr.msk.bf16.vlgmr.msra.gmra.mxu1 %vm395_vm1, %v172_v52 }
  0x89   : > { %v213_v19 = vpop.permute.xlu0 %212 }
  0xe6   : > { %v458_v20 = vpop.f32.mrf.mxu0  ;;  %v499_v21 = vpop.f32.mrf.mxu1 }
  0xe7   : > { %v459_v22 = vadd.f32 %v458_v20, %v213_v19  ;;  %v500_v23 = vadd.f32 %v499_v21, %v213_v19 }
  0xe8   : > { %v460_v24 = vpop.f32.mrf.mxu0  ;;  %v501_v25 = vpop.f32.mrf.mxu1 }
  0xe9   : > { %v461_v26 = vadd.f32 %v460_v24, %v213_v19  ;;  %v588_v27 = vmax.f32 %v459_v22, 0.0  ;;  %v502_v28 = vadd.f32 %v501_v25, %v213_v19  ;;  %v590_v29 = vmax.f32 %v500_v23, 0.0 }
  0xea   : > { %v462_v30 = vpop.f32.mrf.mxu0  ;;  %v503_v31 = vpop.f32.mrf.mxu1 }
  0xeb   : > { %v589_v32 = vmax.f32 %v461_v26, 0.0  ;;  %v591_v33 = vmax.f32 %v502_v28, 0.0 }
  0xec   : > { %v463_v34 = vpop.f32.mrf.mxu0  ;;  %v504_v35 = vpop.f32.mrf.mxu1 }
  0xed   : > { %v604_v36 = vcombine.low %v588_v27, %v589_v32  ;;  %v605_v37 = vcombine.low %v590_v29, %v591_v33 }
  0xef   : > { %612 = vst [vmem:[%s170_s25] sm:$0xff] %v604_v36  ;;  %613 = vst [vmem:[%s170_s25 + $0x8] sm:$0xff] %v605_v37 }
  0xfa   : > { %v540_v38 = vpop.f32.mrf.mxu0  ;;  %v581_v39 = vpop.f32.mrf.mxu1 }
  0xfb   : > { %v541_v40 = vadd.f32 %v540_v38, %v213_v19  ;;  %v582_v41 = vadd.f32 %v581_v39, %v213_v19 }
  0xfc   : > { %v542_v42 = vpop.f32.mrf.mxu0  ;;  %v583_v43 = vpop.f32.mrf.mxu1 }
  0xfd   : > { %v543_v44 = vadd.f32 %v542_v42, %v213_v19  ;;  %v584_v45 = vadd.f32 %v583_v43, %v213_v19  ;;  %v592_v48 = vmax.f32 %v541_v40, 0.0  ;;  %v594_v49 = vmax.f32 %v582_v41, 0.0 }
  0xfe   : > { %v544_v46 = vpop.f32.mrf.mxu0  ;;  %v585_v47 = vpop.f32.mrf.mxu1 }
  0xff   : > { %v593_v50 = vmax.f32 %v543_v44, 0.0  ;;  %v595_v51 = vmax.f32 %v584_v45, 0.0 }
 0x100   : > { %v545_v52 = vpop.f32.mrf.mxu0  ;;  %v586_v53 = vpop.f32.mrf.mxu1 }
 0x101   : > { %v606_v54 = vcombine.low %v592_v48, %v593_v50  ;;  %v607_v55 = vcombine.low %v594_v49, %v595_v51 }
 0x103   : > { %614 = vst [vmem:[%s170_s25 + $0x10] sm:$0xff] %v606_v54  ;;  %615 = vst [vmem:[%s170_s25 + $0x18] sm:$0xff] %v607_v55 }
 0x104 PF: > { %s13_s12 = sadd.s32 1, %s755_s12  }
 0x105   : > { %p10_p4 = scmp.ge.s32.totalorder %s13_s12, 4  }
 0x107   :  { %12 = sbr.rel (!%p10_p4) target bundleno = 1 (0x1), region = 62 }

// kernel: decoder_forward.16
= control target key start
LH: loop header
LB: loop body
LE: loop exit
PB: predicated region body
PF: predicated region fallthrough
CT: control target
= control target key end

     0   :  { %s1794_s12 = smov 0   ;;  %s2038_s0 = inlined_call_operand.vmem [shape: bf16[2,36,4096], index: 0, kind: input, shape index: {}]   ;;  %s2039_s1 = inlined_call_operand.vmem [shape: bf16[4,36], index: 1, kind: input, shape index: {}]   ;;  %s2040_s2 = inlined_call_operand.vmem [shape: f32[4,1], index: 2, kind: input, shape index: {}]   ;;  %s2041_s3 = inlined_call_operand.vmem [shape: f32[2,4,4096], index: 3, kind: output, shape index: {}]  }
   0x1 LB: > { %s1583_s13 = sadd.s32 4294967295, %s1771_s12   ;;  %p1587_p0 = scmp.ge.s32.totalorder %s1771_s12, 1  ;;  %s1771_s12 = sphi %s1794_s12, %s13_s12  }
   0x2   : > { %p137_p1 = scmp.lt.s32.totalorder %s1771_s12, 3 }
   0x4   : > { %p138_p2 = pnand %p1587_p0, %p137_p1 }
   0x5   : > { %p161_p3 = scmp.lt.s32.totalorder (!%p138_p2), %s1583_s13, 1 }
   0x6   : > { %141 = sbr.rel (%p138_p2) target bundleno = 316 (0x13c), region = 32 }
   0xb   : > { %v1773_v0 = vmov 0   ;;  %v253_v1 = vld [vmem:[%s2040_s2] sm:$0xf]  ;;  %s2043_s13 = smov (!%p161_p3, %s1583_s13), 1  ;;  %vm663_vm0 = vcmask 1041408   ;;  %vm659_vm1 = vcmask 293888  }
   0xc   : > { %792 = vmatprep.mubr.bf16.mxu0 %v1773_v0  ;;  %833 = vmatprep.mubr.bf16.mxu1 %v1773_v0  ;;  %s1722_s16 = smul.u32 640, %s2043_s13  ;;  %v1839_v36 = vld [vmem:[%s2039_s1] sm:$0x3]  ;;  %s1721_s22 = sshll.u32 %s2043_s13, 7 }
   0xd   : > { %1732 = vset.pattern.permute.xlu0 %v1773_v0  ;;  %s1989_s25 = scalar_lea.vmem %s2041_s3, %s1721_s22 }
   0xe   : > { %256 = vperm.xlu0 %1732, %v253_v1   ;;  %s1814_s19 = scalar_lea.vmem %s2038_s0, %s1722_s16 }
   0xf   : > { %v237_v2 = vld [vmem:[%s1814_s19 + $0x200] sm:$0x33]  ;;  %v238_v3 = vld [vmem:[%s1814_s19 + $0x208] sm:$0x33]  ;;  %v239_v24 = vld [vmem:[%s1814_s19 + $0x210] sm:$0x33] }
  0x10   : > { %v205_v4 = vld [vmem:[%s1814_s19 + $0x100] sm:$0xff]  ;;  %v1656_v5 = vcombine.high %v237_v2, %v237_v2  ;;  %v1658_v6 = vcombine.high %v238_v3, %v238_v3  ;;  %v1655_v7 = vcombine.low %v237_v2, %v237_v2  ;;  %v1657_v8 = vcombine.low %v238_v3, %v238_v3  ;;  %v206_v10 = vld [vmem:[%s1814_s19 + $0x108] sm:$0xff]  ;;  %v240_v25 = vld [vmem:[%s1814_s19 + $0x218] sm:$0x33] }
  0x11   : > { %v221_v9 = vld [vmem:[%s1814_s19 + $0x180] sm:$0xff]  ;;  %v222_v11 = vld [vmem:[%s1814_s19 + $0x188] sm:$0xff]  ;;  %v1660_v28 = vcombine.high %v239_v24, %v239_v24  ;;  %v1662_v29 = vcombine.high %v240_v25, %v240_v25  ;;  %v1659_v30 = vcombine.low %v239_v24, %v239_v24  ;;  %v1661_v31 = vcombine.low %v240_v25, %v240_v25  ;;  %v207_v32 = vld [vmem:[%s1814_s19 + $0x110] sm:$0xff] }
  0x12   : > { %v1624_v12 = vcombine.high %v205_v4, %v221_v9  ;;  %v1626_v13 = vcombine.high %v206_v10, %v222_v11  ;;  %v173_v14 = vld [vmem:[%s1814_s19] sm:$0xff]  ;;  %v174_v16 = vld [vmem:[%s1814_s19 + $0x8] sm:$0xff]  ;;  %1687 = vmatprep.subr.msk.bf16.mxu0 %vm663_vm0, %v1656_v5  ;;  %1689 = vmatprep.subr.msk.bf16.mxu1 %vm663_vm0, %v1658_v6  ;;  %v665_v17 = vsel %vm663_vm0, %v1655_v7, 0  ;;  %v671_v18 = vsel %vm663_vm0, %v1657_v8, 0  ;;  %v223_v33 = vld [vmem:[%s1814_s19 + $0x190] sm:$0xff] }
  0x13   : > { %v189_v15 = vld [vmem:[%s1814_s19 + $0x80] sm:$0xff]  ;;  %v190_v19 = vld [vmem:[%s1814_s19 + $0x88] sm:$0xff]  ;;  %771 = vmatpush1.bf16.msra.mxu0 %v665_v17  ;;  %812 = vmatpush1.bf16.msra.mxu1 %v671_v18  ;;  %v1623_v20 = vcombine.low %v205_v4, %v221_v9  ;;  %v1625_v21 = vcombine.low %v206_v10, %v222_v11  ;;  %v208_v34 = vld [vmem:[%s1814_s19 + $0x118] sm:$0xff]  ;;  %v677_v37 = vsel %vm663_vm0, %v1659_v30, 0  ;;  %v683_v38 = vsel %vm663_vm0, %v1661_v31, 0 }
  0x14   : > { %772 = vmatprep.subr.bf16.mxu0 %v1624_v12  ;;  %813 = vmatprep.subr.bf16.mxu1 %v1626_v13  ;;  %v1592_v22 = vcombine.high %v173_v14, %v189_v15  ;;  %v1594_v23 = vcombine.high %v174_v16, %v190_v19  ;;  %v1591_v26 = vcombine.low %v173_v14, %v189_v15  ;;  %v224_v35 = vld [vmem:[%s1814_s19 + $0x198] sm:$0xff]  ;;  %v175_v41 = vld [vmem:[%s1814_s19 + $0x10] sm:$0xff]  ;;  %v241_v49 = vld [vmem:[%s1814_s19 + $0x220] sm:$0x33] }
  0x15   : > { %v1593_v27 = vcombine.low %v174_v16, %v190_v19  ;;  %v1628_v39 = vcombine.high %v207_v32, %v223_v33  ;;  %v1630_v40 = vcombine.high %v208_v34, %v224_v35  ;;  %v191_v42 = vld [vmem:[%s1814_s19 + $0x90] sm:$0xff]  ;;  %v176_v43 = vld [vmem:[%s1814_s19 + $0x18] sm:$0xff]  ;;  %v1627_v45 = vcombine.low %v207_v32, %v223_v33  ;;  %v242_v50 = vld [vmem:[%s1814_s19 + $0x228] sm:$0x33] }
  0x16   : > { %v192_v44 = vld [vmem:[%s1814_s19 + $0x98] sm:$0xff]  ;;  %v1629_v46 = vcombine.low %v208_v34, %v224_v35  ;;  %v1596_v47 = vcombine.high %v175_v41, %v191_v42  ;;  %v1595_v51 = vcombine.low %v175_v41, %v191_v42  ;;  %v1664_v53 = vcombine.high %v241_v49, %v241_v49  ;;  %v209_v57 = vld [vmem:[%s1814_s19 + $0x120] sm:$0xff]  ;;  %v210_v59 = vld [vmem:[%s1814_s19 + $0x128] sm:$0xff] }
  0x17   : > { %773 = vmatpush1.bf16.msra.mxu0 %v1623_v20  ;;  %814 = vmatpush1.bf16.msra.mxu1 %v1625_v21  ;;  %v1598_v48 = vcombine.high %v176_v43, %v192_v44  ;;  %v1597_v52 = vcombine.low %v176_v43, %v192_v44  ;;  %v1666_v54 = vcombine.high %v242_v50, %v242_v50  ;;  %v225_v58 = vld [vmem:[%s1814_s19 + $0x1a0] sm:$0xff]  ;;  %v226_v60 = vld [vmem:[%s1814_s19 + $0x1a8] sm:$0xff]  ;;  %v243_v10 = vld [vmem:[%s1814_s19 + $0x230] sm:$0x33] }
  0x18   : > { %774 = vmatprep.subr.bf16.mxu0 %v1592_v22  ;;  %815 = vmatprep.subr.bf16.mxu1 %v1594_v23  ;;  %v1663_v55 = vcombine.low %v241_v49, %v241_v49  ;;  %v1665_v56 = vcombine.low %v242_v50, %v242_v50  ;;  %v1632_v63 = vcombine.high %v209_v57, %v225_v58  ;;  %v177_v2 = vld [vmem:[%s1814_s19 + $0x20] sm:$0xff]  ;;  %v178_v4 = vld [vmem:[%s1814_s19 + $0x28] sm:$0xff]  ;;  %v244_v11 = vld [vmem:[%s1814_s19 + $0x238] sm:$0x33] }
  0x19   : > { %v1634_v1 = vcombine.high %v210_v59, %v226_v60  ;;  %v193_v3 = vld [vmem:[%s1814_s19 + $0xa0] sm:$0xff]  ;;  %v194_v5 = vld [vmem:[%s1814_s19 + $0xa8] sm:$0xff]  ;;  %v1631_v6 = vcombine.low %v209_v57, %v225_v58  ;;  %v1633_v7 = vcombine.low %v210_v59, %v226_v60  ;;  %v1668_v14 = vcombine.high %v243_v10, %v243_v10  ;;  %v211_v18 = vld [vmem:[%s1814_s19 + $0x130] sm:$0xff] }
  0x1a   : > { %v689_v61 = vsel %vm663_vm0, %v1663_v55, 0  ;;  %v695_v62 = vsel %vm663_vm0, %v1665_v56, 0  ;;  %v1600_v8 = vcombine.high %v177_v2, %v193_v3  ;;  %v1602_v9 = vcombine.high %v178_v4, %v194_v5  ;;  %v227_v19 = vld [vmem:[%s1814_s19 + $0x1b0] sm:$0xff]  ;;  %v212_v20 = vld [vmem:[%s1814_s19 + $0x138] sm:$0xff]  ;;  %v245_v34 = vld [vmem:[%s1814_s19 + $0x240] sm:$0x33] }
  0x1b   : > { %775 = vmatpush1.bf16.msra.mxu0 %v1591_v26  ;;  %816 = vmatpush1.bf16.msra.mxu1 %v1593_v27  ;;  %v1599_v12 = vcombine.low %v177_v2, %v193_v3  ;;  %v1601_v13 = vcombine.low %v178_v4, %v194_v5  ;;  %v1670_v15 = vcombine.high %v244_v11, %v244_v11  ;;  %v228_v21 = vld [vmem:[%s1814_s19 + $0x1b8] sm:$0xff]  ;;  %v179_v26 = vld [vmem:[%s1814_s19 + $0x30] sm:$0xff]  ;;  %v246_v35 = vld [vmem:[%s1814_s19 + $0x248] sm:$0x33] }
  0x1c   : > { %1691 = vmatprep.subr.msk.bf16.mxu0 %vm663_vm0, %v1660_v28  ;;  %1693 = vmatprep.subr.msk.bf16.mxu1 %vm663_vm0, %v1662_v29  ;;  %v1667_v16 = vcombine.low %v243_v10, %v243_v10  ;;  %v1669_v17 = vcombine.low %v244_v11, %v244_v11  ;;  %v1636_v24 = vcombine.high %v211_v18, %v227_v19  ;;  %v195_v27 = vld [vmem:[%s1814_s19 + $0xb0] sm:$0xff]  ;;  %v180_v28 = vld [vmem:[%s1814_s19 + $0x38] sm:$0xff]  ;;  %v213_v43 = vld [vmem:[%s1814_s19 + $0x140] sm:$0xff] }
  0x1d   : > { %v1638_v25 = vcombine.high %v212_v20, %v228_v21  ;;  %v196_v29 = vld [vmem:[%s1814_s19 + $0xb8] sm:$0xff]  ;;  %v1635_v30 = vcombine.low %v211_v18, %v227_v19  ;;  %v1637_v31 = vcombine.low %v212_v20, %v228_v21  ;;  %v1604_v32 = vcombine.high %v179_v26, %v195_v27  ;;  %v229_v44 = vld [vmem:[%s1814_s19 + $0x1c0] sm:$0xff]  ;;  %v247_v59 = vld [vmem:[%s1814_s19 + $0x250] sm:$0x33] }
  0x1e   : > { %1688 = vmatmul.mubr.msk.bf16.vlgmr.msra.gmra.mxu0 %vm659_vm1, %v1839_v36  ;;  %1690 = vmatmul.mubr.msk.bf16.vlgmr.msra.gmra.mxu1 %vm659_vm1, %v1839_v36  ;;  %v701_v22 = vsel %vm663_vm0, %v1667_v16, 0  ;;  %v707_v23 = vsel %vm663_vm0, %v1669_v17, 0  ;;  %v1606_v33 = vcombine.high %v180_v28, %v196_v29  ;;  %v1671_v41 = vcombine.low %v245_v34, %v245_v34  ;;  %v248_v60 = vld [vmem:[%s1814_s19 + $0x258] sm:$0x33]  ;;  %v215_v4 = vld [vmem:[%s1814_s19 + $0x150] sm:$0xff] }
  0x1f   : > { %853 = vmatpush1.bf16.msra.mxu0 %v677_v37  ;;  %894 = vmatpush1.bf16.msra.mxu1 %v683_v38  ;;  %v1603_v37 = vcombine.low %v179_v26, %v195_v27  ;;  %v1605_v38 = vcombine.low %v180_v28, %v196_v29  ;;  %v1673_v42 = vcombine.low %v246_v35, %v246_v35  ;;  %v231_v5 = vld [vmem:[%s1814_s19 + $0x1d0] sm:$0xff]  ;;  %v249_v20 = vld [vmem:[%s1814_s19 + $0x260] sm:$0x33]  ;;  %v250_v21 = vld [vmem:[%s1814_s19 + $0x268] sm:$0x33] }
  0x20   : > { %854 = vmatprep.subr.bf16.mxu0 %v1628_v39  ;;  %895 = vmatprep.subr.bf16.mxu1 %v1630_v40  ;;  %v1672_v39 = vcombine.high %v245_v34, %v245_v34  ;;  %v1674_v40 = vcombine.high %v246_v35, %v246_v35  ;;  %v1640_v49 = vcombine.high %v213_v43, %v229_v44  ;;  %v217_v28 = vld [vmem:[%s1814_s19 + $0x160] sm:$0xff] }
  0x21   : > { %874 = vmatprep.mubr.bf16.mxu0 %v1773_v0  ;;  %915 = vmatprep.mubr.bf16.mxu1 %v1773_v0  ;;  %v1639_v55 = vcombine.low %v213_v43, %v229_v44  ;;  %v1675_v2 = vcombine.low %v247_v59, %v247_v59  ;;  %v1677_v3 = vcombine.low %v248_v60, %v248_v60  ;;  %v233_v29 = vld [vmem:[%s1814_s19 + $0x1e0] sm:$0xff] }
  0x22   : > { %v1644_v10 = vcombine.high %v215_v4, %v231_v5  ;;  %v1643_v16 = vcombine.low %v215_v4, %v231_v5  ;;  %v1679_v26 = vcombine.low %v249_v20, %v249_v20  ;;  %v1681_v27 = vcombine.low %v250_v21, %v250_v21 }
  0x23   : > { %855 = vmatpush1.bf16.msra.mxu0 %v1627_v45  ;;  %896 = vmatpush1.bf16.msra.mxu1 %v1629_v46  ;;  %v214_v45 = vld [vmem:[%s1814_s19 + $0x148] sm:$0xff]  ;;  %v1648_v34 = vcombine.high %v217_v28, %v233_v29 }
  0x24   : > { %856 = vmatprep.subr.bf16.mxu0 %v1596_v47  ;;  %897 = vmatprep.subr.bf16.mxu1 %v1598_v48  ;;  %v230_v46 = vld [vmem:[%s1814_s19 + $0x1c8] sm:$0xff]  ;;  %v713_v47 = vsel %vm663_vm0, %v1671_v41, 0  ;;  %v719_v48 = vsel %vm663_vm0, %v1673_v42, 0  ;;  %v1647_v41 = vcombine.low %v217_v28, %v233_v29 }
  0x25   : > { %v1642_v50 = vcombine.high %v214_v45, %v230_v46  ;;  %v1641_v56 = vcombine.low %v214_v45, %v230_v46  ;;  %v251_v45 = vld [vmem:[%s1814_s19 + $0x270] sm:$0x33]  ;;  %v252_v46 = vld [vmem:[%s1814_s19 + $0x278] sm:$0x33] }
  0x27   : > { %857 = vmatpush1.bf16.msra.mxu0 %v1595_v51  ;;  %898 = vmatpush1.bf16.msra.mxu1 %v1597_v52  ;;  %v181_v51 = vld [vmem:[%s1814_s19 + $0x40] sm:$0xff] }
  0x28   : > { %1695 = vmatprep.subr.msk.bf16.mxu0 %vm663_vm0, %v1664_v53  ;;  %1697 = vmatprep.subr.msk.bf16.mxu1 %vm663_vm0, %v1666_v54  ;;  %v197_v52 = vld [vmem:[%s1814_s19 + $0xc0] sm:$0xff]  ;;  %v182_v53 = vld [vmem:[%s1814_s19 + $0x48] sm:$0xff] }
  0x29   : > { %v198_v54 = vld [vmem:[%s1814_s19 + $0xc8] sm:$0xff]  ;;  %v1608_v57 = vcombine.high %v181_v51, %v197_v52 }
  0x2a   : > { %1692 = vmatmul.mubr.msk.bf16.vlgmr.msra.gmra.mxu0 %vm659_vm1, %v1839_v36  ;;  %1694 = vmatmul.mubr.msk.bf16.vlgmr.msra.gmra.mxu1 %vm659_vm1, %v1839_v36  ;;  %v1610_v58 = vcombine.high %v182_v53, %v198_v54 }
  0x2b   : > { %935 = vmatpush1.bf16.msra.mxu0 %v689_v61  ;;  %976 = vmatpush1.bf16.msra.mxu1 %v695_v62  ;;  %v1607_v61 = vcombine.low %v181_v51, %v197_v52  ;;  %v1609_v62 = vcombine.low %v182_v53, %v198_v54  ;;  %v1683_v51 = vcombine.low %v251_v45, %v251_v45  ;;  %v219_v53 = vld [vmem:[%s1814_s19 + $0x170] sm:$0xff] }
  0x2c   : > { %936 = vmatprep.subr.bf16.mxu0 %v1632_v63  ;;  %977 = vmatprep.subr.bf16.mxu1 %v1634_v1  ;;  %v1676_v63 = vcombine.high %v247_v59, %v247_v59  ;;  %v1678_v1 = vcombine.high %v248_v60, %v248_v60  ;;  %v1685_v52 = vcombine.low %v252_v46, %v252_v46  ;;  %v235_v54 = vld [vmem:[%s1814_s19 + $0x1f0] sm:$0xff] }
  0x2d   : > { %956 = vmatprep.mubr.bf16.mxu0 %v1773_v0  ;;  %997 = vmatprep.mubr.bf16.mxu1 %v1773_v0  ;;  %v1652_v59 = vcombine.high %v219_v53, %v235_v54 }
  0x2f   : > { %937 = vmatpush1.bf16.msra.mxu0 %v1631_v6  ;;  %978 = vmatpush1.bf16.msra.mxu1 %v1633_v7  ;;  %v216_v6 = vld [vmem:[%s1814_s19 + $0x158] sm:$0xff] }
  0x30   : > { %938 = vmatprep.subr.bf16.mxu0 %v1600_v8  ;;  %979 = vmatprep.subr.bf16.mxu1 %v1602_v9  ;;  %v232_v7 = vld [vmem:[%s1814_s19 + $0x1d8] sm:$0xff]  ;;  %v725_v8 = vsel %vm663_vm0, %v1675_v2, 0  ;;  %v731_v9 = vsel %vm663_vm0, %v1677_v3, 0  ;;  %v1651_v2 = vcombine.low %v219_v53, %v235_v54 }
  0x31   : > { %v1646_v11 = vcombine.high %v216_v6, %v232_v7  ;;  %v1645_v17 = vcombine.low %v216_v6, %v232_v7 }
  0x33   : > { %939 = vmatpush1.bf16.msra.mxu0 %v1599_v12  ;;  %980 = vmatpush1.bf16.msra.mxu1 %v1601_v13  ;;  %v183_v12 = vld [vmem:[%s1814_s19 + $0x50] sm:$0xff] }
  0x34   : > { %1699 = vmatprep.subr.msk.bf16.mxu0 %vm663_vm0, %v1668_v14  ;;  %1701 = vmatprep.subr.msk.bf16.mxu1 %vm663_vm0, %v1670_v15  ;;  %v199_v13 = vld [vmem:[%s1814_s19 + $0xd0] sm:$0xff]  ;;  %v184_v14 = vld [vmem:[%s1814_s19 + $0x58] sm:$0xff] }
  0x35   : > { %v200_v15 = vld [vmem:[%s1814_s19 + $0xd8] sm:$0xff]  ;;  %v1612_v18 = vcombine.high %v183_v12, %v199_v13 }
  0x36   : > { %1696 = vmatmul.mubr.msk.bf16.vlgmr.msra.gmra.mxu0 %vm659_vm1, %v1839_v36  ;;  %1698 = vmatmul.mubr.msk.bf16.vlgmr.msra.gmra.mxu1 %vm659_vm1, %v1839_v36  ;;  %v1614_v19 = vcombine.high %v184_v14, %v200_v15 }
  0x37   : > { %1017 = vmatpush1.bf16.msra.mxu0 %v701_v22  ;;  %1058 = vmatpush1.bf16.msra.mxu1 %v707_v23  ;;  %v1611_v22 = vcombine.low %v183_v12, %v199_v13  ;;  %v1613_v23 = vcombine.low %v184_v14, %v200_v15 }
  0x38   : > { %1018 = vmatprep.subr.bf16.mxu0 %v1636_v24  ;;  %1059 = vmatprep.subr.bf16.mxu1 %v1638_v25  ;;  %v1680_v24 = vcombine.high %v249_v20, %v249_v20  ;;  %v1682_v25 = vcombine.high %v250_v21, %v250_v21 }
  0x39   : > { %1038 = vmatprep.mubr.bf16.mxu0 %v1773_v0  ;;  %1079 = vmatprep.mubr.bf16.mxu1 %v1773_v0 }
  0x3b   : > { %1019 = vmatpush1.bf16.msra.mxu0 %v1635_v30  ;;  %1060 = vmatpush1.bf16.msra.mxu1 %v1637_v31  ;;  %v218_v30 = vld [vmem:[%s1814_s19 + $0x168] sm:$0xff] }
  0x3c   : > { %1020 = vmatprep.subr.bf16.mxu0 %v1604_v32  ;;  %1061 = vmatprep.subr.bf16.mxu1 %v1606_v33  ;;  %v234_v31 = vld [vmem:[%s1814_s19 + $0x1e8] sm:$0xff]  ;;  %v737_v32 = vsel %vm663_vm0, %v1679_v26, 0  ;;  %v743_v33 = vsel %vm663_vm0, %v1681_v27, 0 }
  0x3d   : > { %v1650_v35 = vcombine.high %v218_v30, %v234_v31  ;;  %v1649_v42 = vcombine.low %v218_v30, %v234_v31 }
  0x3f   : > { %1021 = vmatpush1.bf16.msra.mxu0 %v1603_v37  ;;  %1062 = vmatpush1.bf16.msra.mxu1 %v1605_v38  ;;  %v185_v37 = vld [vmem:[%s1814_s19 + $0x60] sm:$0xff] }
  0x40   : > { %1703 = vmatprep.subr.msk.bf16.mxu0 %vm663_vm0, %v1672_v39  ;;  %1705 = vmatprep.subr.msk.bf16.mxu1 %vm663_vm0, %v1674_v40  ;;  %v201_v38 = vld [vmem:[%s1814_s19 + $0xe0] sm:$0xff]  ;;  %v186_v39 = vld [vmem:[%s1814_s19 + $0x68] sm:$0xff] }
  0x41   : > { %v202_v40 = vld [vmem:[%s1814_s19 + $0xe8] sm:$0xff]  ;;  %v1616_v43 = vcombine.high %v185_v37, %v201_v38 }
  0x42   : > { %1700 = vmatmul.mubr.msk.bf16.vlgmr.msra.gmra.mxu0 %vm659_vm1, %v1839_v36  ;;  %1702 = vmatmul.mubr.msk.bf16.vlgmr.msra.gmra.mxu1 %vm659_vm1, %v1839_v36  ;;  %v1618_v44 = vcombine.high %v186_v39, %v202_v40 }
  0x43   : > { %1099 = vmatpush1.bf16.msra.mxu0 %v713_v47  ;;  %1140 = vmatpush1.bf16.msra.mxu1 %v719_v48  ;;  %v1615_v47 = vcombine.low %v185_v37, %v201_v38  ;;  %v1617_v48 = vcombine.low %v186_v39, %v202_v40 }
  0x44   : > { %1100 = vmatprep.subr.bf16.mxu0 %v1640_v49  ;;  %1141 = vmatprep.subr.bf16.mxu1 %v1642_v50  ;;  %v1684_v49 = vcombine.high %v251_v45, %v251_v45  ;;  %v1686_v50 = vcombine.high %v252_v46, %v252_v46 }
  0x45   : > { %1120 = vmatprep.mubr.bf16.mxu0 %v1773_v0  ;;  %1161 = vmatprep.mubr.bf16.mxu1 %v1773_v0 }
  0x47   : > { %1101 = vmatpush1.bf16.msra.mxu0 %v1639_v55  ;;  %1142 = vmatpush1.bf16.msra.mxu1 %v1641_v56  ;;  %v220_v55 = vld [vmem:[%s1814_s19 + $0x178] sm:$0xff] }
  0x48   : > { %1102 = vmatprep.subr.bf16.mxu0 %v1608_v57  ;;  %1143 = vmatprep.subr.bf16.mxu1 %v1610_v58  ;;  %v236_v56 = vld [vmem:[%s1814_s19 + $0x1f8] sm:$0xff]  ;;  %v749_v57 = vsel %vm663_vm0, %v1683_v51, 0  ;;  %v755_v58 = vsel %vm663_vm0, %v1685_v52, 0 }
  0x49   : > { %v1654_v60 = vcombine.high %v220_v55, %v236_v56  ;;  %v1653_v3 = vcombine.low %v220_v55, %v236_v56 }
  0x4b   : > { %1103 = vmatpush1.bf16.msra.mxu0 %v1607_v61  ;;  %1144 = vmatpush1.bf16.msra.mxu1 %v1609_v62  ;;  %v187_v61 = vld [vmem:[%s1814_s19 + $0x70] sm:$0xff] }
  0x4c   : > { %1707 = vmatprep.subr.msk.bf16.mxu0 %vm663_vm0, %v1676_v63  ;;  %1709 = vmatprep.subr.msk.bf16.mxu1 %vm663_vm0, %v1678_v1  ;;  %v203_v62 = vld [vmem:[%s1814_s19 + $0xf0] sm:$0xff]  ;;  %v188_v63 = vld [vmem:[%s1814_s19 + $0x78] sm:$0xff] }
  0x4d   : > { %v204_v1 = vld [vmem:[%s1814_s19 + $0xf8] sm:$0xff]  ;;  %v1620_v4 = vcombine.high %v187_v61, %v203_v62  ;;  %v1619_v6 = vcombine.low %v187_v61, %v203_v62 }
  0x4e   : > { %1704 = vmatmul.mubr.msk.bf16.vlgmr.msra.gmra.mxu0 %vm659_vm1, %v1839_v36  ;;  %1706 = vmatmul.mubr.msk.bf16.vlgmr.msra.gmra.mxu1 %vm659_vm1, %v1839_v36  ;;  %v1622_v5 = vcombine.high %v188_v63, %v204_v1  ;;  %v1621_v7 = vcombine.low %v188_v63, %v204_v1 }
  0x4f   : > { %1181 = vmatpush1.bf16.msra.mxu0 %v725_v8  ;;  %1222 = vmatpush1.bf16.msra.mxu1 %v731_v9 }
  0x50   : > { %1182 = vmatprep.subr.bf16.mxu0 %v1644_v10  ;;  %1223 = vmatprep.subr.bf16.mxu1 %v1646_v11 }
  0x51   : > { %1202 = vmatprep.mubr.bf16.mxu0 %v1773_v0  ;;  %1243 = vmatprep.mubr.bf16.mxu1 %v1773_v0 }
  0x53   : > { %1183 = vmatpush1.bf16.msra.mxu0 %v1643_v16  ;;  %1224 = vmatpush1.bf16.msra.mxu1 %v1645_v17 }
  0x54   : > { %1184 = vmatprep.subr.bf16.mxu0 %v1612_v18  ;;  %1225 = vmatprep.subr.bf16.mxu1 %v1614_v19 }
  0x57   : > { %1185 = vmatpush1.bf16.msra.mxu0 %v1611_v22  ;;  %1226 = vmatpush1.bf16.msra.mxu1 %v1613_v23 }
  0x58   : > { %1711 = vmatprep.subr.msk.bf16.mxu0 %vm663_vm0, %v1680_v24  ;;  %1713 = vmatprep.subr.msk.bf16.mxu1 %vm663_vm0, %v1682_v25 }
  0x5a   : > { %1708 = vmatmul.mubr.msk.bf16.vlgmr.msra.gmra.mxu0 %vm659_vm1, %v1839_v36  ;;  %1710 = vmatmul.mubr.msk.bf16.vlgmr.msra.gmra.mxu1 %vm659_vm1, %v1839_v36 }
  0x5b   : > { %1263 = vmatpush1.bf16.msra.mxu0 %v737_v32  ;;  %1304 = vmatpush1.bf16.msra.mxu1 %v743_v33 }
  0x5c   : > { %1264 = vmatprep.subr.bf16.mxu0 %v1648_v34  ;;  %1305 = vmatprep.subr.bf16.mxu1 %v1650_v35 }
  0x5d   : > { %1284 = vmatprep.mubr.bf16.mxu0 %v1773_v0  ;;  %1325 = vmatprep.mubr.bf16.mxu1 %v1773_v0 }
  0x5f   : > { %1265 = vmatpush1.bf16.msra.mxu0 %v1647_v41  ;;  %1306 = vmatpush1.bf16.msra.mxu1 %v1649_v42 }
  0x60   : > { %1266 = vmatprep.subr.bf16.mxu0 %v1616_v43  ;;  %1307 = vmatprep.subr.bf16.mxu1 %v1618_v44 }
  0x63   : > { %1267 = vmatpush1.bf16.msra.mxu0 %v1615_v47  ;;  %1308 = vmatpush1.bf16.msra.mxu1 %v1617_v48 }
  0x64   : > { %1715 = vmatprep.subr.msk.bf16.mxu0 %vm663_vm0, %v1684_v49  ;;  %1717 = vmatprep.subr.msk.bf16.mxu1 %vm663_vm0, %v1686_v50 }
  0x66   : > { %1712 = vmatmul.mubr.msk.bf16.vlgmr.msra.gmra.mxu0 %vm659_vm1, %v1839_v36  ;;  %1714 = vmatmul.mubr.msk.bf16.vlgmr.msra.gmra.mxu1 %vm659_vm1, %v1839_v36 }
  0x67   : > { %1345 = vmatpush1.bf16.msra.mxu0 %v749_v57  ;;  %1386 = vmatpush1.bf16.msra.mxu1 %v755_v58 }
  0x68   : > { %1346 = vmatprep.subr.bf16.mxu0 %v1652_v59  ;;  %1387 = vmatprep.subr.bf16.mxu1 %v1654_v60 }
  0x69   : > { %1366 = vmatprep.mubr.bf16.mxu0 %v1773_v0  ;;  %1407 = vmatprep.mubr.bf16.mxu1 %v1773_v0 }
  0x6b   : > { %1347 = vmatpush1.bf16.msra.mxu0 %v1651_v2  ;;  %1388 = vmatpush1.bf16.msra.mxu1 %v1653_v3 }
  0x6c   : > { %1348 = vmatprep.subr.bf16.mxu0 %v1620_v4  ;;  %1389 = vmatprep.subr.bf16.mxu1 %v1622_v5 }
  0x6f   : > { %1349 = vmatpush1.bf16.msra.mxu0 %v1619_v6  ;;  %1390 = vmatpush1.bf16.msra.mxu1 %v1621_v7 }
  0x72   : > { %1716 = vmatmul.mubr.msk.bf16.vlgmr.msra.gmra.mxu0 %vm659_vm1, %v1839_v36  ;;  %1718 = vmatmul.mubr.msk.bf16.vlgmr.msra.gmra.mxu1 %vm659_vm1, %v1839_v36 }
  0x89   : > { %v1979_v8 = vpop.permute.xlu0 %256 }
  0xde   : > { %v794_v9 = vpop.f32.mrf.mxu0  ;;  %v835_v10 = vpop.f32.mrf.mxu1 }
  0xdf   : > { %v795_v0 = vadd.f32 %v794_v9, %v1979_v8  ;;  %v836_v11 = vadd.f32 %v835_v10, %v1979_v8 }
  0xe0   : > { %v796_v12 = vpop.f32.mrf.mxu0  ;;  %v837_v13 = vpop.f32.mrf.mxu1 }
  0xe1   : > { %v797_v14 = vadd.f32 %v796_v12, %v1979_v8  ;;  %v1416_v15 = vmax.f32 %v795_v0, 0.0  ;;  %v838_v16 = vadd.f32 %v837_v13, %v1979_v8  ;;  %v1418_v17 = vmax.f32 %v836_v11, 0.0 }
  0xe2   : > { %v798_v18 = vpop.f32.mrf.mxu0  ;;  %v839_v19 = vpop.f32.mrf.mxu1 }
  0xe3   : > { %v1417_v36 = vmax.f32 %v797_v14, 0.0  ;;  %v1419_v20 = vmax.f32 %v838_v16, 0.0 }
  0xe4   : > { %v799_v21 = vpop.f32.mrf.mxu0  ;;  %v840_v22 = vpop.f32.mrf.mxu1 }
  0xe5   : > { %v1480_v23 = vcombine.low %v1416_v15, %v1417_v36  ;;  %v1481_v24 = vcombine.low %v1418_v17, %v1419_v20 }
  0xe7   : > { %1512 = vst [vmem:[%s1989_s25] sm:$0xff] %v1480_v23  ;;  %1513 = vst [vmem:[%s1989_s25 + $0x8] sm:$0xff] %v1481_v24 }
  0xea   : > { %v876_v25 = vpop.f32.mrf.mxu0  ;;  %v917_v26 = vpop.f32.mrf.mxu1 }
  0xeb   : > { %v877_v27 = vadd.f32 %v876_v25, %v1979_v8  ;;  %v918_v28 = vadd.f32 %v917_v26, %v1979_v8 }
  0xec   : > { %v878_v29 = vpop.f32.mrf.mxu0  ;;  %v919_v30 = vpop.f32.mrf.mxu1 }
  0xed   : > { %v1420_v31 = vmax.f32 %v877_v27, 0.0  ;;  %v1422_v32 = vmax.f32 %v918_v28, 0.0  ;;  %v879_v33 = vadd.f32 %v878_v29, %v1979_v8  ;;  %v920_v34 = vadd.f32 %v919_v30, %v1979_v8 }
  0xee   : > { %v880_v35 = vpop.f32.mrf.mxu0  ;;  %v921_v37 = vpop.f32.mrf.mxu1 }
  0xef   : > { %v1421_v38 = vmax.f32 %v879_v33, 0.0  ;;  %v1423_v39 = vmax.f32 %v920_v34, 0.0 }
  0xf0   : > { %v881_v40 = vpop.f32.mrf.mxu0  ;;  %v922_v41 = vpop.f32.mrf.mxu1 }
  0xf1   : > { %v1482_v42 = vcombine.low %v1420_v31, %v1421_v38  ;;  %v1483_v43 = vcombine.low %v1422_v32, %v1423_v39 }
  0xf3   : > { %1514 = vst [vmem:[%s1989_s25 + $0x10] sm:$0xff] %v1482_v42  ;;  %1515 = vst [vmem:[%s1989_s25 + $0x18] sm:$0xff] %v1483_v43 }
  0xf6   : > { %v958_v44 = vpop.f32.mrf.mxu0  ;;  %v999_v45 = vpop.f32.mrf.mxu1 }
  0xf7   : > { %v959_v46 = vadd.f32 %v958_v44, %v1979_v8  ;;  %v1000_v47 = vadd.f32 %v999_v45, %v1979_v8 }
  0xf8   : > { %v960_v48 = vpop.f32.mrf.mxu0  ;;  %v1001_v49 = vpop.f32.mrf.mxu1 }
  0xf9   : > { %v1424_v50 = vmax.f32 %v959_v46, 0.0  ;;  %v1426_v51 = vmax.f32 %v1000_v47, 0.0  ;;  %v961_v52 = vadd.f32 %v960_v48, %v1979_v8  ;;  %v1002_v53 = vadd.f32 %v1001_v49, %v1979_v8 }
  0xfa   : > { %v962_v54 = vpop.f32.mrf.mxu0  ;;  %v1003_v55 = vpop.f32.mrf.mxu1 }
  0xfb   : > { %v1425_v56 = vmax.f32 %v961_v52, 0.0  ;;  %v1427_v57 = vmax.f32 %v1002_v53, 0.0 }
  0xfc   : > { %v963_v58 = vpop.f32.mrf.mxu0  ;;  %v1004_v59 = vpop.f32.mrf.mxu1 }
  0xfd   : > { %v1484_v60 = vcombine.low %v1424_v50, %v1425_v56  ;;  %v1485_v61 = vcombine.low %v1426_v51, %v1427_v57 }
  0xff   : > { %1516 = vst [vmem:[%s1989_s25 + $0x20] sm:$0xff] %v1484_v60  ;;  %1517 = vst [vmem:[%s1989_s25 + $0x28] sm:$0xff] %v1485_v61 }
 0x102   : > { %v1040_v62 = vpop.f32.mrf.mxu0  ;;  %v1081_v63 = vpop.f32.mrf.mxu1 }
 0x103   : > { %v1041_v1 = vadd.f32 %v1040_v62, %v1979_v8  ;;  %v1082_v2 = vadd.f32 %v1081_v63, %v1979_v8 }
 0x104   : > { %v1042_v3 = vpop.f32.mrf.mxu0  ;;  %v1083_v4 = vpop.f32.mrf.mxu1 }
 0x105   : > { %v1428_v5 = vmax.f32 %v1041_v1, 0.0  ;;  %v1430_v6 = vmax.f32 %v1082_v2, 0.0  ;;  %v1043_v7 = vadd.f32 %v1042_v3, %v1979_v8  ;;  %v1084_v9 = vadd.f32 %v1083_v4, %v1979_v8 }
 0x106   : > { %v1044_v10 = vpop.f32.mrf.mxu0  ;;  %v1085_v0 = vpop.f32.mrf.mxu1 }
 0x107   : > { %v1429_v11 = vmax.f32 %v1043_v7, 0.0  ;;  %v1431_v12 = vmax.f32 %v1084_v9, 0.0 }
 0x108   : > { %v1045_v13 = vpop.f32.mrf.mxu0  ;;  %v1086_v14 = vpop.f32.mrf.mxu1 }
 0x109   : > { %v1486_v15 = vcombine.low %v1428_v5, %v1429_v11  ;;  %v1487_v16 = vcombine.low %v1430_v6, %v1431_v12 }
 0x10b   : > { %1518 = vst [vmem:[%s1989_s25 + $0x30] sm:$0xff] %v1486_v15  ;;  %1519 = vst [vmem:[%s1989_s25 + $0x38] sm:$0xff] %v1487_v16 }
 0x10e   : > { %v1122_v17 = vpop.f32.mrf.mxu0  ;;  %v1163_v18 = vpop.f32.mrf.mxu1 }
 0x10f   : > { %v1123_v19 = vadd.f32 %v1122_v17, %v1979_v8  ;;  %v1164_v36 = vadd.f32 %v1163_v18, %v1979_v8 }
 0x110   : > { %v1124_v20 = vpop.f32.mrf.mxu0  ;;  %v1165_v21 = vpop.f32.mrf.mxu1 }
 0x111   : > { %v1432_v22 = vmax.f32 %v1123_v19, 0.0  ;;  %v1434_v23 = vmax.f32 %v1164_v36, 0.0  ;;  %v1125_v24 = vadd.f32 %v1124_v20, %v1979_v8  ;;  %v1166_v25 = vadd.f32 %v1165_v21, %v1979_v8 }
 0x112   : > { %v1126_v26 = vpop.f32.mrf.mxu0  ;;  %v1167_v27 = vpop.f32.mrf.mxu1 }
 0x113   : > { %v1433_v28 = vmax.f32 %v1125_v24, 0.0  ;;  %v1435_v29 = vmax.f32 %v1166_v25, 0.0 }
 0x114   : > { %v1127_v30 = vpop.f32.mrf.mxu0  ;;  %v1168_v31 = vpop.f32.mrf.mxu1 }
 0x115   : > { %v1488_v32 = vcombine.low %v1432_v22, %v1433_v28  ;;  %v1489_v33 = vcombine.low %v1434_v23, %v1435_v29 }
 0x117   : > { %1520 = vst [vmem:[%s1989_s25 + $0x40] sm:$0xff] %v1488_v32  ;;  %1521 = vst [vmem:[%s1989_s25 + $0x48] sm:$0xff] %v1489_v33 }
 0x11a   : > { %v1204_v34 = vpop.f32.mrf.mxu0  ;;  %v1245_v35 = vpop.f32.mrf.mxu1 }
 0x11b   : > { %v1205_v37 = vadd.f32 %v1204_v34, %v1979_v8  ;;  %v1246_v38 = vadd.f32 %v1245_v35, %v1979_v8 }
 0x11c   : > { %v1206_v39 = vpop.f32.mrf.mxu0  ;;  %v1247_v40 = vpop.f32.mrf.mxu1 }
 0x11d   : > { %v1436_v41 = vmax.f32 %v1205_v37, 0.0  ;;  %v1438_v42 = vmax.f32 %v1246_v38, 0.0  ;;  %v1207_v43 = vadd.f32 %v1206_v39, %v1979_v8  ;;  %v1248_v44 = vadd.f32 %v1247_v40, %v1979_v8 }
 0x11e   : > { %v1208_v45 = vpop.f32.mrf.mxu0  ;;  %v1249_v46 = vpop.f32.mrf.mxu1 }
 0x11f   : > { %v1437_v47 = vmax.f32 %v1207_v43, 0.0  ;;  %v1439_v48 = vmax.f32 %v1248_v44, 0.0 }
 0x120   : > { %v1209_v49 = vpop.f32.mrf.mxu0  ;;  %v1250_v50 = vpop.f32.mrf.mxu1 }
 0x121   : > { %v1490_v51 = vcombine.low %v1436_v41, %v1437_v47  ;;  %v1491_v52 = vcombine.low %v1438_v42, %v1439_v48 }
 0x123   : > { %1522 = vst [vmem:[%s1989_s25 + $0x50] sm:$0xff] %v1490_v51  ;;  %1523 = vst [vmem:[%s1989_s25 + $0x58] sm:$0xff] %v1491_v52 }
 0x126   : > { %v1286_v53 = vpop.f32.mrf.mxu0  ;;  %v1327_v54 = vpop.f32.mrf.mxu1 }
 0x127   : > { %v1287_v55 = vadd.f32 %v1286_v53, %v1979_v8  ;;  %v1328_v56 = vadd.f32 %v1327_v54, %v1979_v8 }
 0x128   : > { %v1288_v57 = vpop.f32.mrf.mxu0  ;;  %v1329_v58 = vpop.f32.mrf.mxu1 }
 0x129   : > { %v1440_v59 = vmax.f32 %v1287_v55, 0.0  ;;  %v1442_v60 = vmax.f32 %v1328_v56, 0.0  ;;  %v1289_v61 = vadd.f32 %v1288_v57, %v1979_v8  ;;  %v1330_v62 = vadd.f32 %v1329_v58, %v1979_v8 }
 0x12a   : > { %v1290_v63 = vpop.f32.mrf.mxu0  ;;  %v1331_v1 = vpop.f32.mrf.mxu1 }
 0x12b   : > { %v1441_v2 = vmax.f32 %v1289_v61, 0.0  ;;  %v1443_v3 = vmax.f32 %v1330_v62, 0.0 }
 0x12c   : > { %v1291_v4 = vpop.f32.mrf.mxu0  ;;  %v1332_v5 = vpop.f32.mrf.mxu1 }
 0x12d   : > { %v1492_v6 = vcombine.low %v1440_v59, %v1441_v2  ;;  %v1493_v7 = vcombine.low %v1442_v60, %v1443_v3 }
 0x12f   : > { %1524 = vst [vmem:[%s1989_s25 + $0x60] sm:$0xff] %v1492_v6  ;;  %1525 = vst [vmem:[%s1989_s25 + $0x68] sm:$0xff] %v1493_v7 }
 0x132   : > { %v1368_v9 = vpop.f32.mrf.mxu0  ;;  %v1409_v10 = vpop.f32.mrf.mxu1 }
 0x133   : > { %v1369_v0 = vadd.f32 %v1368_v9, %v1979_v8  ;;  %v1410_v11 = vadd.f32 %v1409_v10, %v1979_v8 }
 0x134   : > { %v1370_v12 = vpop.f32.mrf.mxu0  ;;  %v1411_v13 = vpop.f32.mrf.mxu1 }
 0x135   : > { %v1371_v14 = vadd.f32 %v1370_v12, %v1979_v8  ;;  %v1412_v15 = vadd.f32 %v1411_v13, %v1979_v8  ;;  %v1444_v18 = vmax.f32 %v1369_v0, 0.0  ;;  %v1446_v19 = vmax.f32 %v1410_v11, 0.0 }
 0x136   : > { %v1372_v16 = vpop.f32.mrf.mxu0  ;;  %v1413_v17 = vpop.f32.mrf.mxu1 }
 0x137   : > { %v1445_v36 = vmax.f32 %v1371_v14, 0.0  ;;  %v1447_v20 = vmax.f32 %v1412_v15, 0.0 }
 0x138   : > { %v1373_v21 = vpop.f32.mrf.mxu0  ;;  %v1414_v22 = vpop.f32.mrf.mxu1 }
 0x139   : > { %v1494_v23 = vcombine.low %v1444_v18, %v1445_v36  ;;  %v1495_v24 = vcombine.low %v1446_v19, %v1447_v20 }
 0x13b   : > { %1526 = vst [vmem:[%s1989_s25 + $0x70] sm:$0xff] %v1494_v23  ;;  %1527 = vst [vmem:[%s1989_s25 + $0x78] sm:$0xff] %v1495_v24 }
 0x13c PF: > { %s13_s12 = sadd.s32 1, %s1771_s12  }
 0x13d   : > { %p10_p4 = scmp.ge.s32.totalorder %s13_s12, 4  }
 0x13f   :  { %12 = sbr.rel (!%p10_p4) target bundleno = 1 (0x1), region = 62 }

// kernel: decoder_forward.17
= control target key start
LH: loop header
LB: loop body
LE: loop exit
PB: predicated region body
PF: predicated region fallthrough
CT: control target
= control target key end

     0   :  { %s1762_s12 = smov 0   ;;  %s2006_s0 = inlined_call_operand.vmem [shape: bf16[2,36,4096], index: 0, kind: input, shape index: {}]   ;;  %s2007_s1 = inlined_call_operand.vmem [shape: bf16[3,36], index: 1, kind: input, shape index: {}]   ;;  %s2008_s2 = inlined_call_operand.vmem [shape: f32[3,1], index: 2, kind: input, shape index: {}]   ;;  %s2009_s3 = inlined_call_operand.vmem [shape: f32[2,3,4096], index: 3, kind: output, shape index: {}]  }
   0x1 LB: > { %s1551_s13 = sadd.s32 4294967295, %s1739_s12   ;;  %p1555_p0 = scmp.ge.s32.totalorder %s1739_s12, 1  ;;  %s1739_s12 = sphi %s1762_s12, %s13_s12  }
   0x2   : > { %p137_p1 = scmp.lt.s32.totalorder %s1739_s12, 3 }
   0x4   : > { %p138_p2 = pnand %p1555_p0, %p137_p1 }
   0x5   : > { %p161_p3 = scmp.lt.s32.totalorder (!%p138_p2), %s1551_s13, 1 }
   0x6   : > { %141 = sbr.rel (%p138_p2) target bundleno = 314 (0x13a), region = 32 }
   0xb   : > { %v1741_v0 = vmov 0   ;;  %v253_v1 = vld [vmem:[%s2008_s2] sm:$0x7]  ;;  %s2011_s13 = smov (!%p161_p3, %s1551_s13), 1  ;;  %vm663_vm0 = vcmask 1041408   ;;  %vm659_vm1 = vcmask 293888  }
   0xc   : > { %792 = vmatprep.mubr.bf16.mxu0 %v1741_v0  ;;  %833 = vmatprep.mubr.bf16.mxu1 %v1741_v0  ;;  %s1690_s16 = smul.u32 640, %s2011_s13  ;;  %v1807_v36 = vld [vmem:[%s2007_s1] sm:$0x3]  ;;  %s1689_s22 = sshll.u32 %s2011_s13, 7 }
   0xd   : > { %1700 = vset.pattern.permute.xlu0 %v1741_v0  ;;  %s1957_s25 = scalar_lea.vmem %s2009_s3, %s1689_s22 }
   0xe   : > { %256 = vperm.xlu0 %1700, %v253_v1   ;;  %s1782_s19 = scalar_lea.vmem %s2006_s0, %s1690_s16 }
   0xf   : > { %v237_v2 = vld [vmem:[%s1782_s19 + $0x200] sm:$0x33]  ;;  %v238_v3 = vld [vmem:[%s1782_s19 + $0x208] sm:$0x33]  ;;  %v239_v24 = vld [vmem:[%s1782_s19 + $0x210] sm:$0x33] }
  0x10   : > { %v205_v4 = vld [vmem:[%s1782_s19 + $0x100] sm:$0xff]  ;;  %v1624_v5 = vcombine.high %v237_v2, %v237_v2  ;;  %v1626_v6 = vcombine.high %v238_v3, %v238_v3  ;;  %v1623_v7 = vcombine.low %v237_v2, %v237_v2  ;;  %v1625_v8 = vcombine.low %v238_v3, %v238_v3  ;;  %v206_v10 = vld [vmem:[%s1782_s19 + $0x108] sm:$0xff]  ;;  %v240_v25 = vld [vmem:[%s1782_s19 + $0x218] sm:$0x33] }
  0x11   : > { %v221_v9 = vld [vmem:[%s1782_s19 + $0x180] sm:$0xff]  ;;  %v222_v11 = vld [vmem:[%s1782_s19 + $0x188] sm:$0xff]  ;;  %v1628_v28 = vcombine.high %v239_v24, %v239_v24  ;;  %v1630_v29 = vcombine.high %v240_v25, %v240_v25  ;;  %v1627_v30 = vcombine.low %v239_v24, %v239_v24  ;;  %v1629_v31 = vcombine.low %v240_v25, %v240_v25  ;;  %v207_v32 = vld [vmem:[%s1782_s19 + $0x110] sm:$0xff] }
  0x12   : > { %v1592_v12 = vcombine.high %v205_v4, %v221_v9  ;;  %v1594_v13 = vcombine.high %v206_v10, %v222_v11  ;;  %v173_v14 = vld [vmem:[%s1782_s19] sm:$0xff]  ;;  %v174_v16 = vld [vmem:[%s1782_s19 + $0x8] sm:$0xff]  ;;  %1655 = vmatprep.subr.msk.bf16.mxu0 %vm663_vm0, %v1624_v5  ;;  %1657 = vmatprep.subr.msk.bf16.mxu1 %vm663_vm0, %v1626_v6  ;;  %v665_v17 = vsel %vm663_vm0, %v1623_v7, 0  ;;  %v671_v18 = vsel %vm663_vm0, %v1625_v8, 0  ;;  %v223_v33 = vld [vmem:[%s1782_s19 + $0x190] sm:$0xff] }
  0x13   : > { %v189_v15 = vld [vmem:[%s1782_s19 + $0x80] sm:$0xff]  ;;  %v190_v19 = vld [vmem:[%s1782_s19 + $0x88] sm:$0xff]  ;;  %771 = vmatpush1.bf16.msra.mxu0 %v665_v17  ;;  %812 = vmatpush1.bf16.msra.mxu1 %v671_v18  ;;  %v1591_v20 = vcombine.low %v205_v4, %v221_v9  ;;  %v1593_v21 = vcombine.low %v206_v10, %v222_v11  ;;  %v208_v34 = vld [vmem:[%s1782_s19 + $0x118] sm:$0xff]  ;;  %v677_v37 = vsel %vm663_vm0, %v1627_v30, 0  ;;  %v683_v38 = vsel %vm663_vm0, %v1629_v31, 0 }
  0x14   : > { %772 = vmatprep.subr.bf16.mxu0 %v1592_v12  ;;  %813 = vmatprep.subr.bf16.mxu1 %v1594_v13  ;;  %v1560_v22 = vcombine.high %v173_v14, %v189_v15  ;;  %v1562_v23 = vcombine.high %v174_v16, %v190_v19  ;;  %v1559_v26 = vcombine.low %v173_v14, %v189_v15  ;;  %v224_v35 = vld [vmem:[%s1782_s19 + $0x198] sm:$0xff]  ;;  %v175_v41 = vld [vmem:[%s1782_s19 + $0x10] sm:$0xff]  ;;  %v241_v49 = vld [vmem:[%s1782_s19 + $0x220] sm:$0x33] }
  0x15   : > { %v1561_v27 = vcombine.low %v174_v16, %v190_v19  ;;  %v1596_v39 = vcombine.high %v207_v32, %v223_v33  ;;  %v1598_v40 = vcombine.high %v208_v34, %v224_v35  ;;  %v191_v42 = vld [vmem:[%s1782_s19 + $0x90] sm:$0xff]  ;;  %v176_v43 = vld [vmem:[%s1782_s19 + $0x18] sm:$0xff]  ;;  %v1595_v45 = vcombine.low %v207_v32, %v223_v33  ;;  %v242_v50 = vld [vmem:[%s1782_s19 + $0x228] sm:$0x33] }
  0x16   : > { %v192_v44 = vld [vmem:[%s1782_s19 + $0x98] sm:$0xff]  ;;  %v1597_v46 = vcombine.low %v208_v34, %v224_v35  ;;  %v1564_v47 = vcombine.high %v175_v41, %v191_v42  ;;  %v1563_v51 = vcombine.low %v175_v41, %v191_v42  ;;  %v1632_v53 = vcombine.high %v241_v49, %v241_v49  ;;  %v209_v57 = vld [vmem:[%s1782_s19 + $0x120] sm:$0xff]  ;;  %v210_v59 = vld [vmem:[%s1782_s19 + $0x128] sm:$0xff] }
  0x17   : > { %773 = vmatpush1.bf16.msra.mxu0 %v1591_v20  ;;  %814 = vmatpush1.bf16.msra.mxu1 %v1593_v21  ;;  %v1566_v48 = vcombine.high %v176_v43, %v192_v44  ;;  %v1565_v52 = vcombine.low %v176_v43, %v192_v44  ;;  %v1634_v54 = vcombine.high %v242_v50, %v242_v50  ;;  %v225_v58 = vld [vmem:[%s1782_s19 + $0x1a0] sm:$0xff]  ;;  %v226_v60 = vld [vmem:[%s1782_s19 + $0x1a8] sm:$0xff]  ;;  %v243_v10 = vld [vmem:[%s1782_s19 + $0x230] sm:$0x33] }
  0x18   : > { %774 = vmatprep.subr.bf16.mxu0 %v1560_v22  ;;  %815 = vmatprep.subr.bf16.mxu1 %v1562_v23  ;;  %v1631_v55 = vcombine.low %v241_v49, %v241_v49  ;;  %v1633_v56 = vcombine.low %v242_v50, %v242_v50  ;;  %v1600_v63 = vcombine.high %v209_v57, %v225_v58  ;;  %v177_v2 = vld [vmem:[%s1782_s19 + $0x20] sm:$0xff]  ;;  %v178_v4 = vld [vmem:[%s1782_s19 + $0x28] sm:$0xff]  ;;  %v244_v11 = vld [vmem:[%s1782_s19 + $0x238] sm:$0x33] }
  0x19   : > { %v1602_v1 = vcombine.high %v210_v59, %v226_v60  ;;  %v193_v3 = vld [vmem:[%s1782_s19 + $0xa0] sm:$0xff]  ;;  %v194_v5 = vld [vmem:[%s1782_s19 + $0xa8] sm:$0xff]  ;;  %v1599_v6 = vcombine.low %v209_v57, %v225_v58  ;;  %v1601_v7 = vcombine.low %v210_v59, %v226_v60  ;;  %v1636_v14 = vcombine.high %v243_v10, %v243_v10  ;;  %v211_v18 = vld [vmem:[%s1782_s19 + $0x130] sm:$0xff] }
  0x1a   : > { %v689_v61 = vsel %vm663_vm0, %v1631_v55, 0  ;;  %v695_v62 = vsel %vm663_vm0, %v1633_v56, 0  ;;  %v1568_v8 = vcombine.high %v177_v2, %v193_v3  ;;  %v1570_v9 = vcombine.high %v178_v4, %v194_v5  ;;  %v227_v19 = vld [vmem:[%s1782_s19 + $0x1b0] sm:$0xff]  ;;  %v212_v20 = vld [vmem:[%s1782_s19 + $0x138] sm:$0xff]  ;;  %v245_v34 = vld [vmem:[%s1782_s19 + $0x240] sm:$0x33] }
  0x1b   : > { %775 = vmatpush1.bf16.msra.mxu0 %v1559_v26  ;;  %816 = vmatpush1.bf16.msra.mxu1 %v1561_v27  ;;  %v1567_v12 = vcombine.low %v177_v2, %v193_v3  ;;  %v1569_v13 = vcombine.low %v178_v4, %v194_v5  ;;  %v1638_v15 = vcombine.high %v244_v11, %v244_v11  ;;  %v228_v21 = vld [vmem:[%s1782_s19 + $0x1b8] sm:$0xff]  ;;  %v179_v26 = vld [vmem:[%s1782_s19 + $0x30] sm:$0xff]  ;;  %v246_v35 = vld [vmem:[%s1782_s19 + $0x248] sm:$0x33] }
  0x1c   : > { %1659 = vmatprep.subr.msk.bf16.mxu0 %vm663_vm0, %v1628_v28  ;;  %1661 = vmatprep.subr.msk.bf16.mxu1 %vm663_vm0, %v1630_v29  ;;  %v1635_v16 = vcombine.low %v243_v10, %v243_v10  ;;  %v1637_v17 = vcombine.low %v244_v11, %v244_v11  ;;  %v1604_v24 = vcombine.high %v211_v18, %v227_v19  ;;  %v195_v27 = vld [vmem:[%s1782_s19 + $0xb0] sm:$0xff]  ;;  %v180_v28 = vld [vmem:[%s1782_s19 + $0x38] sm:$0xff]  ;;  %v213_v43 = vld [vmem:[%s1782_s19 + $0x140] sm:$0xff] }
  0x1d   : > { %v1606_v25 = vcombine.high %v212_v20, %v228_v21  ;;  %v196_v29 = vld [vmem:[%s1782_s19 + $0xb8] sm:$0xff]  ;;  %v1603_v30 = vcombine.low %v211_v18, %v227_v19  ;;  %v1605_v31 = vcombine.low %v212_v20, %v228_v21  ;;  %v1572_v32 = vcombine.high %v179_v26, %v195_v27  ;;  %v229_v44 = vld [vmem:[%s1782_s19 + $0x1c0] sm:$0xff]  ;;  %v247_v59 = vld [vmem:[%s1782_s19 + $0x250] sm:$0x33] }
  0x1e   : > { %1656 = vmatmul.mubr.msk.bf16.vlgmr.msra.gmra.mxu0 %vm659_vm1, %v1807_v36  ;;  %1658 = vmatmul.mubr.msk.bf16.vlgmr.msra.gmra.mxu1 %vm659_vm1, %v1807_v36  ;;  %v701_v22 = vsel %vm663_vm0, %v1635_v16, 0  ;;  %v707_v23 = vsel %vm663_vm0, %v1637_v17, 0  ;;  %v1574_v33 = vcombine.high %v180_v28, %v196_v29  ;;  %v1639_v41 = vcombine.low %v245_v34, %v245_v34  ;;  %v248_v60 = vld [vmem:[%s1782_s19 + $0x258] sm:$0x33]  ;;  %v215_v4 = vld [vmem:[%s1782_s19 + $0x150] sm:$0xff] }
  0x1f   : > { %853 = vmatpush1.bf16.msra.mxu0 %v677_v37  ;;  %894 = vmatpush1.bf16.msra.mxu1 %v683_v38  ;;  %v1571_v37 = vcombine.low %v179_v26, %v195_v27  ;;  %v1573_v38 = vcombine.low %v180_v28, %v196_v29  ;;  %v1641_v42 = vcombine.low %v246_v35, %v246_v35  ;;  %v231_v5 = vld [vmem:[%s1782_s19 + $0x1d0] sm:$0xff]  ;;  %v249_v20 = vld [vmem:[%s1782_s19 + $0x260] sm:$0x33]  ;;  %v250_v21 = vld [vmem:[%s1782_s19 + $0x268] sm:$0x33] }
  0x20   : > { %854 = vmatprep.subr.bf16.mxu0 %v1596_v39  ;;  %895 = vmatprep.subr.bf16.mxu1 %v1598_v40  ;;  %v1640_v39 = vcombine.high %v245_v34, %v245_v34  ;;  %v1642_v40 = vcombine.high %v246_v35, %v246_v35  ;;  %v1608_v49 = vcombine.high %v213_v43, %v229_v44  ;;  %v217_v28 = vld [vmem:[%s1782_s19 + $0x160] sm:$0xff] }
  0x21   : > { %874 = vmatprep.mubr.bf16.mxu0 %v1741_v0  ;;  %915 = vmatprep.mubr.bf16.mxu1 %v1741_v0  ;;  %v1607_v55 = vcombine.low %v213_v43, %v229_v44  ;;  %v1643_v2 = vcombine.low %v247_v59, %v247_v59  ;;  %v1645_v3 = vcombine.low %v248_v60, %v248_v60  ;;  %v233_v29 = vld [vmem:[%s1782_s19 + $0x1e0] sm:$0xff] }
  0x22   : > { %v1612_v10 = vcombine.high %v215_v4, %v231_v5  ;;  %v1611_v16 = vcombine.low %v215_v4, %v231_v5  ;;  %v1647_v26 = vcombine.low %v249_v20, %v249_v20  ;;  %v1649_v27 = vcombine.low %v250_v21, %v250_v21 }
  0x23   : > { %855 = vmatpush1.bf16.msra.mxu0 %v1595_v45  ;;  %896 = vmatpush1.bf16.msra.mxu1 %v1597_v46  ;;  %v214_v45 = vld [vmem:[%s1782_s19 + $0x148] sm:$0xff]  ;;  %v1616_v34 = vcombine.high %v217_v28, %v233_v29 }
  0x24   : > { %856 = vmatprep.subr.bf16.mxu0 %v1564_v47  ;;  %897 = vmatprep.subr.bf16.mxu1 %v1566_v48  ;;  %v230_v46 = vld [vmem:[%s1782_s19 + $0x1c8] sm:$0xff]  ;;  %v713_v47 = vsel %vm663_vm0, %v1639_v41, 0  ;;  %v719_v48 = vsel %vm663_vm0, %v1641_v42, 0  ;;  %v1615_v41 = vcombine.low %v217_v28, %v233_v29 }
  0x25   : > { %v1610_v50 = vcombine.high %v214_v45, %v230_v46  ;;  %v1609_v56 = vcombine.low %v214_v45, %v230_v46  ;;  %v251_v45 = vld [vmem:[%s1782_s19 + $0x270] sm:$0x33]  ;;  %v252_v46 = vld [vmem:[%s1782_s19 + $0x278] sm:$0x33] }
  0x27   : > { %857 = vmatpush1.bf16.msra.mxu0 %v1563_v51  ;;  %898 = vmatpush1.bf16.msra.mxu1 %v1565_v52  ;;  %v181_v51 = vld [vmem:[%s1782_s19 + $0x40] sm:$0xff] }
  0x28   : > { %1663 = vmatprep.subr.msk.bf16.mxu0 %vm663_vm0, %v1632_v53  ;;  %1665 = vmatprep.subr.msk.bf16.mxu1 %vm663_vm0, %v1634_v54  ;;  %v197_v52 = vld [vmem:[%s1782_s19 + $0xc0] sm:$0xff]  ;;  %v182_v53 = vld [vmem:[%s1782_s19 + $0x48] sm:$0xff] }
  0x29   : > { %v198_v54 = vld [vmem:[%s1782_s19 + $0xc8] sm:$0xff]  ;;  %v1576_v57 = vcombine.high %v181_v51, %v197_v52 }
  0x2a   : > { %1660 = vmatmul.mubr.msk.bf16.vlgmr.msra.gmra.mxu0 %vm659_vm1, %v1807_v36  ;;  %1662 = vmatmul.mubr.msk.bf16.vlgmr.msra.gmra.mxu1 %vm659_vm1, %v1807_v36  ;;  %v1578_v58 = vcombine.high %v182_v53, %v198_v54 }
  0x2b   : > { %935 = vmatpush1.bf16.msra.mxu0 %v689_v61  ;;  %976 = vmatpush1.bf16.msra.mxu1 %v695_v62  ;;  %v1575_v61 = vcombine.low %v181_v51, %v197_v52  ;;  %v1577_v62 = vcombine.low %v182_v53, %v198_v54  ;;  %v1651_v51 = vcombine.low %v251_v45, %v251_v45  ;;  %v219_v53 = vld [vmem:[%s1782_s19 + $0x170] sm:$0xff] }
  0x2c   : > { %936 = vmatprep.subr.bf16.mxu0 %v1600_v63  ;;  %977 = vmatprep.subr.bf16.mxu1 %v1602_v1  ;;  %v1644_v63 = vcombine.high %v247_v59, %v247_v59  ;;  %v1646_v1 = vcombine.high %v248_v60, %v248_v60  ;;  %v1653_v52 = vcombine.low %v252_v46, %v252_v46  ;;  %v235_v54 = vld [vmem:[%s1782_s19 + $0x1f0] sm:$0xff] }
  0x2d   : > { %956 = vmatprep.mubr.bf16.mxu0 %v1741_v0  ;;  %997 = vmatprep.mubr.bf16.mxu1 %v1741_v0  ;;  %v1620_v59 = vcombine.high %v219_v53, %v235_v54 }
  0x2f   : > { %937 = vmatpush1.bf16.msra.mxu0 %v1599_v6  ;;  %978 = vmatpush1.bf16.msra.mxu1 %v1601_v7  ;;  %v216_v6 = vld [vmem:[%s1782_s19 + $0x158] sm:$0xff] }
  0x30   : > { %938 = vmatprep.subr.bf16.mxu0 %v1568_v8  ;;  %979 = vmatprep.subr.bf16.mxu1 %v1570_v9  ;;  %v232_v7 = vld [vmem:[%s1782_s19 + $0x1d8] sm:$0xff]  ;;  %v725_v8 = vsel %vm663_vm0, %v1643_v2, 0  ;;  %v731_v9 = vsel %vm663_vm0, %v1645_v3, 0  ;;  %v1619_v2 = vcombine.low %v219_v53, %v235_v54 }
  0x31   : > { %v1614_v11 = vcombine.high %v216_v6, %v232_v7  ;;  %v1613_v17 = vcombine.low %v216_v6, %v232_v7 }
  0x33   : > { %939 = vmatpush1.bf16.msra.mxu0 %v1567_v12  ;;  %980 = vmatpush1.bf16.msra.mxu1 %v1569_v13  ;;  %v183_v12 = vld [vmem:[%s1782_s19 + $0x50] sm:$0xff] }
  0x34   : > { %1667 = vmatprep.subr.msk.bf16.mxu0 %vm663_vm0, %v1636_v14  ;;  %1669 = vmatprep.subr.msk.bf16.mxu1 %vm663_vm0, %v1638_v15  ;;  %v199_v13 = vld [vmem:[%s1782_s19 + $0xd0] sm:$0xff]  ;;  %v184_v14 = vld [vmem:[%s1782_s19 + $0x58] sm:$0xff] }
  0x35   : > { %v200_v15 = vld [vmem:[%s1782_s19 + $0xd8] sm:$0xff]  ;;  %v1580_v18 = vcombine.high %v183_v12, %v199_v13 }
  0x36   : > { %1664 = vmatmul.mubr.msk.bf16.vlgmr.msra.gmra.mxu0 %vm659_vm1, %v1807_v36  ;;  %1666 = vmatmul.mubr.msk.bf16.vlgmr.msra.gmra.mxu1 %vm659_vm1, %v1807_v36  ;;  %v1582_v19 = vcombine.high %v184_v14, %v200_v15 }
  0x37   : > { %1017 = vmatpush1.bf16.msra.mxu0 %v701_v22  ;;  %1058 = vmatpush1.bf16.msra.mxu1 %v707_v23  ;;  %v1579_v22 = vcombine.low %v183_v12, %v199_v13  ;;  %v1581_v23 = vcombine.low %v184_v14, %v200_v15 }
  0x38   : > { %1018 = vmatprep.subr.bf16.mxu0 %v1604_v24  ;;  %1059 = vmatprep.subr.bf16.mxu1 %v1606_v25  ;;  %v1648_v24 = vcombine.high %v249_v20, %v249_v20  ;;  %v1650_v25 = vcombine.high %v250_v21, %v250_v21 }
  0x39   : > { %1038 = vmatprep.mubr.bf16.mxu0 %v1741_v0  ;;  %1079 = vmatprep.mubr.bf16.mxu1 %v1741_v0 }
  0x3b   : > { %1019 = vmatpush1.bf16.msra.mxu0 %v1603_v30  ;;  %1060 = vmatpush1.bf16.msra.mxu1 %v1605_v31  ;;  %v218_v30 = vld [vmem:[%s1782_s19 + $0x168] sm:$0xff] }
  0x3c   : > { %1020 = vmatprep.subr.bf16.mxu0 %v1572_v32  ;;  %1061 = vmatprep.subr.bf16.mxu1 %v1574_v33  ;;  %v234_v31 = vld [vmem:[%s1782_s19 + $0x1e8] sm:$0xff]  ;;  %v737_v32 = vsel %vm663_vm0, %v1647_v26, 0  ;;  %v743_v33 = vsel %vm663_vm0, %v1649_v27, 0 }
  0x3d   : > { %v1618_v35 = vcombine.high %v218_v30, %v234_v31  ;;  %v1617_v42 = vcombine.low %v218_v30, %v234_v31 }
  0x3f   : > { %1021 = vmatpush1.bf16.msra.mxu0 %v1571_v37  ;;  %1062 = vmatpush1.bf16.msra.mxu1 %v1573_v38  ;;  %v185_v37 = vld [vmem:[%s1782_s19 + $0x60] sm:$0xff] }
  0x40   : > { %1671 = vmatprep.subr.msk.bf16.mxu0 %vm663_vm0, %v1640_v39  ;;  %1673 = vmatprep.subr.msk.bf16.mxu1 %vm663_vm0, %v1642_v40  ;;  %v201_v38 = vld [vmem:[%s1782_s19 + $0xe0] sm:$0xff]  ;;  %v186_v39 = vld [vmem:[%s1782_s19 + $0x68] sm:$0xff] }
  0x41   : > { %v202_v40 = vld [vmem:[%s1782_s19 + $0xe8] sm:$0xff]  ;;  %v1584_v43 = vcombine.high %v185_v37, %v201_v38 }
  0x42   : > { %1668 = vmatmul.mubr.msk.bf16.vlgmr.msra.gmra.mxu0 %vm659_vm1, %v1807_v36  ;;  %1670 = vmatmul.mubr.msk.bf16.vlgmr.msra.gmra.mxu1 %vm659_vm1, %v1807_v36  ;;  %v1586_v44 = vcombine.high %v186_v39, %v202_v40 }
  0x43   : > { %1099 = vmatpush1.bf16.msra.mxu0 %v713_v47  ;;  %1140 = vmatpush1.bf16.msra.mxu1 %v719_v48  ;;  %v1583_v47 = vcombine.low %v185_v37, %v201_v38  ;;  %v1585_v48 = vcombine.low %v186_v39, %v202_v40 }
  0x44   : > { %1100 = vmatprep.subr.bf16.mxu0 %v1608_v49  ;;  %1141 = vmatprep.subr.bf16.mxu1 %v1610_v50  ;;  %v1652_v49 = vcombine.high %v251_v45, %v251_v45  ;;  %v1654_v50 = vcombine.high %v252_v46, %v252_v46 }
  0x45   : > { %1120 = vmatprep.mubr.bf16.mxu0 %v1741_v0  ;;  %1161 = vmatprep.mubr.bf16.mxu1 %v1741_v0 }
  0x47   : > { %1101 = vmatpush1.bf16.msra.mxu0 %v1607_v55  ;;  %1142 = vmatpush1.bf16.msra.mxu1 %v1609_v56  ;;  %v220_v55 = vld [vmem:[%s1782_s19 + $0x178] sm:$0xff] }
  0x48   : > { %1102 = vmatprep.subr.bf16.mxu0 %v1576_v57  ;;  %1143 = vmatprep.subr.bf16.mxu1 %v1578_v58  ;;  %v236_v56 = vld [vmem:[%s1782_s19 + $0x1f8] sm:$0xff]  ;;  %v749_v57 = vsel %vm663_vm0, %v1651_v51, 0  ;;  %v755_v58 = vsel %vm663_vm0, %v1653_v52, 0 }
  0x49   : > { %v1622_v60 = vcombine.high %v220_v55, %v236_v56  ;;  %v1621_v3 = vcombine.low %v220_v55, %v236_v56 }
  0x4b   : > { %1103 = vmatpush1.bf16.msra.mxu0 %v1575_v61  ;;  %1144 = vmatpush1.bf16.msra.mxu1 %v1577_v62  ;;  %v187_v61 = vld [vmem:[%s1782_s19 + $0x70] sm:$0xff] }
  0x4c   : > { %1675 = vmatprep.subr.msk.bf16.mxu0 %vm663_vm0, %v1644_v63  ;;  %1677 = vmatprep.subr.msk.bf16.mxu1 %vm663_vm0, %v1646_v1  ;;  %v203_v62 = vld [vmem:[%s1782_s19 + $0xf0] sm:$0xff]  ;;  %v188_v63 = vld [vmem:[%s1782_s19 + $0x78] sm:$0xff] }
  0x4d   : > { %v204_v1 = vld [vmem:[%s1782_s19 + $0xf8] sm:$0xff]  ;;  %v1588_v4 = vcombine.high %v187_v61, %v203_v62  ;;  %v1587_v6 = vcombine.low %v187_v61, %v203_v62 }
  0x4e   : > { %1672 = vmatmul.mubr.msk.bf16.vlgmr.msra.gmra.mxu0 %vm659_vm1, %v1807_v36  ;;  %1674 = vmatmul.mubr.msk.bf16.vlgmr.msra.gmra.mxu1 %vm659_vm1, %v1807_v36  ;;  %v1590_v5 = vcombine.high %v188_v63, %v204_v1  ;;  %v1589_v7 = vcombine.low %v188_v63, %v204_v1 }
  0x4f   : > { %1181 = vmatpush1.bf16.msra.mxu0 %v725_v8  ;;  %1222 = vmatpush1.bf16.msra.mxu1 %v731_v9 }
  0x50   : > { %1182 = vmatprep.subr.bf16.mxu0 %v1612_v10  ;;  %1223 = vmatprep.subr.bf16.mxu1 %v1614_v11 }
  0x51   : > { %1202 = vmatprep.mubr.bf16.mxu0 %v1741_v0  ;;  %1243 = vmatprep.mubr.bf16.mxu1 %v1741_v0 }
  0x53   : > { %1183 = vmatpush1.bf16.msra.mxu0 %v1611_v16  ;;  %1224 = vmatpush1.bf16.msra.mxu1 %v1613_v17 }
  0x54   : > { %1184 = vmatprep.subr.bf16.mxu0 %v1580_v18  ;;  %1225 = vmatprep.subr.bf16.mxu1 %v1582_v19 }
  0x57   : > { %1185 = vmatpush1.bf16.msra.mxu0 %v1579_v22  ;;  %1226 = vmatpush1.bf16.msra.mxu1 %v1581_v23 }
  0x58   : > { %1679 = vmatprep.subr.msk.bf16.mxu0 %vm663_vm0, %v1648_v24  ;;  %1681 = vmatprep.subr.msk.bf16.mxu1 %vm663_vm0, %v1650_v25 }
  0x5a   : > { %1676 = vmatmul.mubr.msk.bf16.vlgmr.msra.gmra.mxu0 %vm659_vm1, %v1807_v36  ;;  %1678 = vmatmul.mubr.msk.bf16.vlgmr.msra.gmra.mxu1 %vm659_vm1, %v1807_v36 }
  0x5b   : > { %1263 = vmatpush1.bf16.msra.mxu0 %v737_v32  ;;  %1304 = vmatpush1.bf16.msra.mxu1 %v743_v33 }
  0x5c   : > { %1264 = vmatprep.subr.bf16.mxu0 %v1616_v34  ;;  %1305 = vmatprep.subr.bf16.mxu1 %v1618_v35 }
  0x5d   : > { %1284 = vmatprep.mubr.bf16.mxu0 %v1741_v0  ;;  %1325 = vmatprep.mubr.bf16.mxu1 %v1741_v0 }
  0x5f   : > { %1265 = vmatpush1.bf16.msra.mxu0 %v1615_v41  ;;  %1306 = vmatpush1.bf16.msra.mxu1 %v1617_v42 }
  0x60   : > { %1266 = vmatprep.subr.bf16.mxu0 %v1584_v43  ;;  %1307 = vmatprep.subr.bf16.mxu1 %v1586_v44 }
  0x63   : > { %1267 = vmatpush1.bf16.msra.mxu0 %v1583_v47  ;;  %1308 = vmatpush1.bf16.msra.mxu1 %v1585_v48 }
  0x64   : > { %1683 = vmatprep.subr.msk.bf16.mxu0 %vm663_vm0, %v1652_v49  ;;  %1685 = vmatprep.subr.msk.bf16.mxu1 %vm663_vm0, %v1654_v50 }
  0x66   : > { %1680 = vmatmul.mubr.msk.bf16.vlgmr.msra.gmra.mxu0 %vm659_vm1, %v1807_v36  ;;  %1682 = vmatmul.mubr.msk.bf16.vlgmr.msra.gmra.mxu1 %vm659_vm1, %v1807_v36 }
  0x67   : > { %1345 = vmatpush1.bf16.msra.mxu0 %v749_v57  ;;  %1386 = vmatpush1.bf16.msra.mxu1 %v755_v58 }
  0x68   : > { %1346 = vmatprep.subr.bf16.mxu0 %v1620_v59  ;;  %1387 = vmatprep.subr.bf16.mxu1 %v1622_v60 }
  0x69   : > { %1366 = vmatprep.mubr.bf16.mxu0 %v1741_v0  ;;  %1407 = vmatprep.mubr.bf16.mxu1 %v1741_v0 }
  0x6b   : > { %1347 = vmatpush1.bf16.msra.mxu0 %v1619_v2  ;;  %1388 = vmatpush1.bf16.msra.mxu1 %v1621_v3 }
  0x6c   : > { %1348 = vmatprep.subr.bf16.mxu0 %v1588_v4  ;;  %1389 = vmatprep.subr.bf16.mxu1 %v1590_v5 }
  0x6f   : > { %1349 = vmatpush1.bf16.msra.mxu0 %v1587_v6  ;;  %1390 = vmatpush1.bf16.msra.mxu1 %v1589_v7 }
  0x72   : > { %1684 = vmatmul.mubr.msk.bf16.vlgmr.msra.gmra.mxu0 %vm659_vm1, %v1807_v36  ;;  %1686 = vmatmul.mubr.msk.bf16.vlgmr.msra.gmra.mxu1 %vm659_vm1, %v1807_v36 }
  0x89   : > { %v1947_v8 = vpop.permute.xlu0 %256 }
  0xde   : > { %v794_v9 = vpop.f32.mrf.mxu0  ;;  %v835_v10 = vpop.f32.mrf.mxu1 }
  0xdf   : > { %v795_v0 = vadd.f32 %v794_v9, %v1947_v8  ;;  %v836_v11 = vadd.f32 %v835_v10, %v1947_v8 }
  0xe0   : > { %v796_v12 = vpop.f32.mrf.mxu0  ;;  %v837_v13 = vpop.f32.mrf.mxu1 }
  0xe1   : > { %v797_v14 = vadd.f32 %v796_v12, %v1947_v8  ;;  %v838_v15 = vadd.f32 %v837_v13, %v1947_v8 }
  0xe2   : > { %v798_v36 = vpop.f32.mrf.mxu0  ;;  %v839_v16 = vpop.f32.mrf.mxu1 }
  0xe3   : > { %v1448_v17 = vcombine.low %v795_v0, %v797_v14  ;;  %v1449_v18 = vcombine.low %v836_v11, %v838_v15 }
  0xe4   : > { %v799_v19 = vpop.f32.mrf.mxu0  ;;  %v840_v20 = vpop.f32.mrf.mxu1 }
  0xe5   : > { %1480 = vst [vmem:[%s1957_s25] sm:$0x77] %v1448_v17  ;;  %1481 = vst [vmem:[%s1957_s25 + $0x8] sm:$0x77] %v1449_v18 }
  0xea   : > { %v876_v21 = vpop.f32.mrf.mxu0  ;;  %v917_v22 = vpop.f32.mrf.mxu1 }
  0xeb   : > { %v877_v23 = vadd.f32 %v876_v21, %v1947_v8  ;;  %v918_v24 = vadd.f32 %v917_v22, %v1947_v8 }
  0xec   : > { %v878_v25 = vpop.f32.mrf.mxu0  ;;  %v919_v26 = vpop.f32.mrf.mxu1 }
  0xed   : > { %v879_v27 = vadd.f32 %v878_v25, %v1947_v8  ;;  %v920_v28 = vadd.f32 %v919_v26, %v1947_v8 }
  0xee   : > { %v880_v29 = vpop.f32.mrf.mxu0  ;;  %v921_v30 = vpop.f32.mrf.mxu1 }
  0xef   : > { %v1450_v31 = vcombine.low %v877_v23, %v879_v27  ;;  %v1451_v32 = vcombine.low %v918_v24, %v920_v28 }
  0xf0   : > { %v881_v33 = vpop.f32.mrf.mxu0  ;;  %v922_v34 = vpop.f32.mrf.mxu1 }
  0xf1   : > { %1482 = vst [vmem:[%s1957_s25 + $0x10] sm:$0x77] %v1450_v31  ;;  %1483 = vst [vmem:[%s1957_s25 + $0x18] sm:$0x77] %v1451_v32 }
  0xf6   : > { %v958_v35 = vpop.f32.mrf.mxu0  ;;  %v999_v37 = vpop.f32.mrf.mxu1 }
  0xf7   : > { %v959_v38 = vadd.f32 %v958_v35, %v1947_v8  ;;  %v1000_v39 = vadd.f32 %v999_v37, %v1947_v8 }
  0xf8   : > { %v960_v40 = vpop.f32.mrf.mxu0  ;;  %v1001_v41 = vpop.f32.mrf.mxu1 }
  0xf9   : > { %v961_v42 = vadd.f32 %v960_v40, %v1947_v8  ;;  %v1002_v43 = vadd.f32 %v1001_v41, %v1947_v8 }
  0xfa   : > { %v962_v44 = vpop.f32.mrf.mxu0  ;;  %v1003_v45 = vpop.f32.mrf.mxu1 }
  0xfb   : > { %v1452_v46 = vcombine.low %v959_v38, %v961_v42  ;;  %v1453_v47 = vcombine.low %v1000_v39, %v1002_v43 }
  0xfc   : > { %v963_v48 = vpop.f32.mrf.mxu0  ;;  %v1004_v49 = vpop.f32.mrf.mxu1 }
  0xfd   : > { %1484 = vst [vmem:[%s1957_s25 + $0x20] sm:$0x77] %v1452_v46  ;;  %1485 = vst [vmem:[%s1957_s25 + $0x28] sm:$0x77] %v1453_v47 }
 0x102   : > { %v1040_v50 = vpop.f32.mrf.mxu0  ;;  %v1081_v51 = vpop.f32.mrf.mxu1 }
 0x103   : > { %v1041_v52 = vadd.f32 %v1040_v50, %v1947_v8  ;;  %v1082_v53 = vadd.f32 %v1081_v51, %v1947_v8 }
 0x104   : > { %v1042_v54 = vpop.f32.mrf.mxu0  ;;  %v1083_v55 = vpop.f32.mrf.mxu1 }
 0x105   : > { %v1043_v56 = vadd.f32 %v1042_v54, %v1947_v8  ;;  %v1084_v57 = vadd.f32 %v1083_v55, %v1947_v8 }
 0x106   : > { %v1044_v58 = vpop.f32.mrf.mxu0  ;;  %v1085_v59 = vpop.f32.mrf.mxu1 }
 0x107   : > { %v1454_v60 = vcombine.low %v1041_v52, %v1043_v56  ;;  %v1455_v61 = vcombine.low %v1082_v53, %v1084_v57 }
 0x108   : > { %v1045_v62 = vpop.f32.mrf.mxu0  ;;  %v1086_v63 = vpop.f32.mrf.mxu1 }
 0x109   : > { %1486 = vst [vmem:[%s1957_s25 + $0x30] sm:$0x77] %v1454_v60  ;;  %1487 = vst [vmem:[%s1957_s25 + $0x38] sm:$0x77] %v1455_v61 }
 0x10e   : > { %v1122_v1 = vpop.f32.mrf.mxu0  ;;  %v1163_v2 = vpop.f32.mrf.mxu1 }
 0x10f   : > { %v1123_v3 = vadd.f32 %v1122_v1, %v1947_v8  ;;  %v1164_v4 = vadd.f32 %v1163_v2, %v1947_v8 }
 0x110   : > { %v1124_v5 = vpop.f32.mrf.mxu0  ;;  %v1165_v6 = vpop.f32.mrf.mxu1 }
 0x111   : > { %v1125_v7 = vadd.f32 %v1124_v5, %v1947_v8  ;;  %v1166_v9 = vadd.f32 %v1165_v6, %v1947_v8 }
 0x112   : > { %v1126_v10 = vpop.f32.mrf.mxu0  ;;  %v1167_v0 = vpop.f32.mrf.mxu1 }
 0x113   : > { %v1456_v11 = vcombine.low %v1123_v3, %v1125_v7  ;;  %v1457_v12 = vcombine.low %v1164_v4, %v1166_v9 }
 0x114   : > { %v1127_v13 = vpop.f32.mrf.mxu0  ;;  %v1168_v14 = vpop.f32.mrf.mxu1 }
 0x115   : > { %1488 = vst [vmem:[%s1957_s25 + $0x40] sm:$0x77] %v1456_v11  ;;  %1489 = vst [vmem:[%s1957_s25 + $0x48] sm:$0x77] %v1457_v12 }
 0x11a   : > { %v1204_v15 = vpop.f32.mrf.mxu0  ;;  %v1245_v36 = vpop.f32.mrf.mxu1 }
 0x11b   : > { %v1205_v16 = vadd.f32 %v1204_v15, %v1947_v8  ;;  %v1246_v17 = vadd.f32 %v1245_v36, %v1947_v8 }
 0x11c   : > { %v1206_v18 = vpop.f32.mrf.mxu0  ;;  %v1247_v19 = vpop.f32.mrf.mxu1 }
 0x11d   : > { %v1207_v20 = vadd.f32 %v1206_v18, %v1947_v8  ;;  %v1248_v21 = vadd.f32 %v1247_v19, %v1947_v8 }
 0x11e   : > { %v1208_v22 = vpop.f32.mrf.mxu0  ;;  %v1249_v23 = vpop.f32.mrf.mxu1 }
 0x11f   : > { %v1458_v24 = vcombine.low %v1205_v16, %v1207_v20  ;;  %v1459_v25 = vcombine.low %v1246_v17, %v1248_v21 }
 0x120   : > { %v1209_v26 = vpop.f32.mrf.mxu0  ;;  %v1250_v27 = vpop.f32.mrf.mxu1 }
 0x121   : > { %1490 = vst [vmem:[%s1957_s25 + $0x50] sm:$0x77] %v1458_v24  ;;  %1491 = vst [vmem:[%s1957_s25 + $0x58] sm:$0x77] %v1459_v25 }
 0x126   : > { %v1286_v28 = vpop.f32.mrf.mxu0  ;;  %v1327_v29 = vpop.f32.mrf.mxu1 }
 0x127   : > { %v1287_v30 = vadd.f32 %v1286_v28, %v1947_v8  ;;  %v1328_v31 = vadd.f32 %v1327_v29, %v1947_v8 }
 0x128   : > { %v1288_v32 = vpop.f32.mrf.mxu0  ;;  %v1329_v33 = vpop.f32.mrf.mxu1 }
 0x129   : > { %v1289_v34 = vadd.f32 %v1288_v32, %v1947_v8  ;;  %v1330_v35 = vadd.f32 %v1329_v33, %v1947_v8 }
 0x12a   : > { %v1290_v37 = vpop.f32.mrf.mxu0  ;;  %v1331_v38 = vpop.f32.mrf.mxu1 }
 0x12b   : > { %v1460_v39 = vcombine.low %v1287_v30, %v1289_v34  ;;  %v1461_v40 = vcombine.low %v1328_v31, %v1330_v35 }
 0x12c   : > { %v1291_v41 = vpop.f32.mrf.mxu0  ;;  %v1332_v42 = vpop.f32.mrf.mxu1 }
 0x12d   : > { %1492 = vst [vmem:[%s1957_s25 + $0x60] sm:$0x77] %v1460_v39  ;;  %1493 = vst [vmem:[%s1957_s25 + $0x68] sm:$0x77] %v1461_v40 }
 0x132   : > { %v1368_v43 = vpop.f32.mrf.mxu0  ;;  %v1409_v44 = vpop.f32.mrf.mxu1 }
 0x133   : > { %v1369_v47 = vadd.f32 %v1368_v43, %v1947_v8  ;;  %v1410_v48 = vadd.f32 %v1409_v44, %v1947_v8 }
 0x134   : > { %v1370_v45 = vpop.f32.mrf.mxu0  ;;  %v1411_v46 = vpop.f32.mrf.mxu1 }
 0x135   : > { %v1371_v49 = vadd.f32 %v1370_v45, %v1947_v8  ;;  %v1412_v50 = vadd.f32 %v1411_v46, %v1947_v8 }
 0x136   : > { %v1372_v51 = vpop.f32.mrf.mxu0  ;;  %v1413_v52 = vpop.f32.mrf.mxu1 }
 0x137   : > { %v1462_v53 = vcombine.low %v1369_v47, %v1371_v49  ;;  %v1463_v54 = vcombine.low %v1410_v48, %v1412_v50 }
 0x138   : > { %v1373_v55 = vpop.f32.mrf.mxu0  ;;  %v1414_v56 = vpop.f32.mrf.mxu1 }
 0x139   : > { %1494 = vst [vmem:[%s1957_s25 + $0x70] sm:$0x77] %v1462_v53  ;;  %1495 = vst [vmem:[%s1957_s25 + $0x78] sm:$0x77] %v1463_v54 }
 0x13a PF: > { %s13_s12 = sadd.s32 1, %s1739_s12  }
 0x13b   : > { %p10_p4 = scmp.ge.s32.totalorder %s13_s12, 4  }
 0x13d   :  { %12 = sbr.rel (!%p10_p4) target bundleno = 1 (0x1), region = 62 }

</bundles_post_ra>
